<compile_context>
chip_gen: v7x
topology: tpu7x:2x2x1
jax: 0.10.0
libtpu: 0.0.40
codegen_flags: <defaults>
</compile_context>

<pallas_src>
from functools import partial

import jax
import jax.numpy as jnp
from jax import lax
from jax.experimental import pallas as pl
from jax.experimental.pallas import tpu as pltpu


def _spatial_gate_kernel(w_ref, ln_ref, x_ref, out_ref, *, c, h, w, ksz, pad, eps):
    # w_ref:  SMEM (2*ksz*ksz,)  flattened Conv2d(2->1) weight, [ic][di][dj] order
    # ln_ref: VMEM (2, h, w)     LayerNorm gamma (row 0) and beta (row 1)
    # x_ref:  VMEM (1, c, h, w)  one batch sample
    # out_ref VMEM (1, c, h, w)
    xb = x_ref[0].astype(jnp.float32)                       # (c, h, w)

    # ---- ChannelPool: max and mean over the channel axis (leading, non-vreg axis) ----
    cmax = jnp.max(xb, axis=0)                              # (h, w)
    cmean = jnp.mean(xb, axis=0)                            # (h, w)

    # ---- Conv2d(2 -> 1, kernel ksz, padding=pad, bias=False) as VPU shift-and-FMA ----
    def pad2d(a):
        zr = jnp.zeros((pad, w), jnp.float32)
        a = jnp.concatenate([zr, a, zr], axis=0)            # (h + 2*pad, w)
        zc = jnp.zeros((h + 2 * pad, pad), jnp.float32)
        return jnp.concatenate([zc, a, zc], axis=1)         # (h + 2*pad, w + 2*pad)

    planes = (pad2d(cmax), pad2d(cmean))
    acc = jnp.zeros((h, w), jnp.float32)
    for ic in range(2):                                     # static unroll: 2*ksz*ksz taps
        p = planes[ic]
        for di in range(ksz):
            rows = p[di:di + h, :]                          # (h, w + 2*pad)
            for dj in range(ksz):
                wv = w_ref[ic * ksz * ksz + di * ksz + dj]  # scalar from SMEM
                acc = acc + wv * rows[:, dj:dj + w]

    # ---- LayerNorm([1, h, w]): per-sample normalization over all h*w values ----
    mu = jnp.mean(acc)
    var = jnp.mean((acc - mu) ** 2)
    normed = (acc - mu) * lax.rsqrt(var + eps)
    normed = normed * ln_ref[0] + ln_ref[1]

    # ---- ReLU -> Sigmoid ----
    scale = jax.nn.sigmoid(jnp.maximum(normed, 0.0))        # (h, w)

    # ---- gate: broadcast over channels ----
    out_ref[0] = (xb * scale[None, :, :]).astype(out_ref.dtype)


def spatial_gate(x, conv_w, ln_gamma, ln_beta, *, eps=1e-5):
    """x: (b, c, h, w). conv_w: (1, 2, k, k). ln_gamma/ln_beta: (1, h, w)."""
    b, c, h, w = x.shape
    _, cin, kh, kw_ = conv_w.shape
    assert cin == 2 and kh == kw_, "SpatialGate expects a (1, 2, k, k) conv weight"
    ksz = kh
    pad = (ksz - 1) // 2

    w_flat = conv_w.reshape(-1).astype(jnp.float32)                       # (2*k*k,)
    ln_params = jnp.concatenate([ln_gamma, ln_beta], axis=0).astype(jnp.float32)  # (2,h,w)

    kernel = partial(_spatial_gate_kernel, c=c, h=h, w=w, ksz=ksz, pad=pad, eps=eps)

    return pl.pallas_call(
        kernel,
        out_shape=jax.ShapeDtypeStruct((b, c, h, w), x.dtype),
        grid_spec=pltpu.PrefetchScalarGridSpec(
            num_scalar_prefetch=0,
            grid=(b,),
            in_specs=[
                # Conv weights: whole array resident in SMEM, read as scalars.
                pl.BlockSpec(memory_space=pltpu.MemorySpace.SMEM),
                # Packed LayerNorm params: constant block index -> stays resident.
                pl.BlockSpec((2, h, w), lambda bi: (0, 0, 0)),
                # One batch sample per grid step.
                pl.BlockSpec((1, c, h, w), lambda bi: (bi, 0, 0, 0)),
            ],
            out_specs=pl.BlockSpec((1, c, h, w), lambda bi: (bi, 0, 0, 0)),
        ),
        compiler_params=pltpu.CompilerParams(
            dimension_semantics=("parallel",),        # batch samples are independent
            vmem_limit_bytes=32 * 1024 * 1024,
        ),
    )(w_flat, ln_params, x)


def reference(x, conv_w, ln_gamma, ln_beta, eps=1e-5):
    """Pure-JAX reference mirroring the PyTorch forward."""
    cmax = jnp.max(x, axis=1, keepdims=True)
    cmean = jnp.mean(x, axis=1, keepdims=True)
    xc = jnp.concatenate([cmax, cmean], axis=1)                      # (b, 2, h, w)
    k = conv_w.shape[-1]
    pad = (k - 1) // 2
    conv = lax.conv_general_dilated(
        xc, conv_w, window_strides=(1, 1), padding=[(pad, pad), (pad, pad)],
        dimension_numbers=('NCHW', 'OIHW', 'NCHW'))                  # (b, 1, h, w)
    mu = conv.mean(axis=(1, 2, 3), keepdims=True)
    var = ((conv - mu) ** 2).mean(axis=(1, 2, 3), keepdims=True)
    normed = (conv - mu) * lax.rsqrt(var + eps) * ln_gamma[None] + ln_beta[None]
    scale = jax.nn.sigmoid(jnp.maximum(normed, 0.0))
    return x * scale


if __name__ == "__main__":
    # Small shapes consistent with the module: SpatialGate(h=16, w=16), kernel_size=7.
    b, c, h, w = 2, 4, 16, 16
    key = jax.random.PRNGKey(0)
    kx, kw, kg, kb = jax.random.split(key, 4)
    x = jax.random.normal(kx, (b, c, h, w), dtype=jnp.float32)
    conv_w = 0.1 * jax.random.normal(kw, (1, 2, 7, 7), dtype=jnp.float32)
    ln_gamma = 1.0 + 0.1 * jax.random.normal(kg, (1, h, w), dtype=jnp.float32)
    ln_beta = 0.1 * jax.random.normal(kb, (1, h, w), dtype=jnp.float32)

    out = jax.block_until_ready(spatial_gate(x, conv_w, ln_gamma, ln_beta))
    ref = jax.block_until_ready(reference(x, conv_w, ln_gamma, ln_beta))

    assert out.shape == (b, c, h, w)
    assert jnp.allclose(out, ref, atol=1e-4, rtol=1e-4), \
        f"max err {jnp.max(jnp.abs(out - ref))}"
    print("KERNEL_OK")
</pallas_src>

<mosaic_0001>
module attributes {stable_mosaic.version = 11 : i64} {
  func.func @_spatial_gate_kernel(%arg0: i32, %arg1: memref<98xf32, #tpu.memory_space<smem>>, %arg2: memref<2x16x16xf32, #tpu.memory_space<vmem>>, %arg3: memref<1x4x16x16xf32, #tpu.memory_space<vmem>>, %arg4: memref<1x4x16x16xf32, #tpu.memory_space<vmem>>) attributes {dimension_semantics = [#tpu.dimension_semantics<parallel>], iteration_bounds = array<i64: 2>, scalar_prefetch = 0 : i64, scratch_operands = 0 : i64, tpu.core_type = #tpu.core_type<tc>, window_params = [{transform_indices = @transform_0, window_bounds = array<i64: 98>}, {pipeline_mode = #tpu.pipeline_mode<synchronous>, transform_indices = @transform_1, window_bounds = array<i64: 2, 16, 16>}, {transform_indices = @transform_2, window_bounds = array<i64: 1, 4, 16, 16>}, {transform_indices = @transform_3, window_bounds = array<i64: 1, 4, 16, 16>}]} {
    %c0 = arith.constant 0 : index
    %c0_0 = arith.constant 0 : index
    %c0_1 = arith.constant 0 : index
    %c0_2 = arith.constant 0 : index
    %0 = vector.load %arg3[%c0, %c0_0, %c0_1, %c0_2] : memref<1x4x16x16xf32, #tpu.memory_space<vmem>>, vector<1x4x16x16xf32>
    %1 = vector.shape_cast %0 : vector<1x4x16x16xf32> to vector<4x16x16xf32>
    %cst = arith.constant dense<0xFF800000> : vector<16x16xf32>
    %2 = vector.multi_reduction <maximumf>, %1, %cst [0] : vector<4x16x16xf32> to vector<16x16xf32>
    %cst_3 = arith.constant dense<0.000000e+00> : vector<16x16xf32>
    %3 = vector.multi_reduction <add>, %1, %cst_3 [0] : vector<4x16x16xf32> to vector<16x16xf32>
    %cst_4 = arith.constant 4.000000e+00 : f32
    %4 = vector.broadcast %cst_4 : f32 to vector<16x16xf32>
    %5 = arith.divf %3, %4 : vector<16x16xf32>
    %cst_5 = arith.constant 0.000000e+00 : f32
    %6 = vector.broadcast %cst_5 : f32 to vector<3x16xf32>
    %7 = tpu.concatenate %6, %2, %6 in 0 : vector<3x16xf32>, vector<16x16xf32>, vector<3x16xf32> -> vector<22x16xf32>
    %cst_6 = arith.constant 0.000000e+00 : f32
    %8 = vector.broadcast %cst_6 : f32 to vector<22x3xf32>
    %9 = tpu.concatenate %8, %7, %8 in 1 : vector<22x3xf32>, vector<22x16xf32>, vector<22x3xf32> -> vector<22x22xf32>
    %cst_7 = arith.constant 0.000000e+00 : f32
    %10 = vector.broadcast %cst_7 : f32 to vector<3x16xf32>
    %11 = tpu.concatenate %10, %5, %10 in 0 : vector<3x16xf32>, vector<16x16xf32>, vector<3x16xf32> -> vector<22x16xf32>
    %cst_8 = arith.constant 0.000000e+00 : f32
    %12 = vector.broadcast %cst_8 : f32 to vector<22x3xf32>
    %13 = tpu.concatenate %12, %11, %12 in 1 : vector<22x3xf32>, vector<22x16xf32>, vector<22x3xf32> -> vector<22x22xf32>
    %cst_9 = arith.constant 0.000000e+00 : f32
    %14 = vector.broadcast %cst_9 : f32 to vector<16x16xf32>
    %15 = vector.extract_strided_slice %9 {offsets = [0, 0], sizes = [16, 22], strides = [1, 1]} : vector<22x22xf32> to vector<16x22xf32>
    %c0_10 = arith.constant 0 : index
    %16 = memref.load %arg1[%c0_10] : memref<98xf32, #tpu.memory_space<smem>>
    %17 = vector.extract_strided_slice %15 {offsets = [0, 0], sizes = [16, 16], strides = [1, 1]} : vector<16x22xf32> to vector<16x16xf32>
    %18 = vector.broadcast %16 : f32 to vector<16x16xf32>
    %19 = arith.mulf %18, %17 : vector<16x16xf32>
    %20 = arith.addf %14, %19 : vector<16x16xf32>
    %c1 = arith.constant 1 : index
    %21 = memref.load %arg1[%c1] : memref<98xf32, #tpu.memory_space<smem>>
    %22 = vector.extract_strided_slice %15 {offsets = [0, 1], sizes = [16, 16], strides = [1, 1]} : vector<16x22xf32> to vector<16x16xf32>
    %23 = vector.broadcast %21 : f32 to vector<16x16xf32>
    %24 = arith.mulf %23, %22 : vector<16x16xf32>
    %25 = arith.addf %20, %24 : vector<16x16xf32>
    %c2 = arith.constant 2 : index
    %26 = memref.load %arg1[%c2] : memref<98xf32, #tpu.memory_space<smem>>
    %27 = vector.extract_strided_slice %15 {offsets = [0, 2], sizes = [16, 16], strides = [1, 1]} : vector<16x22xf32> to vector<16x16xf32>
    %28 = vector.broadcast %26 : f32 to vector<16x16xf32>
    %29 = arith.mulf %28, %27 : vector<16x16xf32>
    %30 = arith.addf %25, %29 : vector<16x16xf32>
    %c3 = arith.constant 3 : index
    %31 = memref.load %arg1[%c3] : memref<98xf32, #tpu.memory_space<smem>>
    %32 = vector.extract_strided_slice %15 {offsets = [0, 3], sizes = [16, 16], strides = [1, 1]} : vector<16x22xf32> to vector<16x16xf32>
    %33 = vector.broadcast %31 : f32 to vector<16x16xf32>
    %34 = arith.mulf %33, %32 : vector<16x16xf32>
    %35 = arith.addf %30, %34 : vector<16x16xf32>
    %c4 = arith.constant 4 : index
    %36 = memref.load %arg1[%c4] : memref<98xf32, #tpu.memory_space<smem>>
    %37 = vector.extract_strided_slice %15 {offsets = [0, 4], sizes = [16, 16], strides = [1, 1]} : vector<16x22xf32> to vector<16x16xf32>
    %38 = vector.broadcast %36 : f32 to vector<16x16xf32>
    %39 = arith.mulf %38, %37 : vector<16x16xf32>
    %40 = arith.addf %35, %39 : vector<16x16xf32>
    %c5 = arith.constant 5 : index
    %41 = memref.load %arg1[%c5] : memref<98xf32, #tpu.memory_space<smem>>
    %42 = vector.extract_strided_slice %15 {offsets = [0, 5], sizes = [16, 16], strides = [1, 1]} : vector<16x22xf32> to vector<16x16xf32>
    %43 = vector.broadcast %41 : f32 to vector<16x16xf32>
    %44 = arith.mulf %43, %42 : vector<16x16xf32>
    %45 = arith.addf %40, %44 : vector<16x16xf32>
    %c6 = arith.constant 6 : index
    %46 = memref.load %arg1[%c6] : memref<98xf32, #tpu.memory_space<smem>>
    %47 = vector.extract_strided_slice %15 {offsets = [0, 6], sizes = [16, 16], strides = [1, 1]} : vector<16x22xf32> to vector<16x16xf32>
    %48 = vector.broadcast %46 : f32 to vector<16x16xf32>
    %49 = arith.mulf %48, %47 : vector<16x16xf32>
    %50 = arith.addf %45, %49 : vector<16x16xf32>
    %51 = vector.extract_strided_slice %9 {offsets = [1, 0], sizes = [16, 22], strides = [1, 1]} : vector<22x22xf32> to vector<16x22xf32>
    %c7 = arith.constant 7 : index
    %52 = memref.load %arg1[%c7] : memref<98xf32, #tpu.memory_space<smem>>
    %53 = vector.extract_strided_slice %51 {offsets = [0, 0], sizes = [16, 16], strides = [1, 1]} : vector<16x22xf32> to vector<16x16xf32>
    %54 = vector.broadcast %52 : f32 to vector<16x16xf32>
    %55 = arith.mulf %54, %53 : vector<16x16xf32>
    %56 = arith.addf %50, %55 : vector<16x16xf32>
    %c8 = arith.constant 8 : index
    %57 = memref.load %arg1[%c8] : memref<98xf32, #tpu.memory_space<smem>>
    %58 = vector.extract_strided_slice %51 {offsets = [0, 1], sizes = [16, 16], strides = [1, 1]} : vector<16x22xf32> to vector<16x16xf32>
    %59 = vector.broadcast %57 : f32 to vector<16x16xf32>
    %60 = arith.mulf %59, %58 : vector<16x16xf32>
    %61 = arith.addf %56, %60 : vector<16x16xf32>
    %c9 = arith.constant 9 : index
    %62 = memref.load %arg1[%c9] : memref<98xf32, #tpu.memory_space<smem>>
    %63 = vector.extract_strided_slice %51 {offsets = [0, 2], sizes = [16, 16], strides = [1, 1]} : vector<16x22xf32> to vector<16x16xf32>
    %64 = vector.broadcast %62 : f32 to vector<16x16xf32>
    %65 = arith.mulf %64, %63 : vector<16x16xf32>
    %66 = arith.addf %61, %65 : vector<16x16xf32>
    %c10 = arith.constant 10 : index
    %67 = memref.load %arg1[%c10] : memref<98xf32, #tpu.memory_space<smem>>
    %68 = vector.extract_strided_slice %51 {offsets = [0, 3], sizes = [16, 16], strides = [1, 1]} : vector<16x22xf32> to vector<16x16xf32>
    %69 = vector.broadcast %67 : f32 to vector<16x16xf32>
    %70 = arith.mulf %69, %68 : vector<16x16xf32>
    %71 = arith.addf %66, %70 : vector<16x16xf32>
    %c11 = arith.constant 11 : index
    %72 = memref.load %arg1[%c11] : memref<98xf32, #tpu.memory_space<smem>>
    %73 = vector.extract_strided_slice %51 {offsets = [0, 4], sizes = [16, 16], strides = [1, 1]} : vector<16x22xf32> to vector<16x16xf32>
    %74 = vector.broadcast %72 : f32 to vector<16x16xf32>
    %75 = arith.mulf %74, %73 : vector<16x16xf32>
    %76 = arith.addf %71, %75 : vector<16x16xf32>
    %c12 = arith.constant 12 : index
    %77 = memref.load %arg1[%c12] : memref<98xf32, #tpu.memory_space<smem>>
    %78 = vector.extract_strided_slice %51 {offsets = [0, 5], sizes = [16, 16], strides = [1, 1]} : vector<16x22xf32> to vector<16x16xf32>
    %79 = vector.broadcast %77 : f32 to vector<16x16xf32>
    %80 = arith.mulf %79, %78 : vector<16x16xf32>
    %81 = arith.addf %76, %80 : vector<16x16xf32>
    %c13 = arith.constant 13 : index
    %82 = memref.load %arg1[%c13] : memref<98xf32, #tpu.memory_space<smem>>
    %83 = vector.extract_strided_slice %51 {offsets = [0, 6], sizes = [16, 16], strides = [1, 1]} : vector<16x22xf32> to vector<16x16xf32>
    %84 = vector.broadcast %82 : f32 to vector<16x16xf32>
    %85 = arith.mulf %84, %83 : vector<16x16xf32>
    %86 = arith.addf %81, %85 : vector<16x16xf32>
    %87 = vector.extract_strided_slice %9 {offsets = [2, 0], sizes = [16, 22], strides = [1, 1]} : vector<22x22xf32> to vector<16x22xf32>
    %c14 = arith.constant 14 : index
    %88 = memref.load %arg1[%c14] : memref<98xf32, #tpu.memory_space<smem>>
    %89 = vector.extract_strided_slice %87 {offsets = [0, 0], sizes = [16, 16], strides = [1, 1]} : vector<16x22xf32> to vector<16x16xf32>
    %90 = vector.broadcast %88 : f32 to vector<16x16xf32>
    %91 = arith.mulf %90, %89 : vector<16x16xf32>
    %92 = arith.addf %86, %91 : vector<16x16xf32>
    %c15 = arith.constant 15 : index
    %93 = memref.load %arg1[%c15] : memref<98xf32, #tpu.memory_space<smem>>
    %94 = vector.extract_strided_slice %87 {offsets = [0, 1], sizes = [16, 16], strides = [1, 1]} : vector<16x22xf32> to vector<16x16xf32>
    %95 = vector.broadcast %93 : f32 to vector<16x16xf32>
    %96 = arith.mulf %95, %94 : vector<16x16xf32>
    %97 = arith.addf %92, %96 : vector<16x16xf32>
    %c16 = arith.constant 16 : index
    %98 = memref.load %arg1[%c16] : memref<98xf32, #tpu.memory_space<smem>>
    %99 = vector.extract_strided_slice %87 {offsets = [0, 2], sizes = [16, 16], strides = [1, 1]} : vector<16x22xf32> to vector<16x16xf32>
    %100 = vector.broadcast %98 : f32 to vector<16x16xf32>
    %101 = arith.mulf %100, %99 : vector<16x16xf32>
    %102 = arith.addf %97, %101 : vector<16x16xf32>
    %c17 = arith.constant 17 : index
    %103 = memref.load %arg1[%c17] : memref<98xf32, #tpu.memory_space<smem>>
    %104 = vector.extract_strided_slice %87 {offsets = [0, 3], sizes = [16, 16], strides = [1, 1]} : vector<16x22xf32> to vector<16x16xf32>
    %105 = vector.broadcast %103 : f32 to vector<16x16xf32>
    %106 = arith.mulf %105, %104 : vector<16x16xf32>
    %107 = arith.addf %102, %106 : vector<16x16xf32>
    %c18 = arith.constant 18 : index
    %108 = memref.load %arg1[%c18] : memref<98xf32, #tpu.memory_space<smem>>
    %109 = vector.extract_strided_slice %87 {offsets = [0, 4], sizes = [16, 16], strides = [1, 1]} : vector<16x22xf32> to vector<16x16xf32>
    %110 = vector.broadcast %108 : f32 to vector<16x16xf32>
    %111 = arith.mulf %110, %109 : vector<16x16xf32>
    %112 = arith.addf %107, %111 : vector<16x16xf32>
    %c19 = arith.constant 19 : index
    %113 = memref.load %arg1[%c19] : memref<98xf32, #tpu.memory_space<smem>>
    %114 = vector.extract_strided_slice %87 {offsets = [0, 5], sizes = [16, 16], strides = [1, 1]} : vector<16x22xf32> to vector<16x16xf32>
    %115 = vector.broadcast %113 : f32 to vector<16x16xf32>
    %116 = arith.mulf %115, %114 : vector<16x16xf32>
    %117 = arith.addf %112, %116 : vector<16x16xf32>
    %c20 = arith.constant 20 : index
    %118 = memref.load %arg1[%c20] : memref<98xf32, #tpu.memory_space<smem>>
    %119 = vector.extract_strided_slice %87 {offsets = [0, 6], sizes = [16, 16], strides = [1, 1]} : vector<16x22xf32> to vector<16x16xf32>
    %120 = vector.broadcast %118 : f32 to vector<16x16xf32>
    %121 = arith.mulf %120, %119 : vector<16x16xf32>
    %122 = arith.addf %117, %121 : vector<16x16xf32>
    %123 = vector.extract_strided_slice %9 {offsets = [3, 0], sizes = [16, 22], strides = [1, 1]} : vector<22x22xf32> to vector<16x22xf32>
    %c21 = arith.constant 21 : index
    %124 = memref.load %arg1[%c21] : memref<98xf32, #tpu.memory_space<smem>>
    %125 = vector.extract_strided_slice %123 {offsets = [0, 0], sizes = [16, 16], strides = [1, 1]} : vector<16x22xf32> to vector<16x16xf32>
    %126 = vector.broadcast %124 : f32 to vector<16x16xf32>
    %127 = arith.mulf %126, %125 : vector<16x16xf32>
    %128 = arith.addf %122, %127 : vector<16x16xf32>
    %c22 = arith.constant 22 : index
    %129 = memref.load %arg1[%c22] : memref<98xf32, #tpu.memory_space<smem>>
    %130 = vector.extract_strided_slice %123 {offsets = [0, 1], sizes = [16, 16], strides = [1, 1]} : vector<16x22xf32> to vector<16x16xf32>
    %131 = vector.broadcast %129 : f32 to vector<16x16xf32>
    %132 = arith.mulf %131, %130 : vector<16x16xf32>
    %133 = arith.addf %128, %132 : vector<16x16xf32>
    %c23 = arith.constant 23 : index
    %134 = memref.load %arg1[%c23] : memref<98xf32, #tpu.memory_space<smem>>
    %135 = vector.extract_strided_slice %123 {offsets = [0, 2], sizes = [16, 16], strides = [1, 1]} : vector<16x22xf32> to vector<16x16xf32>
    %136 = vector.broadcast %134 : f32 to vector<16x16xf32>
    %137 = arith.mulf %136, %135 : vector<16x16xf32>
    %138 = arith.addf %133, %137 : vector<16x16xf32>
    %c24 = arith.constant 24 : index
    %139 = memref.load %arg1[%c24] : memref<98xf32, #tpu.memory_space<smem>>
    %140 = vector.extract_strided_slice %123 {offsets = [0, 3], sizes = [16, 16], strides = [1, 1]} : vector<16x22xf32> to vector<16x16xf32>
    %141 = vector.broadcast %139 : f32 to vector<16x16xf32>
    %142 = arith.mulf %141, %140 : vector<16x16xf32>
    %143 = arith.addf %138, %142 : vector<16x16xf32>
    %c25 = arith.constant 25 : index
    %144 = memref.load %arg1[%c25] : memref<98xf32, #tpu.memory_space<smem>>
    %145 = vector.extract_strided_slice %123 {offsets = [0, 4], sizes = [16, 16], strides = [1, 1]} : vector<16x22xf32> to vector<16x16xf32>
    %146 = vector.broadcast %144 : f32 to vector<16x16xf32>
    %147 = arith.mulf %146, %145 : vector<16x16xf32>
    %148 = arith.addf %143, %147 : vector<16x16xf32>
    %c26 = arith.constant 26 : index
    %149 = memref.load %arg1[%c26] : memref<98xf32, #tpu.memory_space<smem>>
    %150 = vector.extract_strided_slice %123 {offsets = [0, 5], sizes = [16, 16], strides = [1, 1]} : vector<16x22xf32> to vector<16x16xf32>
    %151 = vector.broadcast %149 : f32 to vector<16x16xf32>
    %152 = arith.mulf %151, %150 : vector<16x16xf32>
    %153 = arith.addf %148, %152 : vector<16x16xf32>
    %c27 = arith.constant 27 : index
    %154 = memref.load %arg1[%c27] : memref<98xf32, #tpu.memory_space<smem>>
    %155 = vector.extract_strided_slice %123 {offsets = [0, 6], sizes = [16, 16], strides = [1, 1]} : vector<16x22xf32> to vector<16x16xf32>
    %156 = vector.broadcast %154 : f32 to vector<16x16xf32>
    %157 = arith.mulf %156, %155 : vector<16x16xf32>
    %158 = arith.addf %153, %157 : vector<16x16xf32>
    %159 = vector.extract_strided_slice %9 {offsets = [4, 0], sizes = [16, 22], strides = [1, 1]} : vector<22x22xf32> to vector<16x22xf32>
    %c28 = arith.constant 28 : index
    %160 = memref.load %arg1[%c28] : memref<98xf32, #tpu.memory_space<smem>>
    %161 = vector.extract_strided_slice %159 {offsets = [0, 0], sizes = [16, 16], strides = [1, 1]} : vector<16x22xf32> to vector<16x16xf32>
    %162 = vector.broadcast %160 : f32 to vector<16x16xf32>
    %163 = arith.mulf %162, %161 : vector<16x16xf32>
    %164 = arith.addf %158, %163 : vector<16x16xf32>
    %c29 = arith.constant 29 : index
    %165 = memref.load %arg1[%c29] : memref<98xf32, #tpu.memory_space<smem>>
    %166 = vector.extract_strided_slice %159 {offsets = [0, 1], sizes = [16, 16], strides = [1, 1]} : vector<16x22xf32> to vector<16x16xf32>
    %167 = vector.broadcast %165 : f32 to vector<16x16xf32>
    %168 = arith.mulf %167, %166 : vector<16x16xf32>
    %169 = arith.addf %164, %168 : vector<16x16xf32>
    %c30 = arith.constant 30 : index
    %170 = memref.load %arg1[%c30] : memref<98xf32, #tpu.memory_space<smem>>
    %171 = vector.extract_strided_slice %159 {offsets = [0, 2], sizes = [16, 16], strides = [1, 1]} : vector<16x22xf32> to vector<16x16xf32>
    %172 = vector.broadcast %170 : f32 to vector<16x16xf32>
    %173 = arith.mulf %172, %171 : vector<16x16xf32>
    %174 = arith.addf %169, %173 : vector<16x16xf32>
    %c31 = arith.constant 31 : index
    %175 = memref.load %arg1[%c31] : memref<98xf32, #tpu.memory_space<smem>>
    %176 = vector.extract_strided_slice %159 {offsets = [0, 3], sizes = [16, 16], strides = [1, 1]} : vector<16x22xf32> to vector<16x16xf32>
    %177 = vector.broadcast %175 : f32 to vector<16x16xf32>
    %178 = arith.mulf %177, %176 : vector<16x16xf32>
    %179 = arith.addf %174, %178 : vector<16x16xf32>
    %c32 = arith.constant 32 : index
    %180 = memref.load %arg1[%c32] : memref<98xf32, #tpu.memory_space<smem>>
    %181 = vector.extract_strided_slice %159 {offsets = [0, 4], sizes = [16, 16], strides = [1, 1]} : vector<16x22xf32> to vector<16x16xf32>
    %182 = vector.broadcast %180 : f32 to vector<16x16xf32>
    %183 = arith.mulf %182, %181 : vector<16x16xf32>
    %184 = arith.addf %179, %183 : vector<16x16xf32>
    %c33 = arith.constant 33 : index
    %185 = memref.load %arg1[%c33] : memref<98xf32, #tpu.memory_space<smem>>
    %186 = vector.extract_strided_slice %159 {offsets = [0, 5], sizes = [16, 16], strides = [1, 1]} : vector<16x22xf32> to vector<16x16xf32>
    %187 = vector.broadcast %185 : f32 to vector<16x16xf32>
    %188 = arith.mulf %187, %186 : vector<16x16xf32>
    %189 = arith.addf %184, %188 : vector<16x16xf32>
    %c34 = arith.constant 34 : index
    %190 = memref.load %arg1[%c34] : memref<98xf32, #tpu.memory_space<smem>>
    %191 = vector.extract_strided_slice %159 {offsets = [0, 6], sizes = [16, 16], strides = [1, 1]} : vector<16x22xf32> to vector<16x16xf32>
    %192 = vector.broadcast %190 : f32 to vector<16x16xf32>
    %193 = arith.mulf %192, %191 : vector<16x16xf32>
    %194 = arith.addf %189, %193 : vector<16x16xf32>
    %195 = vector.extract_strided_slice %9 {offsets = [5, 0], sizes = [16, 22], strides = [1, 1]} : vector<22x22xf32> to vector<16x22xf32>
    %c35 = arith.constant 35 : index
    %196 = memref.load %arg1[%c35] : memref<98xf32, #tpu.memory_space<smem>>
    %197 = vector.extract_strided_slice %195 {offsets = [0, 0], sizes = [16, 16], strides = [1, 1]} : vector<16x22xf32> to vector<16x16xf32>
    %198 = vector.broadcast %196 : f32 to vector<16x16xf32>
    %199 = arith.mulf %198, %197 : vector<16x16xf32>
    %200 = arith.addf %194, %199 : vector<16x16xf32>
    %c36 = arith.constant 36 : index
    %201 = memref.load %arg1[%c36] : memref<98xf32, #tpu.memory_space<smem>>
    %202 = vector.extract_strided_slice %195 {offsets = [0, 1], sizes = [16, 16], strides = [1, 1]} : vector<16x22xf32> to vector<16x16xf32>
    %203 = vector.broadcast %201 : f32 to vector<16x16xf32>
    %204 = arith.mulf %203, %202 : vector<16x16xf32>
    %205 = arith.addf %200, %204 : vector<16x16xf32>
    %c37 = arith.constant 37 : index
    %206 = memref.load %arg1[%c37] : memref<98xf32, #tpu.memory_space<smem>>
    %207 = vector.extract_strided_slice %195 {offsets = [0, 2], sizes = [16, 16], strides = [1, 1]} : vector<16x22xf32> to vector<16x16xf32>
    %208 = vector.broadcast %206 : f32 to vector<16x16xf32>
    %209 = arith.mulf %208, %207 : vector<16x16xf32>
    %210 = arith.addf %205, %209 : vector<16x16xf32>
    %c38 = arith.constant 38 : index
    %211 = memref.load %arg1[%c38] : memref<98xf32, #tpu.memory_space<smem>>
    %212 = vector.extract_strided_slice %195 {offsets = [0, 3], sizes = [16, 16], strides = [1, 1]} : vector<16x22xf32> to vector<16x16xf32>
    %213 = vector.broadcast %211 : f32 to vector<16x16xf32>
    %214 = arith.mulf %213, %212 : vector<16x16xf32>
    %215 = arith.addf %210, %214 : vector<16x16xf32>
    %c39 = arith.constant 39 : index
    %216 = memref.load %arg1[%c39] : memref<98xf32, #tpu.memory_space<smem>>
    %217 = vector.extract_strided_slice %195 {offsets = [0, 4], sizes = [16, 16], strides = [1, 1]} : vector<16x22xf32> to vector<16x16xf32>
    %218 = vector.broadcast %216 : f32 to vector<16x16xf32>
    %219 = arith.mulf %218, %217 : vector<16x16xf32>
    %220 = arith.addf %215, %219 : vector<16x16xf32>
    %c40 = arith.constant 40 : index
    %221 = memref.load %arg1[%c40] : memref<98xf32, #tpu.memory_space<smem>>
    %222 = vector.extract_strided_slice %195 {offsets = [0, 5], sizes = [16, 16], strides = [1, 1]} : vector<16x22xf32> to vector<16x16xf32>
    %223 = vector.broadcast %221 : f32 to vector<16x16xf32>
    %224 = arith.mulf %223, %222 : vector<16x16xf32>
    %225 = arith.addf %220, %224 : vector<16x16xf32>
    %c41 = arith.constant 41 : index
    %226 = memref.load %arg1[%c41] : memref<98xf32, #tpu.memory_space<smem>>
    %227 = vector.extract_strided_slice %195 {offsets = [0, 6], sizes = [16, 16], strides = [1, 1]} : vector<16x22xf32> to vector<16x16xf32>
    %228 = vector.broadcast %226 : f32 to vector<16x16xf32>
    %229 = arith.mulf %228, %227 : vector<16x16xf32>
    %230 = arith.addf %225, %229 : vector<16x16xf32>
    %231 = vector.extract_strided_slice %9 {offsets = [6, 0], sizes = [16, 22], strides = [1, 1]} : vector<22x22xf32> to vector<16x22xf32>
    %c42 = arith.constant 42 : index
    %232 = memref.load %arg1[%c42] : memref<98xf32, #tpu.memory_space<smem>>
    %233 = vector.extract_strided_slice %231 {offsets = [0, 0], sizes = [16, 16], strides = [1, 1]} : vector<16x22xf32> to vector<16x16xf32>
    %234 = vector.broadcast %232 : f32 to vector<16x16xf32>
    %235 = arith.mulf %234, %233 : vector<16x16xf32>
    %236 = arith.addf %230, %235 : vector<16x16xf32>
    %c43 = arith.constant 43 : index
    %237 = memref.load %arg1[%c43] : memref<98xf32, #tpu.memory_space<smem>>
    %238 = vector.extract_strided_slice %231 {offsets = [0, 1], sizes = [16, 16], strides = [1, 1]} : vector<16x22xf32> to vector<16x16xf32>
    %239 = vector.broadcast %237 : f32 to vector<16x16xf32>
    %240 = arith.mulf %239, %238 : vector<16x16xf32>
    %241 = arith.addf %236, %240 : vector<16x16xf32>
    %c44 = arith.constant 44 : index
    %242 = memref.load %arg1[%c44] : memref<98xf32, #tpu.memory_space<smem>>
    %243 = vector.extract_strided_slice %231 {offsets = [0, 2], sizes = [16, 16], strides = [1, 1]} : vector<16x22xf32> to vector<16x16xf32>
    %244 = vector.broadcast %242 : f32 to vector<16x16xf32>
    %245 = arith.mulf %244, %243 : vector<16x16xf32>
    %246 = arith.addf %241, %245 : vector<16x16xf32>
    %c45 = arith.constant 45 : index
    %247 = memref.load %arg1[%c45] : memref<98xf32, #tpu.memory_space<smem>>
    %248 = vector.extract_strided_slice %231 {offsets = [0, 3], sizes = [16, 16], strides = [1, 1]} : vector<16x22xf32> to vector<16x16xf32>
    %249 = vector.broadcast %247 : f32 to vector<16x16xf32>
    %250 = arith.mulf %249, %248 : vector<16x16xf32>
    %251 = arith.addf %246, %250 : vector<16x16xf32>
    %c46 = arith.constant 46 : index
    %252 = memref.load %arg1[%c46] : memref<98xf32, #tpu.memory_space<smem>>
    %253 = vector.extract_strided_slice %231 {offsets = [0, 4], sizes = [16, 16], strides = [1, 1]} : vector<16x22xf32> to vector<16x16xf32>
    %254 = vector.broadcast %252 : f32 to vector<16x16xf32>
    %255 = arith.mulf %254, %253 : vector<16x16xf32>
    %256 = arith.addf %251, %255 : vector<16x16xf32>
    %c47 = arith.constant 47 : index
    %257 = memref.load %arg1[%c47] : memref<98xf32, #tpu.memory_space<smem>>
    %258 = vector.extract_strided_slice %231 {offsets = [0, 5], sizes = [16, 16], strides = [1, 1]} : vector<16x22xf32> to vector<16x16xf32>
    %259 = vector.broadcast %257 : f32 to vector<16x16xf32>
    %260 = arith.mulf %259, %258 : vector<16x16xf32>
    %261 = arith.addf %256, %260 : vector<16x16xf32>
    %c48 = arith.constant 48 : index
    %262 = memref.load %arg1[%c48] : memref<98xf32, #tpu.memory_space<smem>>
    %263 = vector.extract_strided_slice %231 {offsets = [0, 6], sizes = [16, 16], strides = [1, 1]} : vector<16x22xf32> to vector<16x16xf32>
    %264 = vector.broadcast %262 : f32 to vector<16x16xf32>
    %265 = arith.mulf %264, %263 : vector<16x16xf32>
    %266 = arith.addf %261, %265 : vector<16x16xf32>
    %267 = vector.extract_strided_slice %13 {offsets = [0, 0], sizes = [16, 22], strides = [1, 1]} : vector<22x22xf32> to vector<16x22xf32>
    %c49 = arith.constant 49 : index
    %268 = memref.load %arg1[%c49] : memref<98xf32, #tpu.memory_space<smem>>
    %269 = vector.extract_strided_slice %267 {offsets = [0, 0], sizes = [16, 16], strides = [1, 1]} : vector<16x22xf32> to vector<16x16xf32>
    %270 = vector.broadcast %268 : f32 to vector<16x16xf32>
    %271 = arith.mulf %270, %269 : vector<16x16xf32>
    %272 = arith.addf %266, %271 : vector<16x16xf32>
    %c50 = arith.constant 50 : index
    %273 = memref.load %arg1[%c50] : memref<98xf32, #tpu.memory_space<smem>>
    %274 = vector.extract_strided_slice %267 {offsets = [0, 1], sizes = [16, 16], strides = [1, 1]} : vector<16x22xf32> to vector<16x16xf32>
    %275 = vector.broadcast %273 : f32 to vector<16x16xf32>
    %276 = arith.mulf %275, %274 : vector<16x16xf32>
    %277 = arith.addf %272, %276 : vector<16x16xf32>
    %c51 = arith.constant 51 : index
    %278 = memref.load %arg1[%c51] : memref<98xf32, #tpu.memory_space<smem>>
    %279 = vector.extract_strided_slice %267 {offsets = [0, 2], sizes = [16, 16], strides = [1, 1]} : vector<16x22xf32> to vector<16x16xf32>
    %280 = vector.broadcast %278 : f32 to vector<16x16xf32>
    %281 = arith.mulf %280, %279 : vector<16x16xf32>
    %282 = arith.addf %277, %281 : vector<16x16xf32>
    %c52 = arith.constant 52 : index
    %283 = memref.load %arg1[%c52] : memref<98xf32, #tpu.memory_space<smem>>
    %284 = vector.extract_strided_slice %267 {offsets = [0, 3], sizes = [16, 16], strides = [1, 1]} : vector<16x22xf32> to vector<16x16xf32>
    %285 = vector.broadcast %283 : f32 to vector<16x16xf32>
    %286 = arith.mulf %285, %284 : vector<16x16xf32>
    %287 = arith.addf %282, %286 : vector<16x16xf32>
    %c53 = arith.constant 53 : index
    %288 = memref.load %arg1[%c53] : memref<98xf32, #tpu.memory_space<smem>>
    %289 = vector.extract_strided_slice %267 {offsets = [0, 4], sizes = [16, 16], strides = [1, 1]} : vector<16x22xf32> to vector<16x16xf32>
    %290 = vector.broadcast %288 : f32 to vector<16x16xf32>
    %291 = arith.mulf %290, %289 : vector<16x16xf32>
    %292 = arith.addf %287, %291 : vector<16x16xf32>
    %c54 = arith.constant 54 : index
    %293 = memref.load %arg1[%c54] : memref<98xf32, #tpu.memory_space<smem>>
    %294 = vector.extract_strided_slice %267 {offsets = [0, 5], sizes = [16, 16], strides = [1, 1]} : vector<16x22xf32> to vector<16x16xf32>
    %295 = vector.broadcast %293 : f32 to vector<16x16xf32>
    %296 = arith.mulf %295, %294 : vector<16x16xf32>
    %297 = arith.addf %292, %296 : vector<16x16xf32>
    %c55 = arith.constant 55 : index
    %298 = memref.load %arg1[%c55] : memref<98xf32, #tpu.memory_space<smem>>
    %299 = vector.extract_strided_slice %267 {offsets = [0, 6], sizes = [16, 16], strides = [1, 1]} : vector<16x22xf32> to vector<16x16xf32>
    %300 = vector.broadcast %298 : f32 to vector<16x16xf32>
    %301 = arith.mulf %300, %299 : vector<16x16xf32>
    %302 = arith.addf %297, %301 : vector<16x16xf32>
    %303 = vector.extract_strided_slice %13 {offsets = [1, 0], sizes = [16, 22], strides = [1, 1]} : vector<22x22xf32> to vector<16x22xf32>
    %c56 = arith.constant 56 : index
    %304 = memref.load %arg1[%c56] : memref<98xf32, #tpu.memory_space<smem>>
    %305 = vector.extract_strided_slice %303 {offsets = [0, 0], sizes = [16, 16], strides = [1, 1]} : vector<16x22xf32> to vector<16x16xf32>
    %306 = vector.broadcast %304 : f32 to vector<16x16xf32>
    %307 = arith.mulf %306, %305 : vector<16x16xf32>
    %308 = arith.addf %302, %307 : vector<16x16xf32>
    %c57 = arith.constant 57 : index
    %309 = memref.load %arg1[%c57] : memref<98xf32, #tpu.memory_space<smem>>
    %310 = vector.extract_strided_slice %303 {offsets = [0, 1], sizes = [16, 16], strides = [1, 1]} : vector<16x22xf32> to vector<16x16xf32>
    %311 = vector.broadcast %309 : f32 to vector<16x16xf32>
    %312 = arith.mulf %311, %310 : vector<16x16xf32>
    %313 = arith.addf %308, %312 : vector<16x16xf32>
    %c58 = arith.constant 58 : index
    %314 = memref.load %arg1[%c58] : memref<98xf32, #tpu.memory_space<smem>>
    %315 = vector.extract_strided_slice %303 {offsets = [0, 2], sizes = [16, 16], strides = [1, 1]} : vector<16x22xf32> to vector<16x16xf32>
    %316 = vector.broadcast %314 : f32 to vector<16x16xf32>
    %317 = arith.mulf %316, %315 : vector<16x16xf32>
    %318 = arith.addf %313, %317 : vector<16x16xf32>
    %c59 = arith.constant 59 : index
    %319 = memref.load %arg1[%c59] : memref<98xf32, #tpu.memory_space<smem>>
    %320 = vector.extract_strided_slice %303 {offsets = [0, 3], sizes = [16, 16], strides = [1, 1]} : vector<16x22xf32> to vector<16x16xf32>
    %321 = vector.broadcast %319 : f32 to vector<16x16xf32>
    %322 = arith.mulf %321, %320 : vector<16x16xf32>
    %323 = arith.addf %318, %322 : vector<16x16xf32>
    %c60 = arith.constant 60 : index
    %324 = memref.load %arg1[%c60] : memref<98xf32, #tpu.memory_space<smem>>
    %325 = vector.extract_strided_slice %303 {offsets = [0, 4], sizes = [16, 16], strides = [1, 1]} : vector<16x22xf32> to vector<16x16xf32>
    %326 = vector.broadcast %324 : f32 to vector<16x16xf32>
    %327 = arith.mulf %326, %325 : vector<16x16xf32>
    %328 = arith.addf %323, %327 : vector<16x16xf32>
    %c61 = arith.constant 61 : index
    %329 = memref.load %arg1[%c61] : memref<98xf32, #tpu.memory_space<smem>>
    %330 = vector.extract_strided_slice %303 {offsets = [0, 5], sizes = [16, 16], strides = [1, 1]} : vector<16x22xf32> to vector<16x16xf32>
    %331 = vector.broadcast %329 : f32 to vector<16x16xf32>
    %332 = arith.mulf %331, %330 : vector<16x16xf32>
    %333 = arith.addf %328, %332 : vector<16x16xf32>
    %c62 = arith.constant 62 : index
    %334 = memref.load %arg1[%c62] : memref<98xf32, #tpu.memory_space<smem>>
    %335 = vector.extract_strided_slice %303 {offsets = [0, 6], sizes = [16, 16], strides = [1, 1]} : vector<16x22xf32> to vector<16x16xf32>
    %336 = vector.broadcast %334 : f32 to vector<16x16xf32>
    %337 = arith.mulf %336, %335 : vector<16x16xf32>
    %338 = arith.addf %333, %337 : vector<16x16xf32>
    %339 = vector.extract_strided_slice %13 {offsets = [2, 0], sizes = [16, 22], strides = [1, 1]} : vector<22x22xf32> to vector<16x22xf32>
    %c63 = arith.constant 63 : index
    %340 = memref.load %arg1[%c63] : memref<98xf32, #tpu.memory_space<smem>>
    %341 = vector.extract_strided_slice %339 {offsets = [0, 0], sizes = [16, 16], strides = [1, 1]} : vector<16x22xf32> to vector<16x16xf32>
    %342 = vector.broadcast %340 : f32 to vector<16x16xf32>
    %343 = arith.mulf %342, %341 : vector<16x16xf32>
    %344 = arith.addf %338, %343 : vector<16x16xf32>
    %c64 = arith.constant 64 : index
    %345 = memref.load %arg1[%c64] : memref<98xf32, #tpu.memory_space<smem>>
    %346 = vector.extract_strided_slice %339 {offsets = [0, 1], sizes = [16, 16], strides = [1, 1]} : vector<16x22xf32> to vector<16x16xf32>
    %347 = vector.broadcast %345 : f32 to vector<16x16xf32>
    %348 = arith.mulf %347, %346 : vector<16x16xf32>
    %349 = arith.addf %344, %348 : vector<16x16xf32>
    %c65 = arith.constant 65 : index
    %350 = memref.load %arg1[%c65] : memref<98xf32, #tpu.memory_space<smem>>
    %351 = vector.extract_strided_slice %339 {offsets = [0, 2], sizes = [16, 16], strides = [1, 1]} : vector<16x22xf32> to vector<16x16xf32>
    %352 = vector.broadcast %350 : f32 to vector<16x16xf32>
    %353 = arith.mulf %352, %351 : vector<16x16xf32>
    %354 = arith.addf %349, %353 : vector<16x16xf32>
    %c66 = arith.constant 66 : index
    %355 = memref.load %arg1[%c66] : memref<98xf32, #tpu.memory_space<smem>>
    %356 = vector.extract_strided_slice %339 {offsets = [0, 3], sizes = [16, 16], strides = [1, 1]} : vector<16x22xf32> to vector<16x16xf32>
    %357 = vector.broadcast %355 : f32 to vector<16x16xf32>
    %358 = arith.mulf %357, %356 : vector<16x16xf32>
    %359 = arith.addf %354, %358 : vector<16x16xf32>
    %c67 = arith.constant 67 : index
    %360 = memref.load %arg1[%c67] : memref<98xf32, #tpu.memory_space<smem>>
    %361 = vector.extract_strided_slice %339 {offsets = [0, 4], sizes = [16, 16], strides = [1, 1]} : vector<16x22xf32> to vector<16x16xf32>
    %362 = vector.broadcast %360 : f32 to vector<16x16xf32>
    %363 = arith.mulf %362, %361 : vector<16x16xf32>
    %364 = arith.addf %359, %363 : vector<16x16xf32>
    %c68 = arith.constant 68 : index
    %365 = memref.load %arg1[%c68] : memref<98xf32, #tpu.memory_space<smem>>
    %366 = vector.extract_strided_slice %339 {offsets = [0, 5], sizes = [16, 16], strides = [1, 1]} : vector<16x22xf32> to vector<16x16xf32>
    %367 = vector.broadcast %365 : f32 to vector<16x16xf32>
    %368 = arith.mulf %367, %366 : vector<16x16xf32>
    %369 = arith.addf %364, %368 : vector<16x16xf32>
    %c69 = arith.constant 69 : index
    %370 = memref.load %arg1[%c69] : memref<98xf32, #tpu.memory_space<smem>>
    %371 = vector.extract_strided_slice %339 {offsets = [0, 6], sizes = [16, 16], strides = [1, 1]} : vector<16x22xf32> to vector<16x16xf32>
    %372 = vector.broadcast %370 : f32 to vector<16x16xf32>
    %373 = arith.mulf %372, %371 : vector<16x16xf32>
    %374 = arith.addf %369, %373 : vector<16x16xf32>
    %375 = vector.extract_strided_slice %13 {offsets = [3, 0], sizes = [16, 22], strides = [1, 1]} : vector<22x22xf32> to vector<16x22xf32>
    %c70 = arith.constant 70 : index
    %376 = memref.load %arg1[%c70] : memref<98xf32, #tpu.memory_space<smem>>
    %377 = vector.extract_strided_slice %375 {offsets = [0, 0], sizes = [16, 16], strides = [1, 1]} : vector<16x22xf32> to vector<16x16xf32>
    %378 = vector.broadcast %376 : f32 to vector<16x16xf32>
    %379 = arith.mulf %378, %377 : vector<16x16xf32>
    %380 = arith.addf %374, %379 : vector<16x16xf32>
    %c71 = arith.constant 71 : index
    %381 = memref.load %arg1[%c71] : memref<98xf32, #tpu.memory_space<smem>>
    %382 = vector.extract_strided_slice %375 {offsets = [0, 1], sizes = [16, 16], strides = [1, 1]} : vector<16x22xf32> to vector<16x16xf32>
    %383 = vector.broadcast %381 : f32 to vector<16x16xf32>
    %384 = arith.mulf %383, %382 : vector<16x16xf32>
    %385 = arith.addf %380, %384 : vector<16x16xf32>
    %c72 = arith.constant 72 : index
    %386 = memref.load %arg1[%c72] : memref<98xf32, #tpu.memory_space<smem>>
    %387 = vector.extract_strided_slice %375 {offsets = [0, 2], sizes = [16, 16], strides = [1, 1]} : vector<16x22xf32> to vector<16x16xf32>
    %388 = vector.broadcast %386 : f32 to vector<16x16xf32>
    %389 = arith.mulf %388, %387 : vector<16x16xf32>
    %390 = arith.addf %385, %389 : vector<16x16xf32>
    %c73 = arith.constant 73 : index
    %391 = memref.load %arg1[%c73] : memref<98xf32, #tpu.memory_space<smem>>
    %392 = vector.extract_strided_slice %375 {offsets = [0, 3], sizes = [16, 16], strides = [1, 1]} : vector<16x22xf32> to vector<16x16xf32>
    %393 = vector.broadcast %391 : f32 to vector<16x16xf32>
    %394 = arith.mulf %393, %392 : vector<16x16xf32>
    %395 = arith.addf %390, %394 : vector<16x16xf32>
    %c74 = arith.constant 74 : index
    %396 = memref.load %arg1[%c74] : memref<98xf32, #tpu.memory_space<smem>>
    %397 = vector.extract_strided_slice %375 {offsets = [0, 4], sizes = [16, 16], strides = [1, 1]} : vector<16x22xf32> to vector<16x16xf32>
    %398 = vector.broadcast %396 : f32 to vector<16x16xf32>
    %399 = arith.mulf %398, %397 : vector<16x16xf32>
    %400 = arith.addf %395, %399 : vector<16x16xf32>
    %c75 = arith.constant 75 : index
    %401 = memref.load %arg1[%c75] : memref<98xf32, #tpu.memory_space<smem>>
    %402 = vector.extract_strided_slice %375 {offsets = [0, 5], sizes = [16, 16], strides = [1, 1]} : vector<16x22xf32> to vector<16x16xf32>
    %403 = vector.broadcast %401 : f32 to vector<16x16xf32>
    %404 = arith.mulf %403, %402 : vector<16x16xf32>
    %405 = arith.addf %400, %404 : vector<16x16xf32>
    %c76 = arith.constant 76 : index
    %406 = memref.load %arg1[%c76] : memref<98xf32, #tpu.memory_space<smem>>
    %407 = vector.extract_strided_slice %375 {offsets = [0, 6], sizes = [16, 16], strides = [1, 1]} : vector<16x22xf32> to vector<16x16xf32>
    %408 = vector.broadcast %406 : f32 to vector<16x16xf32>
    %409 = arith.mulf %408, %407 : vector<16x16xf32>
    %410 = arith.addf %405, %409 : vector<16x16xf32>
    %411 = vector.extract_strided_slice %13 {offsets = [4, 0], sizes = [16, 22], strides = [1, 1]} : vector<22x22xf32> to vector<16x22xf32>
    %c77 = arith.constant 77 : index
    %412 = memref.load %arg1[%c77] : memref<98xf32, #tpu.memory_space<smem>>
    %413 = vector.extract_strided_slice %411 {offsets = [0, 0], sizes = [16, 16], strides = [1, 1]} : vector<16x22xf32> to vector<16x16xf32>
    %414 = vector.broadcast %412 : f32 to vector<16x16xf32>
    %415 = arith.mulf %414, %413 : vector<16x16xf32>
    %416 = arith.addf %410, %415 : vector<16x16xf32>
    %c78 = arith.constant 78 : index
    %417 = memref.load %arg1[%c78] : memref<98xf32, #tpu.memory_space<smem>>
    %418 = vector.extract_strided_slice %411 {offsets = [0, 1], sizes = [16, 16], strides = [1, 1]} : vector<16x22xf32> to vector<16x16xf32>
    %419 = vector.broadcast %417 : f32 to vector<16x16xf32>
    %420 = arith.mulf %419, %418 : vector<16x16xf32>
    %421 = arith.addf %416, %420 : vector<16x16xf32>
    %c79 = arith.constant 79 : index
    %422 = memref.load %arg1[%c79] : memref<98xf32, #tpu.memory_space<smem>>
    %423 = vector.extract_strided_slice %411 {offsets = [0, 2], sizes = [16, 16], strides = [1, 1]} : vector<16x22xf32> to vector<16x16xf32>
    %424 = vector.broadcast %422 : f32 to vector<16x16xf32>
    %425 = arith.mulf %424, %423 : vector<16x16xf32>
    %426 = arith.addf %421, %425 : vector<16x16xf32>
    %c80 = arith.constant 80 : index
    %427 = memref.load %arg1[%c80] : memref<98xf32, #tpu.memory_space<smem>>
    %428 = vector.extract_strided_slice %411 {offsets = [0, 3], sizes = [16, 16], strides = [1, 1]} : vector<16x22xf32> to vector<16x16xf32>
    %429 = vector.broadcast %427 : f32 to vector<16x16xf32>
    %430 = arith.mulf %429, %428 : vector<16x16xf32>
    %431 = arith.addf %426, %430 : vector<16x16xf32>
    %c81 = arith.constant 81 : index
    %432 = memref.load %arg1[%c81] : memref<98xf32, #tpu.memory_space<smem>>
    %433 = vector.extract_strided_slice %411 {offsets = [0, 4], sizes = [16, 16], strides = [1, 1]} : vector<16x22xf32> to vector<16x16xf32>
    %434 = vector.broadcast %432 : f32 to vector<16x16xf32>
    %435 = arith.mulf %434, %433 : vector<16x16xf32>
    %436 = arith.addf %431, %435 : vector<16x16xf32>
    %c82 = arith.constant 82 : index
    %437 = memref.load %arg1[%c82] : memref<98xf32, #tpu.memory_space<smem>>
    %438 = vector.extract_strided_slice %411 {offsets = [0, 5], sizes = [16, 16], strides = [1, 1]} : vector<16x22xf32> to vector<16x16xf32>
    %439 = vector.broadcast %437 : f32 to vector<16x16xf32>
    %440 = arith.mulf %439, %438 : vector<16x16xf32>
    %441 = arith.addf %436, %440 : vector<16x16xf32>
    %c83 = arith.constant 83 : index
    %442 = memref.load %arg1[%c83] : memref<98xf32, #tpu.memory_space<smem>>
    %443 = vector.extract_strided_slice %411 {offsets = [0, 6], sizes = [16, 16], strides = [1, 1]} : vector<16x22xf32> to vector<16x16xf32>
    %444 = vector.broadcast %442 : f32 to vector<16x16xf32>
    %445 = arith.mulf %444, %443 : vector<16x16xf32>
    %446 = arith.addf %441, %445 : vector<16x16xf32>
    %447 = vector.extract_strided_slice %13 {offsets = [5, 0], sizes = [16, 22], strides = [1, 1]} : vector<22x22xf32> to vector<16x22xf32>
    %c84 = arith.constant 84 : index
    %448 = memref.load %arg1[%c84] : memref<98xf32, #tpu.memory_space<smem>>
    %449 = vector.extract_strided_slice %447 {offsets = [0, 0], sizes = [16, 16], strides = [1, 1]} : vector<16x22xf32> to vector<16x16xf32>
    %450 = vector.broadcast %448 : f32 to vector<16x16xf32>
    %451 = arith.mulf %450, %449 : vector<16x16xf32>
    %452 = arith.addf %446, %451 : vector<16x16xf32>
    %c85 = arith.constant 85 : index
    %453 = memref.load %arg1[%c85] : memref<98xf32, #tpu.memory_space<smem>>
    %454 = vector.extract_strided_slice %447 {offsets = [0, 1], sizes = [16, 16], strides = [1, 1]} : vector<16x22xf32> to vector<16x16xf32>
    %455 = vector.broadcast %453 : f32 to vector<16x16xf32>
    %456 = arith.mulf %455, %454 : vector<16x16xf32>
    %457 = arith.addf %452, %456 : vector<16x16xf32>
    %c86 = arith.constant 86 : index
    %458 = memref.load %arg1[%c86] : memref<98xf32, #tpu.memory_space<smem>>
    %459 = vector.extract_strided_slice %447 {offsets = [0, 2], sizes = [16, 16], strides = [1, 1]} : vector<16x22xf32> to vector<16x16xf32>
    %460 = vector.broadcast %458 : f32 to vector<16x16xf32>
    %461 = arith.mulf %460, %459 : vector<16x16xf32>
    %462 = arith.addf %457, %461 : vector<16x16xf32>
    %c87 = arith.constant 87 : index
    %463 = memref.load %arg1[%c87] : memref<98xf32, #tpu.memory_space<smem>>
    %464 = vector.extract_strided_slice %447 {offsets = [0, 3], sizes = [16, 16], strides = [1, 1]} : vector<16x22xf32> to vector<16x16xf32>
    %465 = vector.broadcast %463 : f32 to vector<16x16xf32>
    %466 = arith.mulf %465, %464 : vector<16x16xf32>
    %467 = arith.addf %462, %466 : vector<16x16xf32>
    %c88 = arith.constant 88 : index
    %468 = memref.load %arg1[%c88] : memref<98xf32, #tpu.memory_space<smem>>
    %469 = vector.extract_strided_slice %447 {offsets = [0, 4], sizes = [16, 16], strides = [1, 1]} : vector<16x22xf32> to vector<16x16xf32>
    %470 = vector.broadcast %468 : f32 to vector<16x16xf32>
    %471 = arith.mulf %470, %469 : vector<16x16xf32>
    %472 = arith.addf %467, %471 : vector<16x16xf32>
    %c89 = arith.constant 89 : index
    %473 = memref.load %arg1[%c89] : memref<98xf32, #tpu.memory_space<smem>>
    %474 = vector.extract_strided_slice %447 {offsets = [0, 5], sizes = [16, 16], strides = [1, 1]} : vector<16x22xf32> to vector<16x16xf32>
    %475 = vector.broadcast %473 : f32 to vector<16x16xf32>
    %476 = arith.mulf %475, %474 : vector<16x16xf32>
    %477 = arith.addf %472, %476 : vector<16x16xf32>
    %c90 = arith.constant 90 : index
    %478 = memref.load %arg1[%c90] : memref<98xf32, #tpu.memory_space<smem>>
    %479 = vector.extract_strided_slice %447 {offsets = [0, 6], sizes = [16, 16], strides = [1, 1]} : vector<16x22xf32> to vector<16x16xf32>
    %480 = vector.broadcast %478 : f32 to vector<16x16xf32>
    %481 = arith.mulf %480, %479 : vector<16x16xf32>
    %482 = arith.addf %477, %481 : vector<16x16xf32>
    %483 = vector.extract_strided_slice %13 {offsets = [6, 0], sizes = [16, 22], strides = [1, 1]} : vector<22x22xf32> to vector<16x22xf32>
    %c91 = arith.constant 91 : index
    %484 = memref.load %arg1[%c91] : memref<98xf32, #tpu.memory_space<smem>>
    %485 = vector.extract_strided_slice %483 {offsets = [0, 0], sizes = [16, 16], strides = [1, 1]} : vector<16x22xf32> to vector<16x16xf32>
    %486 = vector.broadcast %484 : f32 to vector<16x16xf32>
    %487 = arith.mulf %486, %485 : vector<16x16xf32>
    %488 = arith.addf %482, %487 : vector<16x16xf32>
    %c92 = arith.constant 92 : index
    %489 = memref.load %arg1[%c92] : memref<98xf32, #tpu.memory_space<smem>>
    %490 = vector.extract_strided_slice %483 {offsets = [0, 1], sizes = [16, 16], strides = [1, 1]} : vector<16x22xf32> to vector<16x16xf32>
    %491 = vector.broadcast %489 : f32 to vector<16x16xf32>
    %492 = arith.mulf %491, %490 : vector<16x16xf32>
    %493 = arith.addf %488, %492 : vector<16x16xf32>
    %c93 = arith.constant 93 : index
    %494 = memref.load %arg1[%c93] : memref<98xf32, #tpu.memory_space<smem>>
    %495 = vector.extract_strided_slice %483 {offsets = [0, 2], sizes = [16, 16], strides = [1, 1]} : vector<16x22xf32> to vector<16x16xf32>
    %496 = vector.broadcast %494 : f32 to vector<16x16xf32>
    %497 = arith.mulf %496, %495 : vector<16x16xf32>
    %498 = arith.addf %493, %497 : vector<16x16xf32>
    %c94 = arith.constant 94 : index
    %499 = memref.load %arg1[%c94] : memref<98xf32, #tpu.memory_space<smem>>
    %500 = vector.extract_strided_slice %483 {offsets = [0, 3], sizes = [16, 16], strides = [1, 1]} : vector<16x22xf32> to vector<16x16xf32>
    %501 = vector.broadcast %499 : f32 to vector<16x16xf32>
    %502 = arith.mulf %501, %500 : vector<16x16xf32>
    %503 = arith.addf %498, %502 : vector<16x16xf32>
    %c95 = arith.constant 95 : index
    %504 = memref.load %arg1[%c95] : memref<98xf32, #tpu.memory_space<smem>>
    %505 = vector.extract_strided_slice %483 {offsets = [0, 4], sizes = [16, 16], strides = [1, 1]} : vector<16x22xf32> to vector<16x16xf32>
    %506 = vector.broadcast %504 : f32 to vector<16x16xf32>
    %507 = arith.mulf %506, %505 : vector<16x16xf32>
    %508 = arith.addf %503, %507 : vector<16x16xf32>
    %c96 = arith.constant 96 : index
    %509 = memref.load %arg1[%c96] : memref<98xf32, #tpu.memory_space<smem>>
    %510 = vector.extract_strided_slice %483 {offsets = [0, 5], sizes = [16, 16], strides = [1, 1]} : vector<16x22xf32> to vector<16x16xf32>
    %511 = vector.broadcast %509 : f32 to vector<16x16xf32>
    %512 = arith.mulf %511, %510 : vector<16x16xf32>
    %513 = arith.addf %508, %512 : vector<16x16xf32>
    %c97 = arith.constant 97 : index
    %514 = memref.load %arg1[%c97] : memref<98xf32, #tpu.memory_space<smem>>
    %515 = vector.extract_strided_slice %483 {offsets = [0, 6], sizes = [16, 16], strides = [1, 1]} : vector<16x22xf32> to vector<16x16xf32>
    %516 = vector.broadcast %514 : f32 to vector<16x16xf32>
    %517 = arith.mulf %516, %515 : vector<16x16xf32>
    %518 = arith.addf %513, %517 : vector<16x16xf32>
    %519 = vector.shape_cast %518 : vector<16x16xf32> to vector<1x16x16xf32>
    %cst_11 = arith.constant dense<0.000000e+00> : vector<1xf32>
    %520 = vector.multi_reduction <add>, %519, %cst_11 [1, 2] : vector<1x16x16xf32> to vector<1xf32>
    %521 = vector.shape_cast %520 : vector<1xf32> to vector<1x1x1xf32>
    %522 = vector.extract %521[0, 0, 0] : f32 from vector<1x1x1xf32>
    %cst_12 = arith.constant 2.560000e+02 : f32
    %523 = arith.divf %522, %cst_12 : f32
    %524 = vector.broadcast %523 : f32 to vector<16x16xf32>
    %525 = arith.subf %518, %524 : vector<16x16xf32>
    %526 = arith.mulf %525, %525 : vector<16x16xf32>
    %527 = vector.shape_cast %526 : vector<16x16xf32> to vector<1x16x16xf32>
    %cst_13 = arith.constant dense<0.000000e+00> : vector<1xf32>
    %528 = vector.multi_reduction <add>, %527, %cst_13 [1, 2] : vector<1x16x16xf32> to vector<1xf32>
    %529 = vector.shape_cast %528 : vector<1xf32> to vector<1x1x1xf32>
    %530 = vector.extract %529[0, 0, 0] : f32 from vector<1x1x1xf32>
    %cst_14 = arith.constant 2.560000e+02 : f32
    %531 = arith.divf %530, %cst_14 : f32
    %532 = vector.broadcast %523 : f32 to vector<16x16xf32>
    %533 = arith.subf %518, %532 : vector<16x16xf32>
    %cst_15 = arith.constant 9.99999974E-6 : f32
    %534 = arith.addf %531, %cst_15 : f32
    %535 = math.rsqrt %534 : f32
    %536 = vector.broadcast %535 : f32 to vector<16x16xf32>
    %537 = arith.mulf %533, %536 : vector<16x16xf32>
    %c0_16 = arith.constant 0 : index
    %c0_17 = arith.constant 0 : index
    %c0_18 = arith.constant 0 : index
    %538 = vector.load %arg2[%c0_16, %c0_17, %c0_18] : memref<2x16x16xf32, #tpu.memory_space<vmem>>, vector<1x16x16xf32>
    %539 = vector.shape_cast %538 : vector<1x16x16xf32> to vector<16x16xf32>
    %540 = arith.mulf %537, %539 : vector<16x16xf32>
    %c1_19 = arith.constant 1 : index
    %c0_20 = arith.constant 0 : index
    %c0_21 = arith.constant 0 : index
    %541 = vector.load %arg2[%c1_19, %c0_20, %c0_21] : memref<2x16x16xf32, #tpu.memory_space<vmem>>, vector<1x16x16xf32>
    %542 = vector.shape_cast %541 : vector<1x16x16xf32> to vector<16x16xf32>
    %543 = arith.addf %540, %542 : vector<16x16xf32>
    %cst_22 = arith.constant 0.000000e+00 : f32
    %544 = vector.broadcast %cst_22 : f32 to vector<16x16xf32>
    %545 = arith.maximumf %543, %544 : vector<16x16xf32>
    %546 = arith.negf %545 : vector<16x16xf32>
    %547 = math.exp %546 : vector<16x16xf32>
    %cst_23 = arith.constant 1.000000e+00 : f32
    %548 = vector.broadcast %cst_23 : f32 to vector<16x16xf32>
    %549 = arith.addf %548, %547 : vector<16x16xf32>
    %550 = arith.divf %548, %549 : vector<16x16xf32>
    %551 = vector.shape_cast %550 : vector<16x16xf32> to vector<1x16x16xf32>
    %552 = vector.broadcast %551 : vector<1x16x16xf32> to vector<4x16x16xf32>
    %553 = arith.mulf %1, %552 : vector<4x16x16xf32>
    %c0_24 = arith.constant 0 : index
    %c0_25 = arith.constant 0 : index
    %c0_26 = arith.constant 0 : index
    %c0_27 = arith.constant 0 : index
    %554 = vector.load %arg4[%c0_24, %c0_25, %c0_26, %c0_27] : memref<1x4x16x16xf32, #tpu.memory_space<vmem>>, vector<1x4x16x16xf32>
    %555 = vector.shape_cast %554 : vector<1x4x16x16xf32> to vector<4x16x16xf32>
    %556 = vector.shape_cast %553 : vector<4x16x16xf32> to vector<1x4x16x16xf32>
    tpu.vector_store %arg4[%c0_24, %c0_25, %c0_26, %c0_27], %556 {strides = array<i32>} : memref<1x4x16x16xf32, #tpu.memory_space<vmem>>, vector<1x4x16x16xf32>,
    return
  }
  func.func @transform_0(%arg0: i32) -> i32 {
    %c0_i32 = arith.constant 0 : i32
    %c0_i32_0 = arith.constant 0 : i32
    return %c0_i32 : i32
  }
  func.func @transform_1(%arg0: i32) -> (i32, i32, i32) {
    %c0_i32 = arith.constant 0 : i32
    %c0_i32_0 = arith.constant 0 : i32
    %c0_i32_1 = arith.constant 0 : i32
    %c0_i32_2 = arith.constant 0 : i32
    return %c0_i32, %c0_i32_0, %c0_i32_1 : i32, i32, i32
  }
  func.func @transform_2(%arg0: i32) -> (i32, i32, i32, i32) {
    %c0_i32 = arith.constant 0 : i32
    %c0_i32_0 = arith.constant 0 : i32
    %c0_i32_1 = arith.constant 0 : i32
    %c0_i32_2 = arith.constant 0 : i32
    return %arg0, %c0_i32, %c0_i32_0, %c0_i32_1 : i32, i32, i32, i32
  }
  func.func @transform_3(%arg0: i32) -> (i32, i32, i32, i32) {
    %c0_i32 = arith.constant 0 : i32
    %c0_i32_0 = arith.constant 0 : i32
    %c0_i32_1 = arith.constant 0 : i32
    %c0_i32_2 = arith.constant 0 : i32
    return %arg0, %c0_i32, %c0_i32_0, %c0_i32_1 : i32, i32, i32, i32
  }
}

</mosaic_0001>

<bundles_post_ra>
// kernel: tpu_custom_call.1
= control target key start
LH: loop header
LB: loop body
LE: loop exit
PB: predicated region body
PF: predicated region fallthrough
CT: control target
= control target key end

     0   :  { %8 = vsyncpa [#allocation5], 0  ;;  %s4075_s0 = inlined_call_operand.hbm [shape: f32[98], index: 0, kind: input, shape index: {}]   ;;  %s4076_s1 = inlined_call_operand.hbm [shape: f32[2,16,16], index: 1, kind: input, shape index: {}]   ;;  %s4077_s2 = inlined_call_operand.hbm [shape: f32[2,4,16,16], index: 2, kind: input, shape index: {}]   ;;  %s4078_s3 = inlined_call_operand.hbm [shape: f32[2,4,16,16], index: 3, kind: output, shape index: {}]  }
   0x1   :  { %9 = vsyncpa [#allocation3], 0 }
   0x2   :  { %10 = vsyncpa [#allocation8], 0 }
   0x3   :  { %12 = vsyncpa [#allocation8 + $0x1], 0 }
   0x4   :  { %13 = vsyncpa [#allocation4], 0 }
   0x5   :  { %15 = vsyncpa [#allocation4 + $0x1], 0  ;;  %s2807_s12 = smov 0   ;;  %s2809_s13 = smov 0  }
   0x6   :  { %s2811_s14 = smov 0   ;;  %s2813_s15 = smov 0  }
   0x7 LB: > { %s2828_s16 = sadd.s32 4294967295, %s2770_s15   ;;  %s2404_s17 = sadd.s32 4294967294, %s2770_s15   ;;  %s2770_s15 = sphi %s2813_s15, %s4106_s15   ;;  %s2766_s14 = sphi %s2811_s14, %s4105_s14   ;;  %s2762_s13 = sphi %s2809_s13, %s4104_s13   ;;  %s2758_s12 = sphi %s2807_s12, %s4103_s12  }
   0x8   : > { %s2832_s18 = sadd.s32 1, %s2770_s15   ;;  %s70_s19 = sadd.s32 1, %s2766_s14 }
   0x9   : > { %s67_s20 = ssub.s32 %s2770_s15, %s2832_s18  ;;  %p77_p0 = scmp.ne.s32.totalorder %s2766_s14, %s2762_s13 }
   0xa   : > { %p68_p1 = scmp.eq.s32.totalorder %s67_s20, 0  ;;  %p78_p2 = scmp.eq.s32.totalorder %s2770_s15, 0 }
   0xb   : > { %p83_p3 = scmp.ne.s32.totalorder %s2762_s13, %s2758_s12  ;;  %p4079_p4 = scmp.eq.s32.totalorder %s2828_s16, 0 }
   0xc   : > { %s2844_s21 = scalar_select %p68_p1, %s2766_s14, %s70_s19  }
   0xd   : > { %p2846_p5 = por %p78_p2, %p77_p0  ;;  %p2852_p6 = por %p4079_p4, %p83_p3 }
   0xe   : > { %p107_p7 = scmp.eq.s32.totalorder %s2828_s16, 1  ;;  %p113_p8 = scmp.eq.s32.totalorder %s2404_s17, 1 }
   0xf   : > { %s4084_s22 = scalar_select %p2846_p5, 1, 0 }
  0x10   : > { %s4085_s23 = scalar_select %p2852_p6, 1, 0 }
  0x11   : > { %p2405_p9 = scmp.ge.s32.totalorder %s2770_s15, 1  ;;  %p120_p10 = scmp.lt.s32.totalorder %s2770_s15, 3 }
  0x12   : > { %p2859_p11 = por %p107_p7, %p77_p0  ;;  %p2863_p12 = por %p113_p8, %p83_p3 }
  0x13   : > { %p2867_p13 = pnand %p2405_p9, %p120_p10  ;;  %p2558_p4 = scmp.lt.s32.totalorder %s2770_s15, 2 }
  0x14   : > { %s4086_s24 = scalar_select %p2859_p11, 1, 0 }
  0x15   : > { %s4087_s25 = scalar_select %p2863_p12, 1, 0 }
  0x16   : > { %s4088_s26 = scalar_select %p2867_p13, 1, 0 }
  0x17   : > { %p2541_p2 = pneg %p2867_p13  ;;  %p4089_p6 = scmp.eq.s32.totalorder %s2828_s16, 0 }
  0x18   : > { %p4091_p0 = scmp.ne.s32.totalorder %s4084_s22, 0  ;;  %s2772_s29 = smov [#allocation6]  }
  0x19   : > { %p2877_p5 = pnand %p2541_p2, %p4089_p6  ;;  %s141_s30 = sshll.u32 %s2772_s29, 4  ;;  %s142_s30 = int_to_ptr.vmem [resolvable:$true] %s141_s30 }
  0x1a   : > { %p2883_p3 = pnand %p2558_p4, %p4091_p0  ;;  %s2625_s6 = scalar_lea.hbm %s4075_s0, 16 }
  0x1b   : > { %p2626_p6 = scmp.ne.s32.totalorder %s4075_s0, %s2625_s6  ;;  %p2627_p7 = pneg %p2877_p5 }
  0x1c   : > { %s4092_s28 = scalar_select %p2883_p3, 1, 0 }
  0x1d   : > { %p2628_p8 = pnand %p2627_p7, %p2626_p6  ;;  %p2632_p4 = scmp.lt.u32.totalorder %s2625_s6, %s4075_s0 }
  0x1f   : > { %p2629_p9 = pneg %p2628_p8 }
  0x21   : > { %p2634_p10 = pnand %p2632_p4, %p2629_p9 }
  0x23   : > { %2637 = shalt.err (!%p2634_p10)
}
  0x24   : > { %s2773_s11 = smov [#allocation2]   ;;  %s155_s20 = sand.u32 1, %s2766_s14  }
  0x25   : > { %2544 = dma.hbm_to_smem (!%p2877_p5), %s4075_s0, 16, %s2773_s11, [#allocation5]  }
  0x26   : > { %s2638_s4 = scalar_lea.hbm %s4076_s1, 512 }
  0x27   : > { %p2639_p2 = scmp.ne.s32.totalorder %s4076_s1, %s2638_s4  ;;  %p2645_p8 = scmp.lt.u32.totalorder %s2638_s4, %s4076_s1 }
  0x29   : > { %p2641_p0 = pnand %p2639_p2, %p2627_p7 }
  0x2b   : > { %p2642_p6 = pneg %p2641_p0 }
  0x2d   : > { %p2647_p9 = pnand %p2645_p8, %p2642_p6 }
  0x2f   : > { %2650 = shalt.err (!%p2647_p9)
}
  0x30   : > { %s2651_s9 = scalar_lea.vmem %s142_s30, 512  ;;  %p2659_p12 = scmp.lt.s32.totalorder %s142_s30, %s142_s30 }
  0x31   : > { %p2652_p4 = scmp.ne.s32.totalorder %s142_s30, %s2651_s9  ;;  %p2660_p11 = scmp.lt.s32.totalorder %s2651_s9, %s2651_s9 }
  0x33   : > { %p2654_p10 = pnand %p2652_p4, %p2627_p7  ;;  %p2661_p13 = por %p2660_p11, %p2659_p12 }
  0x35   : > { %p2655_p1 = pneg %p2654_p10 }
  0x37   : > { %p2662_p3 = pnand %p2661_p13, %p2655_p1 }
  0x39   : > { %2665 = shalt.err (!%p2662_p3)
}
  0x3a   : > { %s2774_s10 = smov 128   ;;  %s2775_s11 = smov 8  }
  0x3b   : > { %2547 = dma.hbm_to_vmem [thread:$0]  (!%p2877_p5), %s4076_s1, 512, %s142_s30, [#allocation3], %s2774_s10, %s2774_s10, %s2775_s11  }
  0x3c   : > { %s2409_s22 = sshll.u32 %s155_s20, 6  ;;  %s2521_s29 = sshll.u32 %s2770_s15, 10 }
  0x3d   : > { %s2934_s7 = scalar_lea.hbm %s4077_s2, %s2521_s29  ;;  %s159_s6 = scalar_lea.vmem [#allocation7], %s2409_s22 }
  0x3e   : > { %s166_s27 = sshll.u32 %s159_s6, 4  ;;  %s2938_s8 = scalar_lea.sflag [#allocation8], %s155_s20  ;;  %s2936_s27 = int_to_ptr.vmem [resolvable:$true] %s166_s27 }
  0x3f   : > { %s2666_s9 = scalar_lea.hbm %s2934_s7, 1024  ;;  %p4093_p5 = scmp.ne.s32.totalorder %s4092_s28, 0 }
  0x40   : > { %p2667_p11 = scmp.ne.s32.totalorder %s2934_s7, %s2666_s9  ;;  %s2671_s19 = scalar_lea.hbm %s4077_s2, 2048 }
  0x41   : > { %p2668_p12 = pneg %p4093_p5  ;;  %p2672_p3 = scmp.lt.u32.totalorder %s2934_s7, %s4077_s2 }
  0x42   : > { %p2673_p7 = scmp.lt.u32.totalorder %s2671_s19, %s2666_s9  ;;  %p2675_p0 = scmp.lt.u32.totalorder %s2666_s9, %s2934_s7 }
  0x43   : > { %p2669_p13 = pnand %p2668_p12, %p2667_p11 }
  0x44   : > { %p2674_p2 = por %p2673_p7, %p2672_p3 }
  0x45   : > { %p2670_p1 = pneg %p2669_p13 }
  0x46   : > { %p2676_p6 = por %p2675_p0, %p2674_p2 }
  0x48   : > { %p2677_p8 = pnand %p2676_p6, %p2670_p1 }
  0x4a   : > { %2680 = shalt.err (!%p2677_p8)
}
  0x4b   : > { %s2681_s20 = scalar_lea.vmem %s2936_s27, 1024  ;;  %s2776_s22 = smov [#allocation7]  }
  0x4c   : > { %p2682_p9 = scmp.ne.s32.totalorder %s2936_s27, %s2681_s20  ;;  %s2686_s5 = sshll.u32 %s2776_s22, 4  ;;  %s2687_s5 = int_to_ptr.vmem [resolvable:$false] %s2686_s5 }
  0x4d   : > { %s2688_s6 = scalar_lea.vmem %s2687_s5, 2048  ;;  %p2689_p11 = scmp.lt.s32.totalorder %s2936_s27, %s2687_s5 }
  0x4e   : > { %p2684_p4 = pnand %p2682_p9, %p2668_p12  ;;  %p2690_p13 = scmp.lt.s32.totalorder %s2688_s6, %s2681_s20 }
  0x50   : > { %p2685_p10 = pneg %p2684_p4  ;;  %p2691_p3 = por %p2690_p13, %p2689_p11 }
  0x52   : > { %p2692_p7 = pnand %p2691_p3, %p2685_p10 }
  0x54   : > { %2695 = shalt.err (!%p2692_p7)
}
  0x55   : > { %2551 = dma.hbm_to_vmem [thread:$0]  (!%p4093_p5), %s2934_s7, 1024, %s2936_s27, %s2938_s8, %s2774_s10, %s2774_s10, %s2775_s11  }
  0x56   : > { %p4094_p12 = scmp.ne.s32.totalorder %s4088_s26, 0 }
  0x57   : > { %p4095_p1 = scmp.eq.s32.totalorder (!%p4094_p12), %s2828_s16, 0 }
  0x58   : > { %178 = sbr.rel (%p4094_p12) target bundleno = 1229 (0x4cd), region = 32 }
  0x5f   : > { %2741 = dma.done.wait (%p4095_p1), [#allocation5], 16   ;;  %p4096_p2 = pmov %p4095_p1 }
  0x60   : > { %p4097_p0 = pmov %p4095_p1 }
  0x61   : > { %2743 = vsyncadd (%p4096_p2), [#allocation5], 4294967280 }
  0x62   : > { %2745 = dma.done.wait (%p4097_p0), [#allocation3], 512   ;;  %p4098_p6 = pmov %p4097_p0 }
  0x63   : > { %s2980_s28 = sand.u32 1, %s2762_s13   ;;  %p4099_p5 = scmp.ne.s32.totalorder %s4085_s23, 0 }
  0x64   : > { %2747 = vsyncadd (%p4098_p6), [#allocation3], 4294966784  ;;  %s2415_s26 = sshll.u32 %s2980_s28, 6  ;;  %s189_s10 = scalar_lea.sflag [#allocation8], %s2980_s28 }
  0x65   : > { %s2986_s11 = scalar_lea.vmem [#allocation7], %s2415_s26 }
  0x66   : > { %2749 = dma.done.wait (%p4099_p5), %s189_s10, 1024  }
  0x67   : > { %2751 = vsyncadd (%p4099_p5), %s189_s10, 4294966272 }
  0x68   : > { %197 = sfence }
  0x69   : > { %v216_v0 = vld [vmem:[%s2986_s11] sm:$0xff]  ;;  %v218_v1 = vld [vmem:[%s2986_s11 + $0x10] sm:$0xff]  ;;  %vm224_vm0 = vcmask 130048   ;;  %v217_v7 = vld [vmem:[%s2986_s11 + $0x8] sm:$0xff]  ;;  %vm258_vm1 = vcmask 1042432   ;;  %s2777_s23 = smov 3  }
  0x6a   : > { %v220_v2 = vld [vmem:[%s2986_s11 + $0x20] sm:$0xff]  ;;  %v222_v3 = vld [vmem:[%s2986_s11 + $0x30] sm:$0xff]  ;;  %v225_v4 = vsel %vm224_vm0, %v216_v0, -inf  ;;  %v226_v5 = vsel %vm224_vm0, %v218_v1, -inf  ;;  %v219_v8 = vld [vmem:[%s2986_s11 + $0x18] sm:$0xff]  ;;  %v232_v13 = vsel %vm224_vm0, %v217_v7, -inf }
  0x6b   : > { %v227_v6 = vsel %vm224_vm0, %v220_v2, -inf  ;;  %v229_v10 = vsel %vm224_vm0, %v222_v3, -inf  ;;  %v221_v11 = vld [vmem:[%s2986_s11 + $0x28] sm:$0xff]  ;;  %v223_v12 = vld [vmem:[%s2986_s11 + $0x38] sm:$0xff]  ;;  %v233_v14 = vsel %vm224_vm0, %v219_v8, -inf  ;;  %v239_v18 = vsel %vm224_vm0, %v216_v0, 0.0 }
  0x6c   : > { %v228_v9 = vmax.f32 %v225_v4, %v227_v6  ;;  %v230_v15 = vmax.f32 %v226_v5, %v229_v10  ;;  %v234_v16 = vsel %vm224_vm0, %v221_v11, -inf  ;;  %v236_v17 = vsel %vm224_vm0, %v223_v12, -inf  ;;  %s2417_s7 = sld [smem:[#allocation2 + $0x1]]  ;;  %s2418_s27 = sld [smem:[#allocation2 + $0x2]] }
  0x6d   : > { %v235_v19 = vmax.f32 %v232_v13, %v234_v16  ;;  %v237_v20 = vmax.f32 %v233_v14, %v236_v17  ;;  %v240_v21 = vsel %vm224_vm0, %v218_v1, 0.0  ;;  %v242_v22 = vsel %vm224_vm0, %v220_v2, 0.0  ;;  %s2419_s8 = sld [smem:[#allocation2 + $0x3]]  ;;  %s2420_s9 = sld [smem:[#allocation2 + $0x4]] }
  0x6e   : > { %v231_v23 = vmax.f32 %v228_v9, %v230_v15  ;;  %v241_v24 = vadd.f32 %v240_v21, %v239_v18  ;;  %v244_v26 = vsel %vm224_vm0, %v222_v3, 0.0  ;;  %v246_v27 = vsel %vm224_vm0, %v217_v7, 0.0  ;;  %s2778_s30 = smov 127   ;;  %s3034_s17 = sld [smem:[#allocation2 + $0x5]] }
  0x6f   : > { %v238_v25 = vmax.f32 %v235_v19, %v237_v20  ;;  %v247_v28 = vsel %vm224_vm0, %v219_v8, 0.0  ;;  %v249_v32 = vsel %vm224_vm0, %v221_v11, 0.0  ;;  %v251_v34 = vsel %vm224_vm0, %v223_v12, 0.0  ;;  %s2779_s19 = smov 126   ;;  %s2424_s29 = sld [smem:[#allocation2 + $0x8]] }
  0x70   : > { %v259_v29 = vrot.slane %v231_v23, 5  ;;  %v243_v30 = vadd.f32 %v242_v22, %v241_v24  ;;  %v248_v31 = vadd.f32 %v247_v28, %v246_v27  ;;  %vm277_vm2 = vcmask 23552   ;;  %s3040_s4 = sld [smem:[#allocation2 + $0x6]]  ;;  %s2780_s20 = smov 125  }
  0x71   : > { %v260_v33 = vrot.slane %v238_v25, 5  ;;  %vm281_vm3 = vcmask 154624   ;;  %s2425_s22 = sld [smem:[#allocation2 + $0x9]]  ;;  %s2781_s5 = smov 124   ;;  %vm409_vm4 = vcmask 1046528   ;;  %vm553_vm5 = vcmask 1045504  }
  0x72   : > { %v264_v35 = vsel %vm258_vm1, 0.0, %v259_v29  ;;  %v245_v36 = vadd.f32 %v244_v26, %v243_v30  ;;  %v250_v37 = vadd.f32 %v249_v32, %v248_v31  ;;  %v318_v49 = vstv %s2417_s7  ;;  %s2426_s6 = sld [smem:[#allocation2 + $0xa]]  ;;  %s2782_s10 = smov 123  }
  0x73   : > { %268 = vrot.lane.b32.xlu0 %v264_v35, %s2777_s23  ;;  %v265_v38 = vsel %vm258_vm1, %v260_v33, 0.0  ;;  %v261_v39 = vsel %vm258_vm1, %v259_v29, %v260_v33  ;;  %v332_v54 = vstv %s2418_s27  ;;  %v346_v59 = vstv %s2419_s8  ;;  %s2783_s7 = smov 122   ;;  %s2428_s27 = sld [smem:[#allocation2 + $0xc]] }
  0x74   : > { %272 = vrot.lane.b32.xlu1 %v265_v38, %s2777_s23  ;;  %v254_v40 = vmul.f32 0.25, %v245_v36  ;;  %v252_v41 = vadd.f32 %v251_v34, %v250_v37  ;;  %v360_v62 = vstv %s2420_s9  ;;  %v374_v2 = vstv %s3034_s17  ;;  %s2429_s8 = sld [smem:[#allocation2 + $0xd]]  ;;  %s2431_s9 = sld [smem:[#allocation2 + $0xf]] }
  0x75   : > { %v420_v6 = vstv %s2424_s29  ;;  %s2432_s17 = sld [smem:[#allocation2 + $0x10]]  ;;  %s3095_s29 = sld [smem:[#allocation2 + $0x11]]  ;;  %vm697_vm6 = vcmask 1044480   ;;  %vm841_vm7 = vcmask 1043456   ;;  %vm1128_vm8 = vcmask 1041408  }
  0x76   : > { %v287_v42 = vrot.slane %v254_v40, 5  ;;  %v255_v43 = vmul.f32 0.25, %v252_v41  ;;  %v388_v7 = vstv %s3040_s4  ;;  %s3107_s4 = sld [smem:[#allocation2 + $0x12]]  ;;  %p4100_p9 = scmp.ne.s32.totalorder %s4086_s24, 0 }
  0x77   : > { %270 = vrot.lane.b32.xlu0 %v261_v39, %s2777_s23  ;;  %v441_v13 = vstv %s2425_s22  ;;  %s2435_s22 = sld [smem:[#allocation2 + $0x13]] }
  0x78   : > { %v292_v44 = vsel %vm258_vm1, 0.0, %v287_v42  ;;  %v288_v45 = vrot.slane %v255_v43, 5  ;;  %v462_v20 = vstv %s2426_s6  ;;  %s2436_s6 = sld [smem:[#allocation2 + $0x14]] }
  0x79   : > { %296 = vrot.lane.b32.xlu1 %v292_v44, %s2777_s23  ;;  %v504_v37 = vstv %s2428_s27  ;;  %s2439_s27 = sld [smem:[#allocation2 + $0x17]] }
  0x7a   : > { %v293_v46 = vsel %vm258_vm1, %v288_v45, 0.0  ;;  %v289_v47 = vsel %vm258_vm1, %v287_v42, %v288_v45 }
  0x7b   : > { %298 = vrot.lane.b32.xlu0 %v289_v47, %s2777_s23 }
  0x7d   : > { %300 = vrot.lane.b32.xlu1 %v293_v46, %s2777_s23  ;;  %s2427_s23 = sld [smem:[#allocation2 + $0xb]]  ;;  %v525_v46 = vstv %s2429_s8  ;;  %s2440_s8 = sld [smem:[#allocation2 + $0x18]] }
  0x83   : > { %v483_v28 = vstv %s2427_s23  ;;  %s2438_s23 = sld [smem:[#allocation2 + $0x16]] }
  0xe5   : > { %v269_v48 = vpop.permute.xlu0 %268 }
  0xe6   : > { %v278_v50 = vsel %vm277_vm2, 0.0, %v269_v48  ;;  %v273_v63 = vpop.permute.xlu1 %272 }
  0xe7   : > { %v3024_v51 = vsel %vm281_vm3, %v278_v50, 0.0  ;;  %v280_v3 = vsel %vm277_vm2, 0.0, %v273_v63 }
  0xe8   : > { %v319_v52 = vmul.f32 %v318_v49, %v3024_v51  ;;  %v333_v57 = vmul.f32 %v332_v54, %v3024_v51  ;;  %v347_v60 = vmul.f32 %v346_v59, %v3024_v51  ;;  %v361_v0 = vmul.f32 %v360_v62, %v3024_v51 }
  0xe9   : > { %v271_v53 = vpop.permute.xlu0 %270  ;;  %v375_v4 = vmul.f32 %v374_v2, %v3024_v51  ;;  %v3055_v9 = vsel %vm281_vm3, %v280_v3, 0.0  ;;  %v421_v10 = vmul.f32 %v420_v6, %v3024_v51  ;;  %v389_v11 = vmul.f32 %v388_v7, %v3024_v51 }
  0xea   : > { %v279_v55 = vsel %vm277_vm2, 0.0, %v271_v53  ;;  %323 = vrot.lane.b32.xlu1 %v319_v52, %s2778_s30  ;;  %v423_v16 = vmul.f32 %v420_v6, %v3055_v9  ;;  %v442_v18 = vmul.f32 %v441_v13, %v3024_v51  ;;  %v444_v21 = vmul.f32 %v441_v13, %v3055_v9 }
  0xeb   : > { %v3030_v56 = vsel %vm281_vm3, %v279_v55, 0.0  ;;  %v427_v17 = vrot.slane %v421_v10, 1  ;;  %v463_v27 = vmul.f32 %v462_v20, %v3024_v51  ;;  %v465_v34 = vmul.f32 %v462_v20, %v3055_v9 }
  0xec   : > { %v320_v58 = vmul.f32 %v318_v49, %v3030_v56  ;;  %v334_v61 = vmul.f32 %v332_v54, %v3030_v56  ;;  %v348_v1 = vmul.f32 %v346_v59, %v3030_v56  ;;  %v362_v5 = vmul.f32 %v360_v62, %v3030_v56 }
  0xed   : > { %v422_v8 = vmul.f32 %v420_v6, %v3030_v56  ;;  %v376_v12 = vmul.f32 %v374_v2, %v3030_v56  ;;  %v443_v15 = vmul.f32 %v441_v13, %v3030_v56  ;;  %v390_v19 = vmul.f32 %v388_v7, %v3030_v56 }
  0xee   : > { %337 = vrot.lane.b32.xlu1 %v333_v57, %s2779_s19  ;;  %325 = vrot.lane.b32.xlu0 %v320_v58, %s2778_s30  ;;  %v430_v24 = vrot.slane %v423_v16, 1  ;;  %v464_v25 = vmul.f32 %v462_v20, %v3030_v56  ;;  %v448_v26 = vrot.slane %v442_v18, 1  ;;  %v451_v29 = vrot.slane %v444_v21, 1  ;;  %v297_v57 = vpop.permute.xlu1 %296 }
  0xef   : > { %v428_v14 = vrot.slane %v422_v8, 1  ;;  %v449_v23 = vrot.slane %v443_v15, 1  ;;  %v485_v30 = vmul.f32 %v483_v28, %v3030_v56  ;;  %v469_v35 = vrot.slane %v463_v27, 1 }
  0xf0   : > { %v470_v33 = vrot.slane %v464_v25, 1  ;;  %v484_v36 = vmul.f32 %v483_v28, %v3024_v51  ;;  %v506_v39 = vmul.f32 %v504_v37, %v3030_v56  ;;  %v472_v42 = vrot.slane %v465_v34, 1 }
  0xf1   : > { %v429_v22 = vsel %vm409_vm4, %v427_v17, %v428_v14  ;;  %v450_v31 = vsel %vm409_vm4, %v448_v26, %v449_v23  ;;  %v431_v32 = vsel %vm409_vm4, %v428_v14, %v430_v24  ;;  %v452_v38 = vsel %vm409_vm4, %v449_v23, %v451_v29 }
  0xf2   : > { %351 = vrot.lane.b32.xlu1 %v347_v60, %s2780_s20  ;;  %339 = vrot.lane.b32.xlu0 %v334_v61, %s2779_s19  ;;  %v471_v40 = vsel %vm409_vm4, %v469_v35, %v470_v33  ;;  %v491_v41 = vrot.slane %v485_v30, 1  ;;  %v486_v43 = vmul.f32 %v483_v28, %v3055_v9  ;;  %v505_v44 = vmul.f32 %v504_v37, %v3024_v51  ;;  %v301_v14 = vpop.permute.xlu1 %300 }
  0xf3   : > { %v490_v45 = vrot.slane %v484_v36, 1  ;;  %v512_v47 = vrot.slane %v506_v39, 1  ;;  %v527_v48 = vmul.f32 %v525_v46, %v3030_v56  ;;  %v473_v50 = vsel %vm409_vm4, %v470_v33, %v472_v42 }
  0xf4   : > { %v493_v52 = vrot.slane %v486_v43, 1  ;;  %v507_v53 = vmul.f32 %v504_v37, %v3055_v9  ;;  %v511_v54 = vrot.slane %v505_v44, 1  ;;  %v526_v55 = vmul.f32 %v525_v46, %v3024_v51 }
  0xf5   : > { %v492_v49 = vsel %vm409_vm4, %v490_v45, %v491_v41  ;;  %v533_v59 = vrot.slane %v527_v48, 1  ;;  %v564_v60 = vstv %s2431_s9  ;;  %v585_v3 = vstv %s2432_s17  ;;  %s2441_s9 = sld [smem:[#allocation2 + $0x19]]  ;;  %s2442_s17 = sld [smem:[#allocation2 + $0x1a]] }
  0xf6   : > { %365 = vrot.lane.b32.xlu1 %v361_v0, %s2781_s5  ;;  %353 = vrot.lane.b32.xlu0 %v348_v1, %s2780_s20  ;;  %v513_v58 = vsel %vm409_vm4, %v511_v54, %v512_v47  ;;  %v494_v61 = vsel %vm409_vm4, %v491_v41, %v493_v52  ;;  %v514_v62 = vrot.slane %v507_v53, 1  ;;  %v566_v63 = vmul.f32 %v564_v60, %v3030_v56 }
  0xf7   : > { %v528_v0 = vmul.f32 %v525_v46, %v3055_v9  ;;  %v532_v1 = vrot.slane %v526_v55, 1  ;;  %v565_v2 = vmul.f32 %v564_v60, %v3024_v51  ;;  %v587_v7 = vmul.f32 %v585_v3, %v3030_v56 }
  0xf8   : > { %v515_v10 = vsel %vm409_vm4, %v512_v47, %v514_v62  ;;  %v567_v13 = vmul.f32 %v564_v60, %v3055_v9  ;;  %v586_v15 = vmul.f32 %v585_v3, %v3024_v51  ;;  %v307_v16 = vsel %vm277_vm2, 0.0, %v301_v14 }
  0xf9   : > { %v534_v6 = vsel %vm409_vm4, %v532_v1, %v533_v59  ;;  %v571_v18 = vrot.slane %v565_v2, 2  ;;  %v3121_v20 = vsel %vm281_vm3, %v307_v16, 0.0  ;;  %v588_v27 = vmul.f32 %v585_v3, %v3055_v9 }
  0xfa   : > { %379 = vrot.lane.b32.xlu1 %v375_v4, %s2782_s10  ;;  %367 = vrot.lane.b32.xlu0 %v362_v5, %s2781_s5  ;;  %v305_v4 = vsel %vm277_vm2, 0.0, %v297_v57  ;;  %v299_v5 = vpop.permute.xlu0 %298  ;;  %v574_v26 = vrot.slane %v567_v13, 2  ;;  %v592_v28 = vrot.slane %v586_v15, 2  ;;  %v648_v39 = vstv %s2435_s22  ;;  %s2446_s22 = sld [smem:[#allocation2 + $0x1e]] }
  0xfb   : > { %v3110_v8 = vsel %vm281_vm3, %v305_v4, 0.0  ;;  %v306_v17 = vsel %vm277_vm2, 0.0, %v299_v5  ;;  %v595_v34 = vrot.slane %v588_v27, 2  ;;  %v650_v41 = vmul.f32 %v648_v39, %v3030_v56 }
  0xfc   : > { %v3124_v21 = vsel %vm281_vm3, %v306_v17, 0.0  ;;  %v649_v46 = vmul.f32 %v648_v39, %v3024_v51  ;;  %v669_v48 = vstv %s2436_s6  ;;  %v651_v55 = vmul.f32 %v648_v39, %v3055_v9  ;;  %s2447_s6 = sld [smem:[#allocation2 + $0x1f]] }
  0xfd   : > { %v672_v1 = vmul.f32 %v669_v48, %v3055_v9  ;;  %v729_v4 = vstv %s2439_s27  ;;  %v750_v15 = vstv %s2440_s8  ;;  %s2449_s27 = sld [smem:[#allocation2 + $0x21]]  ;;  %s2450_s8 = sld [smem:[#allocation2 + $0x22]] }
  0xfe   : > { %393 = vrot.lane.b32.xlu1 %v389_v11, %s2783_s7  ;;  %381 = vrot.lane.b32.xlu0 %v376_v12, %s2782_s10  ;;  %v572_v11 = vrot.slane %v566_v63, 2  ;;  %v535_v12 = vrot.slane %v528_v0, 1  ;;  %v655_v57 = vrot.slane %v649_v46, 2  ;;  %v658_v63 = vrot.slane %v651_v55, 2 }
  0xff   : > { %v730_v13 = vmul.f32 %v729_v4, %v3024_v51  ;;  %v752_v17 = vmul.f32 %v750_v15, %v3030_v56 }
 0x100   : > { %v573_v24 = vsel %vm553_vm5, %v571_v18, %v572_v11  ;;  %v536_v25 = vsel %vm409_vm4, %v533_v59, %v535_v12  ;;  %v575_v33 = vsel %vm553_vm5, %v572_v11, %v574_v26  ;;  %v679_v11 = vrot.slane %v672_v1, 2 }
 0x101   : > { %v771_v26 = vstv %s2441_s9  ;;  %s2452_s9 = sld [smem:[#allocation2 + $0x24]] }
 0x102   : > { %432 = vrot.lane.b32.xlu1 %v429_v22, %s2778_s30  ;;  %395 = vrot.lane.b32.xlu0 %v390_v19, %s2783_s7  ;;  %v606_v19 = vstv %s3095_s29  ;;  %v593_v22 = vrot.slane %v587_v7, 2  ;;  %s2443_s29 = sld [smem:[#allocation2 + $0x1b]] }
 0x103   : > { %v608_v23 = vmul.f32 %v606_v19, %v3030_v56  ;;  %v607_v29 = vmul.f32 %v606_v19, %v3024_v51  ;;  %v609_v36 = vmul.f32 %v606_v19, %v3055_v9 }
 0x104   : > { %v594_v30 = vsel %vm553_vm5, %v592_v28, %v593_v22  ;;  %v596_v42 = vsel %vm553_vm5, %v593_v22, %v595_v34  ;;  %v758_v28 = vrot.slane %v752_v17, 3 }
 0x105   : > { %v613_v37 = vrot.slane %v607_v29, 2  ;;  %v616_v44 = vrot.slane %v609_v36, 2  ;;  %v773_v29 = vmul.f32 %v771_v26, %v3030_v56 }
 0x106   : > { %453 = vrot.lane.b32.xlu1 %v450_v31, %s2779_s19  ;;  %434 = vrot.lane.b32.xlu0 %v431_v32, %s2778_s30  ;;  %v614_v31 = vrot.slane %v608_v23, 2  ;;  %v627_v32 = vstv %s3107_s4  ;;  %v732_v23 = vmul.f32 %v729_v4, %v3055_v9  ;;  %s2445_s4 = sld [smem:[#allocation2 + $0x1d]] }
 0x107   : > { %v629_v35 = vmul.f32 %v627_v32, %v3030_v56  ;;  %v630_v45 = vmul.f32 %v627_v32, %v3055_v9 }
 0x108   : > { %v617_v53 = vsel %vm553_vm5, %v614_v31, %v616_v44  ;;  %v813_v44 = vstv %s2443_s29  ;;  %s2454_s29 = sld [smem:[#allocation2 + $0x26]] }
 0x109   : > { %v635_v43 = vrot.slane %v629_v35, 2  ;;  %v637_v54 = vrot.slane %v630_v45, 2  ;;  %v792_v35 = vstv %s2442_s17  ;;  %v815_v45 = vmul.f32 %v813_v44, %v3030_v56  ;;  %s2453_s17 = sld [smem:[#allocation2 + $0x25]] }
 0x10a   : > { %474 = vrot.lane.b32.xlu1 %v471_v40, %s2780_s20  ;;  %455 = vrot.lane.b32.xlu0 %v452_v38, %s2779_s19  ;;  %v628_v38 = vmul.f32 %v627_v32, %v3024_v51  ;;  %v615_v40 = vsel %vm553_vm5, %v613_v37, %v614_v31  ;;  %v739_v31 = vrot.slane %v732_v23, 3  ;;  %v774_v32 = vmul.f32 %v771_v26, %v3055_v9 }
 0x10b   : > { %v638_v62 = vsel %vm553_vm5, %v635_v43, %v637_v54  ;;  %v779_v37 = vrot.slane %v773_v29, 3  ;;  %v816_v46 = vmul.f32 %v813_v44, %v3055_v9  ;;  %v821_v55 = vrot.slane %v815_v45, 3 }
 0x10c   : > { %v634_v47 = vrot.slane %v628_v38, 2  ;;  %v794_v38 = vmul.f32 %v792_v35, %v3030_v56  ;;  %v852_v54 = vstv %s2445_s4  ;;  %s2455_s4 = sld [smem:[#allocation2 + $0x27]] }
 0x10e   : > { %495 = vrot.lane.b32.xlu1 %v492_v49, %s2781_s5  ;;  %476 = vrot.lane.b32.xlu0 %v473_v50, %s2780_s20  ;;  %v656_v49 = vrot.slane %v650_v41, 2  ;;  %v671_v50 = vmul.f32 %v669_v48, %v3030_v56  ;;  %v636_v52 = vsel %vm553_vm5, %v634_v47, %v635_v43  ;;  %v772_v43 = vmul.f32 %v771_v26, %v3024_v51 }
 0x110   : > { %v657_v59 = vsel %vm553_vm5, %v655_v57, %v656_v49  ;;  %v677_v60 = vrot.slane %v671_v50, 2  ;;  %v659_v7 = vsel %vm553_vm5, %v656_v49, %v658_v63  ;;  %v800_v49 = vrot.slane %v794_v38, 3 }
 0x111   : > { %v823_v57 = vrot.slane %v816_v46, 3  ;;  %v814_v63 = vmul.f32 %v813_v44, %v3024_v51 }
 0x112   : > { %516 = vrot.lane.b32.xlu1 %v513_v58, %s2782_s10  ;;  %497 = vrot.lane.b32.xlu0 %v494_v61, %s2781_s5  ;;  %v670_v58 = vmul.f32 %v669_v48, %v3024_v51  ;;  %v708_v61 = vstv %s2438_s23  ;;  %v680_v19 = vsel %vm553_vm5, %v677_v60, %v679_v11  ;;  %s2448_s23 = sld [smem:[#allocation2 + $0x20]]  ;;  %v894_v11 = vstv %s2447_s6  ;;  %s2457_s6 = sld [smem:[#allocation2 + $0x29]] }
 0x113   : > { %v710_v0 = vmul.f32 %v708_v61, %v3030_v56  ;;  %v709_v3 = vmul.f32 %v708_v61, %v3024_v51  ;;  %v711_v12 = vmul.f32 %v708_v61, %v3055_v9  ;;  %v855_v61 = vmul.f32 %v852_v54, %v3055_v9 }
 0x114   : > { %v676_v2 = vrot.slane %v670_v58, 2  ;;  %v854_v58 = vmul.f32 %v852_v54, %v3030_v56 }
 0x115   : > { %v715_v14 = vrot.slane %v709_v3, 3  ;;  %v718_v22 = vrot.slane %v711_v12, 3  ;;  %v896_v12 = vmul.f32 %v894_v11, %v3030_v56 }
 0x116   : > { %537 = vrot.lane.b32.xlu1 %v534_v6, %s2783_s7  ;;  %518 = vrot.lane.b32.xlu0 %v515_v10, %s2782_s10  ;;  %v678_v5 = vsel %vm553_vm5, %v676_v2, %v677_v60  ;;  %v731_v6 = vmul.f32 %v729_v4, %v3030_v56  ;;  %v716_v10 = vrot.slane %v710_v0, 3  ;;  %v824_v0 = vsel %vm697_vm6, %v821_v55, %v823_v57 }
 0x117   : > { %v860_v1 = vrot.slane %v854_v58, 4  ;;  %v873_v2 = vstv %s2446_s22  ;;  %v862_v4 = vrot.slane %v855_v61, 4  ;;  %s2456_s22 = sld [smem:[#allocation2 + $0x28]] }
 0x118   : > { %v737_v16 = vrot.slane %v731_v6, 3  ;;  %v717_v18 = vsel %vm697_vm6, %v715_v14, %v716_v10  ;;  %v876_v6 = vmul.f32 %v873_v2, %v3055_v9 }
 0x119   : > { %v863_v14 = vsel %vm841_vm7, %v860_v1, %v862_v4 }
 0x11a   : > { %576 = vrot.lane.b32.xlu1 %v573_v24, %s2778_s30  ;;  %539 = vrot.lane.b32.xlu0 %v536_v25, %s2783_s7  ;;  %v736_v24 = vrot.slane %v730_v13, 3  ;;  %v751_v25 = vmul.f32 %v750_v15, %v3024_v51  ;;  %v740_v39 = vsel %vm697_vm6, %v737_v16, %v739_v31  ;;  %v897_v13 = vmul.f32 %v894_v11, %v3055_v9 }
 0x11b   : > { %v883_v17 = vrot.slane %v876_v6, 4  ;;  %v1037_v6 = vstv %s2454_s29  ;;  %s3323_s29 = sld [smem:[#allocation2 + $0x2f]] }
 0x11c   : > { %v738_v27 = vsel %vm697_vm6, %v736_v24, %v737_v16  ;;  %v757_v34 = vrot.slane %v751_v25, 3  ;;  %v904_v23 = vrot.slane %v897_v13, 4  ;;  %v915_v24 = vstv %s2448_s23  ;;  %s2459_s23 = sld [smem:[#allocation2 + $0x2b]] }
 0x11e   : > { %597 = vrot.lane.b32.xlu1 %v594_v30, %s2779_s19  ;;  %578 = vrot.lane.b32.xlu0 %v575_v33, %s2778_s30  ;;  %v719_v30 = vsel %vm697_vm6, %v716_v10, %v718_v22  ;;  %v753_v33 = vmul.f32 %v750_v15, %v3055_v9  ;;  %v759_v36 = vsel %vm697_vm6, %v757_v34, %v758_v28  ;;  %v902_v22 = vrot.slane %v896_v12, 4 }
 0x11f   : > { %v853_v10 = vmul.f32 %v852_v54, %v3024_v51  ;;  %v1040_v12 = vmul.f32 %v1037_v6, %v3055_v9 }
 0x120   : > { %v760_v41 = vrot.slane %v753_v33, 3  ;;  %v905_v31 = vsel %vm841_vm7, %v902_v22, %v904_v23  ;;  %v936_v33 = vstv %s2449_s27  ;;  %s2460_s27 = sld [smem:[#allocation2 + $0x2c]] }
 0x122   : > { %618 = vrot.lane.b32.xlu1 %v615_v40, %s2780_s20  ;;  %599 = vrot.lane.b32.xlu0 %v596_v42, %s2779_s19  ;;  %v781_v40 = vrot.slane %v774_v32, 3  ;;  %v795_v42 = vmul.f32 %v792_v35, %v3055_v9  ;;  %v761_v48 = vsel %vm697_vm6, %v758_v28, %v760_v41  ;;  %v918_v28 = vmul.f32 %v915_v24, %v3055_v9 }
 0x124   : > { %v782_v47 = vsel %vm697_vm6, %v779_v37, %v781_v40  ;;  %v802_v50 = vrot.slane %v795_v42, 3  ;;  %v957_v40 = vstv %s2450_s8  ;;  %s2461_s8 = sld [smem:[#allocation2 + $0x2d]] }
 0x125   : > { %v959_v41 = vmul.f32 %v957_v40, %v3030_v56  ;;  %v960_v42 = vmul.f32 %v957_v40, %v3055_v9 }
 0x126   : > { %639 = vrot.lane.b32.xlu1 %v636_v52, %s2781_s5  ;;  %620 = vrot.lane.b32.xlu0 %v617_v53, %s2780_s20  ;;  %v778_v52 = vrot.slane %v772_v43, 3  ;;  %v793_v53 = vmul.f32 %v792_v35, %v3024_v51  ;;  %v925_v35 = vrot.slane %v918_v28, 4 }
 0x128   : > { %v780_v60 = vsel %vm697_vm6, %v778_v52, %v779_v37  ;;  %v939_v37 = vmul.f32 %v936_v33, %v3055_v9  ;;  %v967_v52 = vrot.slane %v960_v42, 4 }
 0x12a   : > { %660 = vrot.lane.b32.xlu1 %v657_v59, %s2782_s10  ;;  %641 = vrot.lane.b32.xlu0 %v638_v62, %s2781_s5  ;;  %v803_v59 = vsel %vm697_vm6, %v800_v49, %v802_v50  ;;  %v799_v62 = vrot.slane %v793_v53, 3  ;;  %v946_v46 = vrot.slane %v939_v37, 4  ;;  %v965_v50 = vrot.slane %v959_v41, 4 }
 0x12c   : > { %v801_v3 = vsel %vm697_vm6, %v799_v62, %v800_v49  ;;  %v995_v49 = vstv %s2452_s9  ;;  %v968_v61 = vsel %vm841_vm7, %v965_v50, %v967_v52  ;;  %s2462_s9 = sld [smem:[#allocation2 + $0x2e]] }
 0x12d   : > { %v997_v53 = vmul.f32 %v995_v49, %v3030_v56  ;;  %v998_v57 = vmul.f32 %v995_v49, %v3055_v9 }
 0x12e   : > { %681 = vrot.lane.b32.xlu1 %v678_v5, %s2783_s7  ;;  %662 = vrot.lane.b32.xlu0 %v659_v7, %s2782_s10  ;;  %v875_v5 = vmul.f32 %v873_v2, %v3030_v56  ;;  %v820_v7 = vrot.slane %v814_v63, 3  ;;  %v1016_v63 = vstv %s2453_s17  ;;  %s3318_s17 = sld [smem:[#allocation2]] }
 0x12f   : > { %v1003_v62 = vrot.slane %v997_v53, 5 }
 0x130   : > { %v822_v15 = vsel %vm697_vm6, %v820_v7, %v821_v55  ;;  %v881_v16 = vrot.slane %v875_v5, 4  ;;  %v996_v5 = vmul.f32 %v995_v49, %v3024_v51 }
 0x132   : > { %720 = vrot.lane.b32.xlu1 %v717_v18, %s2778_s30  ;;  %683 = vrot.lane.b32.xlu0 %v680_v19, %s2783_s7  ;;  %v874_v18 = vmul.f32 %v873_v2, %v3024_v51  ;;  %v859_v19 = vrot.slane %v853_v10, 4  ;;  %v884_v25 = vsel %vm841_vm7, %v881_v16, %v883_v17  ;;  %v1018_v2 = vmul.f32 %v1016_v63, %v3030_v56 }
 0x133   : > { %v1002_v17 = vrot.slane %v996_v5, 5 }
 0x134   : > { %v861_v26 = vsel %vm841_vm7, %v859_v19, %v860_v1  ;;  %v880_v29 = vrot.slane %v874_v18, 4  ;;  %v1005_v1 = vrot.slane %v998_v57, 5  ;;  %v1017_v18 = vmul.f32 %v1016_v63, %v3024_v51 }
 0x136   : > { %741 = vrot.lane.b32.xlu1 %v738_v27, %s2779_s19  ;;  %722 = vrot.lane.b32.xlu0 %v719_v30, %s2778_s30  ;;  %v917_v27 = vmul.f32 %v915_v24, %v3030_v56  ;;  %v895_v30 = vmul.f32 %v894_v11, %v3024_v51  ;;  %v882_v32 = vsel %vm841_vm7, %v880_v29, %v881_v16 }
 0x137   : > { %v1039_v11 = vmul.f32 %v1037_v6, %v3030_v56  ;;  %v1006_v13 = vsel %vm258_vm1, %v1003_v62, %v1005_v1 }
 0x138   : > { %v923_v34 = vrot.slane %v917_v27, 4  ;;  %v901_v38 = vrot.slane %v895_v30, 4  ;;  %v1004_v27 = vsel %vm258_vm1, %v1002_v17, %v1003_v62  ;;  %v1023_v30 = vrot.slane %v1017_v18, 5 }
 0x139   : > { %v1045_v23 = vrot.slane %v1039_v11, 5 }
 0x13a   : > { %762 = vrot.lane.b32.xlu1 %v759_v36, %s2780_s20  ;;  %743 = vrot.lane.b32.xlu0 %v740_v39, %s2779_s19  ;;  %v938_v36 = vmul.f32 %v936_v33, %v3030_v56  ;;  %v916_v39 = vmul.f32 %v915_v24, %v3024_v51  ;;  %v926_v43 = vsel %vm841_vm7, %v923_v34, %v925_v35  ;;  %v1047_v24 = vrot.slane %v1040_v12, 5 }
 0x13b   : > { %v903_v44 = vsel %vm841_vm7, %v901_v38, %v902_v22 }
 0x13c   : > { %v944_v45 = vrot.slane %v938_v36, 4  ;;  %v1048_v37 = vsel %vm258_vm1, %v1045_v23, %v1047_v24 }
 0x13e   : > { %785 = vrot.lane.b32.xlu1 %v782_v47, %s2781_s5  ;;  %764 = vrot.lane.b32.xlu0 %v761_v48, %s2780_s20  ;;  %v922_v47 = vrot.slane %v916_v39, 4  ;;  %v937_v48 = vmul.f32 %v936_v33, %v3024_v51  ;;  %v947_v54 = vsel %vm841_vm7, %v944_v45, %v946_v46 }
 0x140   : > { %v924_v55 = vsel %vm841_vm7, %v922_v47, %v923_v34  ;;  %v943_v58 = vrot.slane %v937_v48, 4  ;;  %v1100_v47 = vstv %s2457_s6  ;;  %s3385_s6 = sld [smem:[#allocation2 + $0x32]] }
 0x141   : > { %v1103_v52 = vmul.f32 %v1100_v47, %v3055_v9 }
 0x142   : > { %806 = vrot.lane.b32.xlu1 %v803_v59, %s2782_s10  ;;  %783 = vrot.lane.b32.xlu0 %v780_v60, %s2781_s5  ;;  %v958_v59 = vmul.f32 %v957_v40, %v3024_v51 }
 0x144   : > { %v964_v4 = vrot.slane %v958_v59, 4 }
 0x146   : > { %827 = vrot.lane.b32.xlu1 %v824_v0, %s2783_s7  ;;  %804 = vrot.lane.b32.xlu0 %v801_v3, %s2782_s10  ;;  %v945_v0 = vsel %vm841_vm7, %v943_v58, %v944_v45  ;;  %v1019_v3 = vmul.f32 %v1016_v63, %v3055_v9  ;;  %v1110_v63 = vrot.slane %v1103_v52, 5  ;;  %v1223_v52 = vstv %s3323_s29  ;;  %s2473_s29 = sld [smem:[#allocation2 + $0x39]] }
 0x148   : > { %v1026_v16 = vrot.slane %v1019_v3, 5  ;;  %v1101_v3 = vmul.f32 %v1100_v47, %v3024_v51 }
 0x14a   : > { %866 = vrot.lane.b32.xlu1 %v863_v14, %s2778_s30  ;;  %825 = vrot.lane.b32.xlu0 %v822_v15, %s2783_s7  ;;  %v966_v14 = vsel %vm841_vm7, %v964_v4, %v965_v50  ;;  %v1024_v15 = vrot.slane %v1018_v2, 5  ;;  %v1102_v50 = vmul.f32 %v1100_v47, %v3030_v56  ;;  %v1160_v4 = vstv %s2460_s27  ;;  %s2430_s27 = sld [smem:[#allocation2 + $0xe]] }
 0x14b   : > { %v1162_v11 = vmul.f32 %v1160_v4, %v3030_v56  ;;  %v1163_v12 = vmul.f32 %v1160_v4, %v3055_v9  ;;  %v1107_v17 = vrot.slane %v1101_v3, 5  ;;  %v312_v47 = vstv %s3318_s17  ;;  %s3441_s17 = sld [smem:[#allocation2 + $0x36]] }
 0x14c   : > { %v1025_v38 = vsel %vm258_vm1, %v1023_v30, %v1024_v15  ;;  %v1108_v62 = vrot.slane %v1102_v50, 5 }
 0x14e   : > { %887 = vrot.lane.b32.xlu1 %v884_v25, %s2779_s19  ;;  %864 = vrot.lane.b32.xlu0 %v861_v26, %s2778_s30  ;;  %v1058_v25 = vstv %s2455_s4  ;;  %v1027_v26 = vsel %vm258_vm1, %v1024_v15, %v1026_v16  ;;  %s3336_s4 = sld [smem:[#allocation2 + $0x30]] }
 0x14f   : > { %v1060_v28 = vmul.f32 %v1058_v25, %v3030_v56  ;;  %v1061_v29 = vmul.f32 %v1058_v25, %v3055_v9  ;;  %v1059_v41 = vmul.f32 %v1058_v25, %v3024_v51  ;;  %v1168_v25 = vrot.slane %v1162_v11, 6 }
 0x151   : > { %v1066_v39 = vrot.slane %v1060_v28, 5  ;;  %v1068_v40 = vrot.slane %v1061_v29, 5  ;;  %v1065_v53 = vrot.slane %v1059_v41, 5  ;;  %v1109_v29 = vsel %vm258_vm1, %v1107_v17, %v1108_v62 }
 0x152   : > { %908 = vrot.lane.b32.xlu1 %v905_v31, %s2780_s20  ;;  %885 = vrot.lane.b32.xlu0 %v882_v32, %s2779_s19  ;;  %v1038_v31 = vmul.f32 %v1037_v6, %v3024_v51  ;;  %v1079_v32 = vstv %s2456_s22  ;;  %s3338_s22 = sld [smem:[#allocation2 + $0x7]] }
 0x153   : > { %v1081_v35 = vmul.f32 %v1079_v32, %v3030_v56  ;;  %v1082_v36 = vmul.f32 %v1079_v32, %v3055_v9  ;;  %v1069_v48 = vsel %vm258_vm1, %v1066_v39, %v1068_v40  ;;  %v1067_v59 = vsel %vm258_vm1, %v1065_v53, %v1066_v39 }
 0x154   : > { %v1044_v42 = vrot.slane %v1038_v31, 5  ;;  %v1244_v11 = vstv %s3336_s4  ;;  %s3457_s4 = sld [smem:[#allocation2 + $0x37]] }
 0x155   : > { %v1087_v45 = vrot.slane %v1081_v35, 5  ;;  %v1089_v46 = vrot.slane %v1082_v36, 5  ;;  %v1161_v35 = vmul.f32 %v1160_v4, %v3024_v51  ;;  %v1202_v36 = vstv %s2462_s9  ;;  %s3427_s9 = sld [smem:[#allocation2 + $0x35]] }
 0x156   : > { %929 = vrot.lane.b32.xlu1 %v926_v43, %s2781_s5  ;;  %906 = vrot.lane.b32.xlu0 %v903_v44, %s2780_s20  ;;  %v1046_v49 = vsel %vm258_vm1, %v1044_v42, %v1045_v23  ;;  %v1204_v40 = vmul.f32 %v1202_v36, %v3030_v56  ;;  %v1203_v4 = vmul.f32 %v1202_v36, %v3024_v51 }
 0x157   : > { %v1090_v58 = vsel %vm258_vm1, %v1087_v45, %v1089_v46  ;;  %v1205_v46 = vmul.f32 %v1202_v36, %v3055_v9 }
 0x15a   : > { %950 = vrot.lane.b32.xlu1 %v947_v54, %s2782_s10  ;;  %927 = vrot.lane.b32.xlu0 %v924_v55, %s2781_s5  ;;  %v1080_v54 = vmul.f32 %v1079_v32, %v3024_v51 }
 0x15c   : > { %v3246_v60 = vpop.permute.xlu1 %323  ;;  %v1086_v2 = vrot.slane %v1080_v54, 5 }
 0x15e   : > { %971 = vrot.lane.b32.xlu1 %v968_v61, %s2783_s7  ;;  %948 = vrot.lane.b32.xlu0 %v945_v0, %s2782_s10  ;;  %v1139_v61 = vstv %s2459_s23  ;;  %s3400_s23 = sld [smem:[#allocation2 + $0x33]] }
 0x15f   : > { %v1141_v0 = vmul.f32 %v1139_v61, %v3030_v56  ;;  %v1142_v1 = vmul.f32 %v1139_v61, %v3055_v9  ;;  %v1140_v18 = vmul.f32 %v1139_v61, %v3024_v51  ;;  %v1226_v61 = vmul.f32 %v1223_v52, %v3055_v9 }
 0x160   : > { %v3255_v7 = vpop.permute.xlu1 %337  ;;  %v3257_v10 = vpop.permute.xlu0 %325 }
 0x161   : > { %v1147_v15 = vrot.slane %v1141_v0, 6  ;;  %v1149_v16 = vrot.slane %v1142_v1, 6  ;;  %v1146_v32 = vrot.slane %v1140_v18, 6  ;;  %v1212_v1 = vrot.slane %v1205_v46, 6 }
 0x162   : > { %1009 = vrot.lane.b32.xlu1 %v1006_v13, %s2778_s30  ;;  %969 = vrot.lane.b32.xlu0 %v966_v14, %s2783_s7  ;;  %v1111_v13 = vsel %vm258_vm1, %v1108_v62, %v1110_v63  ;;  %v1088_v14 = vsel %vm258_vm1, %v1086_v2, %v1087_v45 }
 0x163   : > { %v1150_v28 = vsel %vm1128_vm8, %v1147_v15, %v1149_v16  ;;  %v1148_v41 = vsel %vm1128_vm8, %v1146_v32, %v1147_v15  ;;  %v1233_v15 = vrot.slane %v1226_v61, 6  ;;  %v1246_v16 = vmul.f32 %v1244_v11, %v3030_v56 }
 0x164   : > { %v3266_v19 = vpop.permute.xlu1 %351  ;;  %v3268_v22 = vpop.permute.xlu0 %339 }
 0x165   : > { %v1252_v36 = vrot.slane %v1246_v16, 6 }
 0x166   : > { %1030 = vrot.lane.b32.xlu1 %v1027_v26, %s2779_s19  ;;  %1007 = vrot.lane.b32.xlu0 %v1004_v27, %s2778_s30  ;;  %v1170_v26 = vrot.slane %v1163_v12, 6  ;;  %v1181_v27 = vstv %s2461_s8  ;;  %v402_v12 = vstv %s3338_s22  ;;  %s3412_s8 = sld [smem:[#allocation2 + $0x34]]  ;;  %s3463_s22 = sld [smem:[#allocation2 + $0x3a]] }
 0x167   : > { %v1183_v30 = vmul.f32 %v1181_v27, %v3030_v56  ;;  %v1184_v31 = vmul.f32 %v1181_v27, %v3055_v9  ;;  %v1182_v50 = vmul.f32 %v1181_v27, %v3024_v51  ;;  %v405_v27 = vmul.f32 %v402_v12, %v3055_v9 }
 0x168   : > { %v3277_v33 = vpop.permute.xlu1 %365  ;;  %v3279_v34 = vpop.permute.xlu0 %353  ;;  %v1171_v39 = vsel %vm1128_vm8, %v1168_v25, %v1170_v26  ;;  %v404_v26 = vmul.f32 %v402_v12, %v3030_v56 }
 0x169   : > { %v1189_v42 = vrot.slane %v1183_v30, 6  ;;  %v1191_v45 = vrot.slane %v1184_v31, 6  ;;  %v1188_v3 = vrot.slane %v1182_v50, 6  ;;  %v1209_v30 = vrot.slane %v1203_v4, 6 }
 0x16a   : > { %1051 = vrot.lane.b32.xlu1 %v1048_v37, %s2780_s20  ;;  %1028 = vrot.lane.b32.xlu0 %v1025_v38, %s2779_s19 }
 0x16b   : > { %v1192_v63 = vsel %vm1128_vm8, %v1189_v42, %v1191_v45  ;;  %v413_v45 = vrot.slane %v405_v27, 1 }
 0x16c   : > { %v3288_v43 = vpop.permute.xlu1 %379  ;;  %v3290_v44 = vpop.permute.xlu0 %367 }
 0x16e   : > { %1072 = vrot.lane.b32.xlu1 %v1069_v48, %s2781_s5  ;;  %1049 = vrot.lane.b32.xlu0 %v1046_v49, %s2780_s20  ;;  %v314_v48 = vmul.f32 %v312_v47, %v3030_v56  ;;  %v1167_v49 = vrot.slane %v1161_v35, 6 }
 0x170   : > { %v3299_v55 = vpop.permute.xlu1 %393  ;;  %v3301_v57 = vpop.permute.xlu0 %381  ;;  %v330_v62 = vadd.f32 %v3257_v10, %v314_v48  ;;  %v1169_v0 = vsel %vm1128_vm8, %v1167_v49, %v1168_v25  ;;  %v1190_v25 = vsel %vm1128_vm8, %v1188_v3, %v1189_v42  ;;  %v1245_v49 = vmul.f32 %v1244_v11, %v3024_v51 }
 0x172   : > { %1093 = vrot.lane.b32.xlu1 %v1090_v58, %s2782_s10  ;;  %1070 = vrot.lane.b32.xlu0 %v1067_v59, %s2781_s5  ;;  %v1210_v58 = vrot.slane %v1204_v40, 6  ;;  %v1225_v59 = vmul.f32 %v1223_v52, %v3030_v56  ;;  %v344_v2 = vadd.f32 %v3268_v22, %v330_v62  ;;  %v1247_v22 = vmul.f32 %v1244_v11, %v3055_v9 }
 0x173   : > { %v1251_v61 = vrot.slane %v1245_v49, 6  ;;  %v1271_v62 = vstv %s3385_s6  ;;  %v1285_v11 = vstv %s3400_s23  ;;  %s3468_s6 = sld [smem:[#allocation2 + $0x15]]  ;;  %s3473_s23 = sld [smem:[#allocation2 + $0x3b]] }
 0x174   : > { %v3310_v5 = vpop.permute.xlu1 %432  ;;  %v3312_v6 = vpop.permute.xlu0 %395  ;;  %v1231_v10 = vrot.slane %v1225_v59, 6  ;;  %v358_v17 = vadd.f32 %v3279_v34, %v344_v2  ;;  %v1213_v18 = vsel %vm1128_vm8, %v1210_v58, %v1212_v1  ;;  %v1224_v34 = vmul.f32 %v1223_v52, %v3024_v51 }
 0x175   : > { %v1254_v42 = vrot.slane %v1247_v22, 6  ;;  %v1273_v1 = vmul.f32 %v1271_v62, %v3124_v21  ;;  %v1253_v3 = vsel %vm1128_vm8, %v1251_v61, %v1252_v36  ;;  %v1287_v16 = vmul.f32 %v1285_v11, %v3124_v21 }
 0x176   : > { %1114 = vrot.lane.b32.xlu1 %v1111_v13, %s2783_s7  ;;  %1091 = vrot.lane.b32.xlu0 %v1088_v14, %s2782_s10  ;;  %v1234_v35 = vsel %vm1128_vm8, %v1231_v10, %v1233_v15  ;;  %v1230_v48 = vrot.slane %v1224_v34, 6  ;;  %v1299_v22 = vstv %s3412_s8  ;;  %v1341_v61 = vstv %s3457_s4  ;;  %s3507_s8 = sld [smem:[#allocation2 + $0x3d]]  ;;  %s3567_s4 = sld [smem:[#allocation2 + $0x1c]] }
 0x177   : > { %v1255_v52 = vsel %vm1128_vm8, %v1252_v36, %v1254_v42  ;;  %v1313_v36 = vstv %s3427_s9  ;;  %s3528_s9 = sld [smem:[#allocation2 + $0x3e]] }
 0x178   : > { %v3325_v23 = vpop.permute.xlu1 %453  ;;  %v3327_v24 = vpop.permute.xlu0 %434 }
 0x17a   : > { %1153 = vrot.lane.b32.xlu1 %v1150_v28, %s2778_s30  ;;  %1112 = vrot.lane.b32.xlu0 %v1109_v29, %s2783_s7  ;;  %v313_v28 = vmul.f32 %v312_v47, %v3024_v51  ;;  %v372_v29 = vadd.f32 %v3290_v44, %v358_v17  ;;  %v411_v44 = vrot.slane %v404_v26, 1 }
 0x17c   : > { %v3340_v37 = vpop.permute.xlu1 %474  ;;  %v3342_v38 = vpop.permute.xlu0 %455  ;;  %v386_v40 = vadd.f32 %v3301_v57, %v372_v29  ;;  %v414_v59 = vsel %vm409_vm4, %v411_v44, %v413_v45  ;;  %v1286_v29 = vmul.f32 %v1285_v11, %v3110_v8 }
 0x17e   : > { %1174 = vrot.lane.b32.xlu1 %v1171_v39, %s2779_s19  ;;  %1151 = vrot.lane.b32.xlu0 %v1148_v41, %s2778_s30  ;;  %v329_v39 = vadd.f32 %v3246_v60, %v313_v28  ;;  %v1211_v41 = vsel %vm1128_vm8, %v1209_v30, %v1210_v58  ;;  %v400_v47 = vadd.f32 %v3312_v6, %v386_v40 }
 0x17f   : > { %v1232_v58 = vsel %vm1128_vm8, %v1230_v48, %v1231_v10  ;;  %v1301_v30 = vmul.f32 %v1299_v22, %v3124_v21 }
 0x180   : > { %v3354_v53 = vpop.permute.xlu1 %495  ;;  %v3356_v54 = vpop.permute.xlu0 %476  ;;  %v343_v46 = vadd.f32 %v3255_v7, %v329_v39  ;;  %v418_v6 = vadd.f32 %v414_v59, %v400_v47  ;;  %v1327_v47 = vstv %s3441_s17  ;;  %s3547_s17 = sld [smem:[#allocation2 + $0x40]] }
 0x182   : > { %1195 = vrot.lane.b32.xlu1 %v1192_v63, %s2780_s20  ;;  %1172 = vrot.lane.b32.xlu0 %v1169_v0, %s2779_s19  ;;  %v357_v50 = vadd.f32 %v3266_v19, %v343_v46  ;;  %v403_v19 = vmul.f32 %v402_v12, %v3024_v51  ;;  %v439_v4 = vadd.f32 %v3327_v24, %v418_v6 }
 0x184   : > { %v3369_v13 = vpop.permute.xlu1 %516  ;;  %v3371_v14 = vpop.permute.xlu0 %497  ;;  %v371_v7 = vadd.f32 %v3277_v33, %v357_v50  ;;  %v410_v12 = vrot.slane %v403_v19, 1  ;;  %v460_v17 = vadd.f32 %v3342_v38, %v439_v4  ;;  %v1329_v50 = vmul.f32 %v1327_v47, %v3124_v21 }
 0x186   : > { %1216 = vrot.lane.b32.xlu1 %v1213_v18, %s2781_s5  ;;  %1193 = vrot.lane.b32.xlu0 %v1190_v25, %s2780_s20  ;;  %v385_v2 = vadd.f32 %v3288_v43, %v371_v7  ;;  %v1272_v43 = vmul.f32 %v1271_v62, %v3110_v8  ;;  %v412_v18 = vsel %vm409_vm4, %v410_v12, %v411_v44  ;;  %v546_v25 = vstv %s2430_s27  ;;  %s3487_s27 = sld [smem:[#allocation2 + $0x3c]] }
 0x187   : > { %v481_v24 = vadd.f32 %v3356_v54, %v460_v17  ;;  %v548_v26 = vmul.f32 %v546_v25, %v3030_v56  ;;  %v549_v27 = vmul.f32 %v546_v25, %v3055_v9  ;;  %v1300_v44 = vmul.f32 %v1299_v22, %v3110_v8 }
 0x188   : > { %v3387_v31 = vpop.permute.xlu1 %537  ;;  %v3389_v32 = vpop.permute.xlu0 %518  ;;  %v399_v33 = vadd.f32 %v3299_v55, %v385_v2  ;;  %v547_v46 = vmul.f32 %v546_v25, %v3024_v51  ;;  %v1343_v2 = vmul.f32 %v1341_v61, %v3124_v21  ;;  %v1342_v25 = vmul.f32 %v1341_v61, %v3110_v8 }
 0x189   : > { %v502_v54 = vadd.f32 %v3371_v14, %v481_v24  ;;  %v555_v39 = vrot.slane %v548_v26, 2  ;;  %v557_v40 = vrot.slane %v549_v27, 2  ;;  %v1315_v14 = vmul.f32 %v1313_v36, %v3124_v21 }
 0x18a   : > { %1237 = vrot.lane.b32.xlu1 %v1234_v35, %s2782_s10  ;;  %1214 = vrot.lane.b32.xlu0 %v1211_v41, %s2781_s5  ;;  %v417_v55 = vadd.f32 %v412_v18, %v399_v33  ;;  %v554_v6 = vrot.slane %v547_v46, 2  ;;  %v1393_v33 = vstv %s3463_s22  ;;  %v1414_v24 = vstv %s3473_s23  ;;  %s3586_s22 = sld [smem:[#allocation2 + $0x42]]  ;;  %s3614_s23 = sld [smem:[#allocation2 + $0x44]] }
 0x18b   : > { %v523_v35 = vadd.f32 %v3389_v32, %v502_v54  ;;  %v558_v48 = vsel %vm553_vm5, %v555_v39, %v557_v40  ;;  %v1396_v12 = vmul.f32 %v1393_v33, %v3121_v20  ;;  %v1417_v26 = vmul.f32 %v1414_v24, %v3121_v20 }
 0x18c   : > { %v3402_v60 = vpop.permute.xlu1 %576  ;;  %v540_v57 = vpop.permute.xlu0 %539  ;;  %v438_v34 = vadd.f32 %v3310_v5, %v417_v55  ;;  %v1395_v55 = vmul.f32 %v1393_v33, %v3124_v21  ;;  %v1394_v27 = vmul.f32 %v1393_v33, %v3110_v8  ;;  %v1416_v40 = vmul.f32 %v1414_v24, %v3124_v21 }
 0x18d   : > { %v544_v5 = vadd.f32 %v540_v57, %v523_v35  ;;  %v1314_v57 = vmul.f32 %v1313_v36, %v3110_v8  ;;  %v1403_v54 = vrot.slane %v1396_v12, 1 }
 0x18e   : > { %1258 = vrot.lane.b32.xlu1 %v1255_v52, %s2783_s7  ;;  %1235 = vrot.lane.b32.xlu0 %v1232_v58, %s2782_s10  ;;  %v459_v45 = vadd.f32 %v3325_v23, %v438_v34  ;;  %v1372_v52 = vstv %s2473_s29  ;;  %s3556_s29 = sld [smem:[#allocation2 + $0x41]] }
 0x18f   : > { %v1375_v59 = vmul.f32 %v1372_v52, %v3121_v20  ;;  %v1374_v62 = vmul.f32 %v1372_v52, %v3124_v21 }
 0x190   : > { %v3415_v63 = vpop.permute.xlu1 %597  ;;  %v3417_v0 = vpop.permute.xlu0 %578  ;;  %v480_v32 = vadd.f32 %v3340_v37, %v459_v45  ;;  %v562_v37 = vadd.f32 %v558_v48, %v544_v5  ;;  %v1424_v5 = vrot.slane %v1417_v26, 1 }
 0x191   : > { %v1382_v11 = vrot.slane %v1375_v59, 1  ;;  %v1380_v18 = vrot.slane %v1374_v62, 1 }
 0x192   : > { %1256 = vrot.lane.b32.xlu0 %v1253_v3, %s2783_s7  ;;  %1278 = vrot.lane.b32.xlu1 %v1273_v1, %s2778_s30  ;;  %v501_v58 = vadd.f32 %v3354_v53, %v480_v32  ;;  %v1328_v53 = vmul.f32 %v1327_v47, %v3110_v8  ;;  %v1373_v3 = vmul.f32 %v1372_v52, %v3110_v8  ;;  %v1400_v32 = vrot.slane %v1394_v27, 1 }
 0x193   : > { %v583_v4 = vadd.f32 %v3417_v0, %v562_v37 }
 0x194   : > { %v3429_v10 = vpop.permute.xlu1 %618  ;;  %v3431_v15 = vpop.permute.xlu0 %599  ;;  %v522_v7 = vadd.f32 %v3369_v13, %v501_v58  ;;  %v1379_v22 = vrot.slane %v1373_v3, 1 }
 0x195   : > { %v604_v17 = vadd.f32 %v3431_v15, %v583_v4 }
 0x196   : > { %1276 = vrot.lane.b32.xlu0 %v1272_v43, %s2778_s30  ;;  %1292 = vrot.lane.b32.xlu1 %v1287_v16, %s2779_s19  ;;  %v543_v13 = vadd.f32 %v3387_v31, %v522_v7  ;;  %v556_v43 = vsel %vm553_vm5, %v554_v6, %v555_v39  ;;  %v3500_v16 = vstv %s3468_s6  ;;  %v1401_v39 = vrot.slane %v1395_v55, 1  ;;  %s3601_s6 = sld [smem:[#allocation2 + $0x43]] }
 0x197   : > { %v3520_v34 = vmul.f32 %v3500_v16, %v3030_v56  ;;  %v693_v35 = vmul.f32 %v3500_v16, %v3055_v9  ;;  %v1381_v45 = vsel %vm409_vm4, %v1379_v22, %v1380_v18  ;;  %v1422_v7 = vrot.slane %v1416_v40, 1 }
 0x198   : > { %v3445_v28 = vpop.permute.xlu1 %639  ;;  %v3447_v38 = vpop.permute.xlu0 %620  ;;  %v1456_v6 = vstv %s3507_s8  ;;  %s3649_s8 = sld [smem:[#allocation2 + $0x23]] }
 0x199   : > { %v625_v15 = vadd.f32 %v3447_v38, %v604_v17  ;;  %v701_v52 = vrot.slane %v693_v35, 3  ;;  %v1459_v62 = vmul.f32 %v1456_v6, %v3121_v20  ;;  %v1425_v3 = vsel %vm409_vm4, %v1422_v7, %v1424_v5 }
 0x19a   : > { %1290 = vrot.lane.b32.xlu0 %v1286_v29, %s2779_s19  ;;  %1306 = vrot.lane.b32.xlu1 %v1301_v30, %s2780_s20  ;;  %v561_v29 = vadd.f32 %v556_v43, %v543_v13  ;;  %v1383_v30 = vsel %vm409_vm4, %v1380_v18, %v1382_v11  ;;  %v1458_v4 = vmul.f32 %v1456_v6, %v3124_v21  ;;  %v1477_v43 = vstv %s3528_s9  ;;  %s3652_s9 = sld [smem:[#allocation2 + $0x47]] }
 0x19b   : > { %v1480_v26 = vmul.f32 %v1477_v43, %v3121_v20  ;;  %v1478_v40 = vmul.f32 %v1477_v43, %v3110_v8 }
 0x19c   : > { %v3459_v41 = vpop.permute.xlu1 %660  ;;  %v642_v42 = vpop.permute.xlu0 %641  ;;  %v582_v47 = vadd.f32 %v3402_v60, %v561_v29  ;;  %v1464_v27 = vrot.slane %v1458_v4, 1  ;;  %v1479_v29 = vmul.f32 %v1477_v43, %v3124_v21 }
 0x19d   : > { %v646_v36 = vadd.f32 %v642_v42, %v625_v15  ;;  %v1404_v42 = vsel %vm409_vm4, %v1401_v39, %v1403_v54 }
 0x19e   : > { %1304 = vrot.lane.b32.xlu0 %v1300_v44, %s2780_s20  ;;  %1320 = vrot.lane.b32.xlu1 %v1315_v14, %s2781_s5  ;;  %v1435_v44 = vstv %s3487_s27  ;;  %v603_v37 = vadd.f32 %v3415_v63, %v582_v47  ;;  %v1402_v63 = vsel %vm409_vm4, %v1400_v32, %v1401_v39  ;;  %v1515_v39 = vstv %s3547_s17  ;;  %s3634_s27 = sld [smem:[#allocation2 + $0x45]]  ;;  %s3664_s17 = sld [smem:[#allocation2 + $0x48]] }
 0x19f   : > { %v1438_v46 = vmul.f32 %v1435_v44, %v3121_v20  ;;  %v1437_v58 = vmul.f32 %v1435_v44, %v3124_v21  ;;  %v1485_v32 = vrot.slane %v1479_v29, 1 }
 0x1a0   : > { %v3476_v49 = vpop.permute.xlu1 %681  ;;  %v663_v23 = vpop.permute.xlu0 %662 }
 0x1a1   : > { %v667_v48 = vadd.f32 %v663_v23, %v646_v36  ;;  %v1445_v61 = vrot.slane %v1438_v46, 1  ;;  %v1443_v13 = vrot.slane %v1437_v58, 1  ;;  %v1536_v46 = vstv %s3556_s29  ;;  %s3677_s29 = sld [smem:[#allocation2 + $0x49]] }
 0x1a2   : > { %1318 = vrot.lane.b32.xlu0 %v1314_v57, %s2781_s5  ;;  %1334 = vrot.lane.b32.xlu1 %v1329_v50, %s2782_s10  ;;  %v1415_v57 = vmul.f32 %v1414_v24, %v3110_v8  ;;  %v699_v50 = vrot.slane %v3520_v34, 3  ;;  %v1466_v24 = vrot.slane %v1459_v62, 1 }
 0x1a3   : > { %v1446_v55 = vsel %vm409_vm4, %v1443_v13, %v1445_v61 }
 0x1a4   : > { %v3489_v19 = vpop.permute.xlu1 %720  ;;  %v684_v1 = vpop.permute.xlu0 %683  ;;  %v702_v33 = vsel %vm697_vm6, %v699_v50, %v701_v52  ;;  %v1467_v35 = vsel %vm409_vm4, %v1464_v27, %v1466_v24  ;;  %v834_v52 = vstv %s3567_s4  ;;  %s3691_s4 = sld [smem:[#allocation2 + $0x4a]] }
 0x1a5   : > { %v688_v59 = vadd.f32 %v684_v1, %v667_v48  ;;  %v1421_v1 = vrot.slane %v1415_v57, 1  ;;  %v1539_v57 = vmul.f32 %v1536_v46, %v3121_v20  ;;  %v3607_v61 = vmul.f32 %v834_v52, %v3030_v56 }
 0x1a6   : > { %1332 = vrot.lane.b32.xlu0 %v1328_v53, %s2782_s10  ;;  %1348 = vrot.lane.b32.xlu1 %v1343_v2, %s2783_s7  ;;  %v1436_v53 = vmul.f32 %v1435_v44, %v3110_v8  ;;  %v624_v2 = vadd.f32 %v3429_v10, %v603_v37  ;;  %v691_v10 = vmul.f32 %v3500_v16, %v3024_v51  ;;  %v1484_v37 = vrot.slane %v1478_v40, 1 }
 0x1a7   : > { %v706_v12 = vadd.f32 %v702_v33, %v688_v59  ;;  %v1457_v16 = vmul.f32 %v1456_v6, %v3110_v8  ;;  %v837_v62 = vmul.f32 %v834_v52, %v3055_v9 }
 0x1a8   : > { %v3509_v31 = vpop.permute.xlu1 %741  ;;  %v3511_v0 = vpop.permute.xlu0 %722  ;;  %v645_v11 = vadd.f32 %v3445_v28, %v624_v2  ;;  %v1423_v28 = vsel %vm409_vm4, %v1421_v1, %v1422_v7  ;;  %v698_v15 = vrot.slane %v691_v10, 3  ;;  %v1537_v10 = vmul.f32 %v1536_v46, %v3110_v8 }
 0x1a9   : > { %v727_v54 = vadd.f32 %v3511_v0, %v706_v12  ;;  %v1518_v0 = vmul.f32 %v1515_v39, %v3121_v20  ;;  %v845_v24 = vrot.slane %v837_v62, 4 }
 0x1aa   : > { %1346 = vrot.lane.b32.xlu0 %v1342_v25, %s2783_s7  ;;  %1386 = vrot.lane.b32.xlu1 %v1383_v30, %s2778_s30  ;;  %v1442_v25 = vrot.slane %v1436_v53, 1  ;;  %v666_v22 = vadd.f32 %v3459_v41, %v645_v11  ;;  %v700_v5 = vsel %vm697_vm6, %v698_v15, %v699_v50  ;;  %v1516_v50 = vmul.f32 %v1515_v39, %v3110_v8 }
 0x1ab   : > { %v1525_v6 = vrot.slane %v1518_v0, 2  ;;  %v1557_v11 = vstv %s3586_s22  ;;  %v1543_v15 = vrot.slane %v1537_v10, 2  ;;  %v978_v10 = vstv %s3649_s8  ;;  %s3701_s22 = sld [smem:[#allocation2 + $0x4b]]  ;;  %s3742_s8 = sld [smem:[#allocation2 + $0x4f]] }
 0x1ac   : > { %v3530_v38 = vpop.permute.xlu1 %762  ;;  %v744_v14 = vpop.permute.xlu0 %743  ;;  %v687_v30 = vadd.f32 %v3476_v49, %v666_v22  ;;  %v1444_v36 = vsel %vm409_vm4, %v1442_v25, %v1443_v13  ;;  %v1463_v49 = vrot.slane %v1457_v16, 1  ;;  %v1486_v13 = vsel %vm409_vm4, %v1484_v37, %v1485_v32 }
 0x1ad   : > { %v748_v44 = vadd.f32 %v744_v14, %v727_v54  ;;  %v1522_v4 = vrot.slane %v1516_v50, 2  ;;  %v835_v25 = vmul.f32 %v834_v52, %v3024_v51  ;;  %v1558_v54 = vmul.f32 %v1557_v11, %v3110_v8 }
 0x1ae   : > { %1384 = vrot.lane.b32.xlu0 %v1381_v45, %s2778_s30  ;;  %1407 = vrot.lane.b32.xlu1 %v1404_v42, %s2779_s19  ;;  %v1487_v45 = vrot.slane %v1480_v26, 1  ;;  %v705_v47 = vadd.f32 %v700_v5, %v687_v30  ;;  %v1517_v42 = vmul.f32 %v1515_v39, %v3124_v21  ;;  %v1465_v7 = vsel %vm409_vm4, %v1463_v49, %v1464_v27 }
 0x1af   : > { %v1559_v26 = vmul.f32 %v1557_v11, %v3124_v21  ;;  %v1578_v30 = vstv %s3601_s6  ;;  %v842_v40 = vrot.slane %v835_v25, 4  ;;  %s3705_s6 = sld [smem:[#allocation2 + $0x2a]] }
 0x1b0   : > { %v3543_v60 = vpop.permute.xlu1 %785  ;;  %v765_v23 = vpop.permute.xlu0 %764  ;;  %v1488_v59 = vsel %vm409_vm4, %v1485_v32, %v1487_v45  ;;  %v726_v53 = vadd.f32 %v3489_v19, %v705_v47  ;;  %v1580_v49 = vmul.f32 %v1578_v30, %v3124_v21  ;;  %v1564_v32 = vrot.slane %v1558_v54, 2 }
 0x1b1   : > { %v769_v48 = vadd.f32 %v765_v23, %v748_v44  ;;  %v1538_v23 = vmul.f32 %v1536_v46, %v3124_v21  ;;  %v1565_v45 = vrot.slane %v1559_v26, 2  ;;  %v1579_v47 = vmul.f32 %v1578_v30, %v3110_v8 }
 0x1b2   : > { %1428 = vrot.lane.b32.xlu1 %v1425_v3, %s2780_s20  ;;  %1405 = vrot.lane.b32.xlu0 %v1402_v63, %s2779_s19  ;;  %v1523_v3 = vrot.slane %v1517_v42, 2  ;;  %v1546_v63 = vrot.slane %v1539_v57, 2  ;;  %v747_v12 = vadd.f32 %v3509_v31, %v726_v53  ;;  %v1586_v50 = vrot.slane %v1580_v49, 2 }
 0x1b3   : > { %v790_v2 = vadd.f32 %v3543_v60, %v769_v48  ;;  %v1544_v43 = vrot.slane %v1538_v23, 2  ;;  %v1560_v60 = vmul.f32 %v1557_v11, %v3121_v20  ;;  %v1585_v23 = vrot.slane %v1579_v47, 2 }
 0x1b4   : > { %v3562_v17 = vpop.permute.xlu1 %806  ;;  %v3564_v18 = vpop.permute.xlu0 %783  ;;  %v1526_v19 = vsel %vm553_vm5, %v1523_v3, %v1525_v6  ;;  %v768_v22 = vadd.f32 %v3530_v38, %v747_v12  ;;  %v1524_v29 = vsel %vm553_vm5, %v1522_v4, %v1523_v3  ;;  %v1658_v12 = vstv %s3652_s9  ;;  %s3750_s9 = sld [smem:[#allocation2 + $0x50]] }
 0x1b5   : > { %v1547_v31 = vsel %vm553_vm5, %v1544_v43, %v1546_v63  ;;  %v1545_v5 = vsel %vm553_vm5, %v1543_v15, %v1544_v43  ;;  %v1566_v63 = vsel %vm553_vm5, %v1564_v32, %v1565_v45  ;;  %v981_v26 = vmul.f32 %v978_v10, %v3055_v9 }
 0x1b6   : > { %1449 = vrot.lane.b32.xlu1 %v1446_v55, %s2781_s5  ;;  %1426 = vrot.lane.b32.xlu0 %v1423_v28, %s2780_s20  ;;  %v843_v55 = vrot.slane %v3607_v61, 4  ;;  %v811_v28 = vadd.f32 %v3562_v17, %v790_v2  ;;  %v789_v38 = vadd.f32 %v3564_v18, %v768_v22  ;;  %v1599_v18 = vstv %s3614_s23  ;;  %s3715_s23 = sld [smem:[#allocation2 + $0x4c]] }
 0x1b7   : > { %v1602_v46 = vmul.f32 %v1599_v18, %v3121_v20  ;;  %v1601_v52 = vmul.f32 %v1599_v18, %v3124_v21  ;;  %v1600_v62 = vmul.f32 %v1599_v18, %v3110_v8  ;;  %v1660_v15 = vmul.f32 %v1658_v12, %v3124_v21 }
 0x1b8   : > { %v3578_v41 = vpop.permute.xlu1 %827  ;;  %v3580_v34 = vpop.permute.xlu0 %804  ;;  %v846_v39 = vsel %vm841_vm7, %v843_v55, %v845_v24  ;;  %v844_v37 = vsel %vm841_vm7, %v842_v40, %v843_v55  ;;  %v988_v18 = vrot.slane %v981_v26, 5  ;;  %v1700_v47 = vstv %s3677_s29  ;;  %s3772_s29 = sld [smem:[#allocation2 + $0x52]] }
 0x1b9   : > { %v832_v17 = vadd.f32 %v3578_v41, %v811_v28  ;;  %v810_v44 = vadd.f32 %v3580_v34, %v789_v38  ;;  %v1606_v24 = vrot.slane %v1600_v62, 2  ;;  %v1661_v28 = vmul.f32 %v1658_v12, %v3121_v20 }
 0x1ba   : > { %1470 = vrot.lane.b32.xlu1 %v1467_v35, %s2782_s10  ;;  %1447 = vrot.lane.b32.xlu0 %v1444_v36, %s2781_s5  ;;  %v1567_v35 = vrot.slane %v1560_v60, 2  ;;  %v1581_v36 = vmul.f32 %v1578_v30, %v3121_v20  ;;  %v1587_v60 = vsel %vm553_vm5, %v1585_v23, %v1586_v50  ;;  %v1121_v26 = vstv %s3705_s6  ;;  %s3794_s6 = sld [smem:[#allocation2 + $0x55]] }
 0x1bb   : > { %v850_v48 = vadd.f32 %v846_v39, %v832_v17  ;;  %v1659_v39 = vmul.f32 %v1658_v12, %v3110_v8 }
 0x1bc   : > { %v3596_v14 = vpop.permute.xlu1 %866  ;;  %v3598_v58 = vpop.permute.xlu0 %825  ;;  %v1568_v42 = vsel %vm553_vm5, %v1565_v45, %v1567_v35  ;;  %v1588_v57 = vrot.slane %v1581_v36, 2  ;;  %v1668_v45 = vrot.slane %v1661_v28, 3 }
 0x1bd   : > { %v831_v34 = vadd.f32 %v3598_v58, %v810_v44  ;;  %v1609_v58 = vrot.slane %v1602_v46, 2  ;;  %v871_v53 = vadd.f32 %v3596_v14, %v850_v48  ;;  %v979_v48 = vmul.f32 %v978_v10, %v3024_v51 }
 0x1be   : > { %1491 = vrot.lane.b32.xlu1 %v1488_v59, %s2783_s7  ;;  %1468 = vrot.lane.b32.xlu0 %v1465_v7, %s2782_s10  ;;  %v1620_v59 = vstv %s3634_s27  ;;  %v1589_v3 = vsel %vm553_vm5, %v1586_v50, %v1588_v57  ;;  %v1665_v57 = vrot.slane %v1659_v39, 3  ;;  %s3726_s27 = sld [smem:[#allocation2 + $0x4e]] }
 0x1bf   : > { %v1623_v61 = vmul.f32 %v1620_v59, %v3121_v20  ;;  %v849_v2 = vadd.f32 %v844_v37, %v831_v34  ;;  %v1622_v4 = vmul.f32 %v1620_v59, %v3124_v21 }
 0x1c0   : > { %v3616_v1 = vpop.permute.xlu1 %887  ;;  %v3618_v33 = vpop.permute.xlu0 %864 }
 0x1c1   : > { %v892_v11 = vadd.f32 %v3616_v1, %v871_v53  ;;  %v1630_v55 = vrot.slane %v1623_v61, 2  ;;  %v870_v25 = vadd.f32 %v3618_v33, %v849_v2  ;;  %v1621_v1 = vmul.f32 %v1620_v59, %v3110_v8 }
 0x1c2   : > { %1529 = vrot.lane.b32.xlu1 %v1526_v19, %s2778_s30  ;;  %1489 = vrot.lane.b32.xlu0 %v1486_v13, %s2783_s7  ;;  %v1607_v13 = vrot.slane %v1601_v52, 2  ;;  %v1679_v33 = vstv %s3664_s17  ;;  %v1703_v52 = vmul.f32 %v1700_v47, %v3121_v20  ;;  %v1721_v53 = vstv %s3691_s4  ;;  %s3760_s17 = sld [smem:[#allocation2 + $0x51]]  ;;  %s3785_s4 = sld [smem:[#allocation2 + $0x53]] }
 0x1c3   : > { %v1682_v36 = vmul.f32 %v1679_v33, %v3121_v20  ;;  %v1627_v49 = vrot.slane %v1621_v1, 2  ;;  %v1681_v46 = vmul.f32 %v1679_v33, %v3124_v21  ;;  %v985_v2 = vrot.slane %v979_v48, 5 }
 0x1c4   : > { %v909_v16 = vpop.permute.xlu1 %908  ;;  %v3636_v27 = vpop.permute.xlu0 %885  ;;  %v1610_v43 = vsel %vm553_vm5, %v1607_v13, %v1609_v58  ;;  %v1608_v35 = vsel %vm553_vm5, %v1606_v24, %v1607_v13  ;;  %v1702_v58 = vmul.f32 %v1700_v47, %v3124_v21  ;;  %v1710_v13 = vrot.slane %v1703_v52, 3 }
 0x1c5   : > { %v913_v22 = vadd.f32 %v909_v16, %v892_v11  ;;  %v891_v30 = vadd.f32 %v3636_v27, %v870_v25  ;;  %v1687_v62 = vrot.slane %v1681_v46, 3  ;;  %v1742_v25 = vstv %s3701_s22  ;;  %s3791_s22 = sld [smem:[#allocation2 + $0x31]] }
 0x1c6   : > { %1550 = vrot.lane.b32.xlu1 %v1547_v31, %s2779_s19  ;;  %1527 = vrot.lane.b32.xlu0 %v1524_v29, %s2778_s30  ;;  %v980_v31 = vmul.f32 %v978_v10, %v3030_v56  ;;  %v1628_v29 = vrot.slane %v1622_v4, 2  ;;  %v1724_v4 = vmul.f32 %v1721_v53, %v3121_v20  ;;  %v1801_v52 = vstv %s3726_s27  ;;  %s3813_s27 = sld [smem:[#allocation2 + $0x57]] }
 0x1c8   : > { %v930_v41 = vpop.permute.xlu1 %929  ;;  %v907_v0 = vpop.permute.xlu0 %906  ;;  %v1631_v17 = vsel %vm553_vm5, %v1628_v29, %v1630_v55  ;;  %v986_v27 = vrot.slane %v980_v31, 5  ;;  %v1629_v59 = vsel %vm553_vm5, %v1627_v49, %v1628_v29  ;;  %v1731_v31 = vrot.slane %v1724_v4, 3 }
 0x1c9   : > { %v934_v54 = vadd.f32 %v930_v41, %v913_v22  ;;  %v912_v40 = vadd.f32 %v907_v0, %v891_v30  ;;  %v1666_v41 = vrot.slane %v1660_v15, 3  ;;  %v1745_v29 = vmul.f32 %v1742_v25, %v3121_v20 }
 0x1ca   : > { %1571 = vrot.lane.b32.xlu1 %v1568_v42, %s2780_s20  ;;  %1548 = vrot.lane.b32.xlu0 %v1545_v5, %s2779_s19  ;;  %v1689_v42 = vrot.slane %v1682_v36, 3 }
 0x1cb   : > { %v1669_v50 = vsel %vm697_vm6, %v1666_v41, %v1668_v45  ;;  %v1667_v10 = vsel %vm697_vm6, %v1665_v57, %v1666_v41  ;;  %v1743_v41 = vmul.f32 %v1742_v25, %v3110_v8  ;;  %v1122_v57 = vmul.f32 %v1121_v26, %v3024_v51 }
 0x1cc   : > { %v951_v7 = vpop.permute.xlu1 %950  ;;  %v928_v6 = vpop.permute.xlu0 %927  ;;  %v1690_v11 = vsel %vm697_vm6, %v1687_v62, %v1689_v42 }
 0x1cd   : > { %v955_v44 = vadd.f32 %v951_v7, %v934_v54  ;;  %v933_v5 = vadd.f32 %v928_v6, %v912_v40  ;;  %v1680_v7 = vmul.f32 %v1679_v33, %v3110_v8  ;;  %v989_v6 = vsel %vm258_vm1, %v986_v27, %v988_v18 }
 0x1ce   : > { %1592 = vrot.lane.b32.xlu1 %v1589_v3, %s2781_s5  ;;  %1569 = vrot.lane.b32.xlu0 %v1566_v63, %s2780_s20  ;;  %v1722_v33 = vmul.f32 %v1721_v53, %v3110_v8  ;;  %v1763_v40 = vstv %s3715_s23  ;;  %v1129_v4 = vrot.slane %v1122_v57, 6  ;;  %s3804_s23 = sld [smem:[#allocation2 + $0x56]] }
 0x1cf   : > { %v1686_v12 = vrot.slane %v1680_v7, 3  ;;  %v1766_v18 = vmul.f32 %v1763_v40, %v3121_v20 }
 0x1d0   : > { %v972_v19 = vpop.permute.xlu1 %971  ;;  %v949_v14 = vpop.permute.xlu0 %948 }
 0x1d1   : > { %v976_v32 = vadd.f32 %v972_v19, %v955_v44  ;;  %v954_v37 = vadd.f32 %v949_v14, %v933_v5  ;;  %v1701_v19 = vmul.f32 %v1700_v47, %v3110_v8  ;;  %v987_v14 = vsel %vm258_vm1, %v985_v2, %v986_v27 }
 0x1d2   : > { %1613 = vrot.lane.b32.xlu1 %v1610_v43, %s2782_s10  ;;  %1590 = vrot.lane.b32.xlu0 %v1587_v60, %s2781_s5  ;;  %v1708_v43 = vrot.slane %v1702_v58, 3  ;;  %v1723_v60 = vmul.f32 %v1721_v53, %v3124_v21  ;;  %v1688_v30 = vsel %vm697_vm6, %v1686_v12, %v1687_v62  ;;  %v1752_v27 = vrot.slane %v1745_v29, 3 }
 0x1d3   : > { %v993_v23 = vadd.f32 %v989_v6, %v976_v32  ;;  %v1707_v54 = vrot.slane %v1701_v19, 3  ;;  %v1728_v32 = vrot.slane %v1722_v33, 3  ;;  %v1773_v7 = vrot.slane %v1766_v18, 3 }
 0x1d4   : > { %v1010_v16 = vpop.permute.xlu1 %1009  ;;  %v970_v38 = vpop.permute.xlu0 %969  ;;  %v1711_v1 = vsel %vm697_vm6, %v1708_v43, %v1710_v13  ;;  %v1749_v6 = vrot.slane %v1743_v41, 3  ;;  %v1764_v58 = vmul.f32 %v1763_v40, %v3110_v8  ;;  %v1804_v53 = vmul.f32 %v1801_v52, %v3121_v20 }
 0x1d5   : > { %v975_v61 = vadd.f32 %v970_v38, %v954_v37  ;;  %v1014_v55 = vadd.f32 %v1010_v16, %v993_v23  ;;  %v1729_v16 = vrot.slane %v1723_v60, 3  ;;  %v1123_v38 = vmul.f32 %v1121_v26, %v3030_v56 }
 0x1d6   : > { %1634 = vrot.lane.b32.xlu1 %v1631_v17, %s2783_s7  ;;  %1611 = vrot.lane.b32.xlu0 %v1608_v35, %s2782_s10  ;;  %v1124_v17 = vmul.f32 %v1121_v26, %v3055_v9  ;;  %v1744_v35 = vmul.f32 %v1742_v25, %v3124_v21  ;;  %v1709_v9 = vsel %vm697_vm6, %v1707_v54, %v1708_v43  ;;  %v1770_v19 = vrot.slane %v1764_v58, 3 }
 0x1d7   : > { %v992_v24 = vadd.f32 %v987_v14, %v975_v61  ;;  %v1732_v49 = vsel %vm697_vm6, %v1729_v16, %v1731_v31  ;;  %v1130_v46 = vrot.slane %v1123_v38, 6  ;;  %v1730_v62 = vsel %vm697_vm6, %v1728_v32, %v1729_v16 }
 0x1d8   : > { %v1031_v0 = vpop.permute.xlu1 %1030  ;;  %v1008_v34 = vpop.permute.xlu0 %1007  ;;  %v1132_v47 = vrot.slane %v1124_v17, 6  ;;  %v1750_v48 = vrot.slane %v1744_v35, 3  ;;  %v1822_v14 = vstv %s3742_s8  ;;  %v1802_v43 = vmul.f32 %v1801_v52, %v3110_v8  ;;  %s3827_s8 = sld [smem:[#allocation2 + $0x58]] }
 0x1d9   : > { %v1035_v15 = vadd.f32 %v1031_v0, %v1014_v55  ;;  %v1013_v36 = vadd.f32 %v1008_v34, %v992_v24  ;;  %v1765_v0 = vmul.f32 %v1763_v40, %v3124_v21  ;;  %v1811_v24 = vrot.slane %v1804_v53, 4 }
 0x1da   : > { %1672 = vrot.lane.b32.xlu1 %v1669_v50, %s2778_s30  ;;  %1632 = vrot.lane.b32.xlu0 %v1629_v59, %s2783_s7  ;;  %v1753_v59 = vsel %vm697_vm6, %v1750_v48, %v1752_v27  ;;  %v1133_v51 = vsel %vm1128_vm8, %v1130_v46, %v1132_v47  ;;  %v1751_v55 = vsel %vm697_vm6, %v1749_v6, %v1750_v48  ;;  %v1843_v29 = vstv %s3750_s9  ;;  %s2505_s9 = sld [smem:[#allocation2 + $0x59]] }
 0x1db   : > { %v1771_v2 = vrot.slane %v1765_v0, 3  ;;  %v1825_v25 = vmul.f32 %v1822_v14, %v3121_v20  ;;  %v1824_v26 = vmul.f32 %v1822_v14, %v3124_v21  ;;  %v1808_v33 = vrot.slane %v1802_v43, 4 }
 0x1dc   : > { %v1052_v3 = vpop.permute.xlu1 %1051  ;;  %v1029_v63 = vpop.permute.xlu0 %1028  ;;  %v1846_v16 = vmul.f32 %v1843_v29, %v3121_v20 }
 0x1dd   : > { %v1056_v39 = vadd.f32 %v1052_v3, %v1035_v15  ;;  %v1034_v56 = vadd.f32 %v1029_v63, %v1013_v36  ;;  %v1803_v3 = vmul.f32 %v1801_v52, %v3124_v21  ;;  %v1774_v12 = vsel %vm697_vm6, %v1771_v2, %v1773_v7 }
 0x1de   : > { %1693 = vrot.lane.b32.xlu1 %v1690_v11, %s2779_s19  ;;  %1670 = vrot.lane.b32.xlu0 %v1667_v10, %s2778_s30  ;;  %v1772_v54 = vsel %vm697_vm6, %v1770_v19, %v1771_v2  ;;  %v1832_v35 = vrot.slane %v1825_v25, 4  ;;  %v1823_v36 = vmul.f32 %v1822_v14, %v3110_v8  ;;  %v1265_v14 = vstv %s3791_s22  ;;  %s2510_s22 = sld [smem:[#allocation2 + $0x5e]] }
 0x1e0   : > { %v1073_v22 = vpop.permute.xlu1 %1072  ;;  %v1050_v28 = vpop.permute.xlu0 %1049  ;;  %v1829_v47 = vrot.slane %v1823_v36, 4 }
 0x1e1   : > { %v1077_v5 = vadd.f32 %v1073_v22, %v1056_v39  ;;  %v1055_v34 = vadd.f32 %v1050_v28, %v1034_v56  ;;  %v1131_v22 = vsel %vm1128_vm8, %v1129_v4, %v1130_v46  ;;  %v1809_v28 = vrot.slane %v1803_v3, 4 }
 0x1e2   : > { %1714 = vrot.lane.b32.xlu1 %v1711_v1, %s2780_s20  ;;  %1691 = vrot.lane.b32.xlu0 %v1688_v30, %s2779_s19  ;;  %v1845_v39 = vmul.f32 %v1843_v29, %v3124_v21  ;;  %v1853_v56 = vrot.slane %v1846_v16, 4  ;;  %v1906_v4 = vstv %s3785_s4  ;;  %s2509_s4 = sld [smem:[#allocation2 + $0x5d]] }
 0x1e3   : > { %v1812_v17 = vsel %vm841_vm7, %v1809_v28, %v1811_v24  ;;  %v1810_v41 = vsel %vm841_vm7, %v1808_v33, %v1809_v28  ;;  %v1944_v24 = vstv %s3794_s6  ;;  %s2511_s6 = sld [smem:[#allocation2 + $0x5f]] }
 0x1e4   : > { %v1094_v44 = vpop.permute.xlu1 %1093  ;;  %v1071_v45 = vpop.permute.xlu0 %1070  ;;  %v1851_v0 = vrot.slane %v1845_v39, 4  ;;  %v1946_v33 = vmul.f32 %v1944_v24, %v3124_v21 }
 0x1e5   : > { %v1098_v42 = vadd.f32 %v1094_v44, %v1077_v5  ;;  %v1076_v23 = vadd.f32 %v1071_v45, %v1055_v34  ;;  %v1830_v44 = vrot.slane %v1824_v26, 4  ;;  %v1864_v45 = vstv %s3760_s17  ;;  %s2506_s17 = sld [smem:[#allocation2 + $0x5a]] }
 0x1e6   : > { %1735 = vrot.lane.b32.xlu1 %v1732_v49, %s2781_s5  ;;  %1712 = vrot.lane.b32.xlu0 %v1709_v9, %s2780_s20  ;;  %v1844_v49 = vmul.f32 %v1843_v29, %v3110_v8  ;;  %v1867_v5 = vmul.f32 %v1864_v45, %v3121_v20  ;;  %v1866_v48 = vmul.f32 %v1864_v45, %v3124_v21 }
 0x1e7   : > { %v1833_v46 = vsel %vm841_vm7, %v1830_v44, %v1832_v35  ;;  %v1854_v58 = vsel %vm841_vm7, %v1851_v0, %v1853_v56  ;;  %v1907_v26 = vmul.f32 %v1906_v4, %v3110_v8  ;;  %v1965_v35 = vstv %s3804_s23  ;;  %s2512_s23 = sld [smem:[#allocation2 + $0x60]] }
 0x1e8   : > { %v1115_v37 = vpop.permute.xlu1 %1114  ;;  %v1092_v50 = vpop.permute.xlu0 %1091  ;;  %v1850_v34 = vrot.slane %v1844_v49, 4  ;;  %v1945_v49 = vmul.f32 %v1944_v24, %v3110_v8 }
 0x1e9   : > { %v1119_v61 = vadd.f32 %v1115_v37, %v1098_v42  ;;  %v1097_v13 = vadd.f32 %v1092_v50, %v1076_v23  ;;  %v1885_v42 = vstv %s3772_s29  ;;  %v1874_v37 = vrot.slane %v1867_v5, 4  ;;  %s2508_s29 = sld [smem:[#allocation2 + $0x5c]] }
 0x1ea   : > { %1756 = vrot.lane.b32.xlu1 %v1753_v59, %s2782_s10  ;;  %1733 = vrot.lane.b32.xlu0 %v1730_v62, %s2781_s5  ;;  %v1888_v50 = vmul.f32 %v1885_v42, %v3121_v20  ;;  %v1865_v59 = vmul.f32 %v1864_v45, %v3110_v8  ;;  %v1831_v23 = vsel %vm841_vm7, %v1829_v47, %v1830_v44  ;;  %v1913_v44 = vrot.slane %v1907_v26, 4 }
 0x1eb   : > { %v1137_v63 = vadd.f32 %v1133_v51, %v1119_v61  ;;  %v1872_v61 = vrot.slane %v1866_v48, 4  ;;  %v1887_v62 = vmul.f32 %v1885_v42, %v3124_v21  ;;  %v1852_v53 = vsel %vm841_vm7, %v1850_v34, %v1851_v0 }
 0x1ec   : > { %v1154_v11 = vpop.permute.xlu1 %1153  ;;  %v1113_v10 = vpop.permute.xlu0 %1112  ;;  %v1886_v19 = vmul.f32 %v1885_v42, %v3110_v8  ;;  %v1968_v45 = vmul.f32 %v1965_v35, %v3121_v20  ;;  %v1952_v5 = vrot.slane %v1946_v33, 5  ;;  %v2049_v33 = vstv %s2506_s17 }
 0x1ed   : > { %v1118_v60 = vadd.f32 %v1113_v10, %v1097_v13  ;;  %v1158_v1 = vadd.f32 %v1154_v11, %v1137_v63  ;;  %v1875_v3 = vsel %vm841_vm7, %v1872_v61, %v1874_v37  ;;  %v1895_v63 = vrot.slane %v1888_v50, 4 }
 0x1ee   : > { %1777 = vrot.lane.b32.xlu1 %v1774_v12, %s2783_s7  ;;  %1754 = vrot.lane.b32.xlu0 %v1751_v55, %s2782_s10  ;;  %v1871_v13 = vrot.slane %v1865_v59, 4  ;;  %v1909_v12 = vmul.f32 %v1906_v4, %v3121_v20  ;;  %v1893_v43 = vrot.slane %v1887_v62, 4  ;;  %v1908_v55 = vmul.f32 %v1906_v4, %v3124_v21 }
 0x1ef   : > { %v1136_v31 = vadd.f32 %v1131_v22, %v1118_v60  ;;  %v1267_v60 = vmul.f32 %v1265_v14, %v3124_v21 }
 0x1f0   : > { %v1175_v15 = vpop.permute.xlu1 %1174  ;;  %v1152_v30 = vpop.permute.xlu0 %1151  ;;  %v1896_v28 = vsel %vm841_vm7, %v1893_v43, %v1895_v63 }
 0x1f1   : > { %v1179_v38 = vadd.f32 %v1175_v15, %v1158_v1  ;;  %v1157_v40 = vadd.f32 %v1152_v30, %v1136_v31  ;;  %v1873_v1 = vsel %vm841_vm7, %v1871_v13, %v1872_v61  ;;  %v1947_v31 = vmul.f32 %v1944_v24, %v3121_v20 }
 0x1f2   : > { %1815 = vrot.lane.b32.xlu1 %v1812_v17, %s2778_s30  ;;  %1775 = vrot.lane.b32.xlu0 %v1772_v54, %s2783_s7  ;;  %v1916_v30 = vrot.slane %v1909_v12, 4  ;;  %v1892_v54 = vrot.slane %v1886_v19, 4  ;;  %v1914_v17 = vrot.slane %v1908_v55, 4  ;;  %v2028_v55 = vstv %s2505_s9 }
 0x1f3   : > { %v2030_v26 = vmul.f32 %v2028_v55, %v3124_v21 }
 0x1f4   : > { %v1196_v27 = vpop.permute.xlu1 %1195  ;;  %v1173_v18 = vpop.permute.xlu0 %1172  ;;  %v1894_v56 = vsel %vm841_vm7, %v1892_v54, %v1893_v43  ;;  %v1915_v42 = vsel %vm841_vm7, %v1913_v44, %v1914_v17 }
 0x1f5   : > { %v1200_v9 = vadd.f32 %v1196_v27, %v1179_v38  ;;  %v1178_v32 = vadd.f32 %v1173_v18, %v1157_v40  ;;  %v1266_v38 = vmul.f32 %v1265_v14, %v3110_v8  ;;  %v1954_v40 = vrot.slane %v1947_v31, 5 }
 0x1f6   : > { %1836 = vrot.lane.b32.xlu1 %v1833_v46, %s2779_s19  ;;  %1813 = vrot.lane.b32.xlu0 %v1810_v41, %s2778_s30  ;;  %v1917_v41 = vsel %vm841_vm7, %v1914_v17, %v1916_v30 }
 0x1f7   : > { %v1955_v34 = vsel %vm258_vm1, %v1952_v5, %v1954_v40  ;;  %v2051_v40 = vmul.f32 %v2049_v33, %v3124_v21 }
 0x1f8   : > { %v1217_v57 = vpop.permute.xlu1 %1216  ;;  %v1194_v52 = vpop.permute.xlu0 %1193 }
 0x1f9   : > { %v1221_v7 = vadd.f32 %v1217_v57, %v1200_v9  ;;  %v1199_v6 = vadd.f32 %v1194_v52, %v1178_v32  ;;  %v1967_v9 = vmul.f32 %v1965_v35, %v3124_v21  ;;  %v1986_v32 = vstv %s3813_s27  ;;  %s2513_s27 = sld [smem:[#allocation2 + $0x61]] }
 0x1fa   : > { %1857 = vrot.lane.b32.xlu1 %v1854_v58, %s2780_s20  ;;  %1834 = vrot.lane.b32.xlu0 %v1831_v23, %s2779_s19  ;;  %v1989_v47 = vmul.f32 %v1986_v32, %v3121_v20  ;;  %v1975_v57 = vrot.slane %v1968_v45, 5  ;;  %v1951_v52 = vrot.slane %v1945_v49, 5  ;;  %v1988_v59 = vmul.f32 %v1986_v32, %v3124_v21 }
 0x1fb   : > { %v2007_v23 = vstv %s3827_s8 }
 0x1fc   : > { %v1238_v51 = vpop.permute.xlu1 %1237  ;;  %v1215_v2 = vpop.permute.xlu0 %1214  ;;  %v1996_v58 = vrot.slane %v1989_v47, 5  ;;  %v1994_v4 = vrot.slane %v1988_v59, 5  ;;  %v2008_v24 = vmul.f32 %v2007_v23, %v3110_v8 }
 0x1fd   : > { %v1242_v11 = vadd.f32 %v1238_v51, %v1221_v7  ;;  %v1220_v10 = vadd.f32 %v1215_v2, %v1199_v6  ;;  %v1966_v7 = vmul.f32 %v1965_v35, %v3110_v8  ;;  %v1973_v6 = vrot.slane %v1967_v9, 5 }
 0x1fe   : > { %1878 = vrot.lane.b32.xlu1 %v1875_v3, %s2781_s5  ;;  %1855 = vrot.lane.b32.xlu0 %v1852_v53, %s2780_s20  ;;  %v1953_v51 = vsel %vm258_vm1, %v1951_v52, %v1952_v5  ;;  %v2010_v2 = vmul.f32 %v2007_v23, %v3121_v20  ;;  %v1987_v3 = vmul.f32 %v1986_v32, %v3110_v8  ;;  %v2014_v54 = vrot.slane %v2008_v24, 5 }
 0x1ff   : > { %v1976_v53 = vsel %vm258_vm1, %v1973_v6, %v1975_v57  ;;  %v1997_v12 = vsel %vm258_vm1, %v1994_v4, %v1996_v58  ;;  %v2050_v9 = vmul.f32 %v2049_v33, %v3110_v8  ;;  %v2057_v32 = vrot.slane %v2051_v40, 5 }
 0x200   : > { %v1259_v25 = vpop.permute.xlu1 %1258  ;;  %v1236_v22 = vpop.permute.xlu0 %1235  ;;  %v2017_v43 = vrot.slane %v2010_v2, 5 }
 0x201   : > { %v1263_v29 = vadd.f32 %v1259_v25, %v1242_v11  ;;  %v1241_v15 = vadd.f32 %v1236_v22, %v1220_v10  ;;  %v1972_v11 = vrot.slane %v1966_v7, 5  ;;  %v2009_v10 = vmul.f32 %v2007_v23, %v3124_v21 }
 0x202   : > { %1899 = vrot.lane.b32.xlu1 %v1896_v28, %s2782_s10  ;;  %1876 = vrot.lane.b32.xlu0 %v1873_v1, %s2781_s5  ;;  %v2031_v1 = vmul.f32 %v2028_v55, %v3121_v20 }
 0x203   : > { %v1269_v16 = vadd.f32 %v1267_v60, %v1263_v29  ;;  %v1993_v60 = vrot.slane %v1987_v3, 5  ;;  %v1974_v28 = vsel %vm258_vm1, %v1972_v11, %v1973_v6  ;;  %v2015_v31 = vrot.slane %v2009_v10, 5 }
 0x204   : > { %v1279_v36 = vpop.permute.xlu1 %1278  ;;  %v1257_v39 = vpop.permute.xlu0 %1256  ;;  %v2038_v35 = vrot.slane %v2031_v1, 5 }
 0x205   : > { %v1283_v27 = vadd.f32 %v1279_v36, %v1269_v16  ;;  %v1262_v18 = vadd.f32 %v1257_v39, %v1241_v15  ;;  %v2018_v30 = vsel %vm258_vm1, %v2015_v31, %v2017_v43  ;;  %v2029_v16 = vmul.f32 %v2028_v55, %v3110_v8 }
 0x206   : > { %1920 = vrot.lane.b32.xlu1 %v1917_v41, %s2783_s7  ;;  %1897 = vrot.lane.b32.xlu0 %v1894_v56, %s2782_s10  ;;  %v1995_v17 = vsel %vm258_vm1, %v1993_v60, %v1994_v4  ;;  %v2052_v36 = vmul.f32 %v2049_v33, %v3121_v20  ;;  %v2036_v39 = vrot.slane %v2030_v26, 5  ;;  %v2016_v49 = vsel %vm258_vm1, %v2014_v54, %v2015_v31 }
 0x207   : > { %v1268_v46 = vadd.f32 %v1266_v38, %v1262_v18  ;;  %v2087_v18 = vstv %s2508_s29  ;;  %v2150_v4 = vstv %s2511_s6  ;;  %s2522_s6 = sshll.u32 %s2828_s16, 10 }
 0x208   : > { %v1293_v48 = vpop.permute.xlu1 %1292  ;;  %v1277_v0 = vpop.permute.xlu0 %1276  ;;  %v2039_v41 = vsel %vm258_vm1, %v2036_v39, %v2038_v35  ;;  %v2059_v56 = vrot.slane %v2052_v36, 5  ;;  %v2090_v5 = vmul.f32 %v2087_v18, %v3121_v20  ;;  %v2152_v24 = vmul.f32 %v2150_v4, %v3124_v21  ;;  %s4017_s16 = scalar_lea.hbm %s4078_s3, %s2522_s6 }
 0x209   : > { %v1297_v37 = vadd.f32 %v1293_v48, %v1283_v27  ;;  %v1282_v50 = vadd.f32 %v1277_v0, %v1268_v46  ;;  %v2035_v27 = vrot.slane %v2029_v16, 5  ;;  %v2089_v46 = vmul.f32 %v2087_v18, %v3124_v21 }
 0x20a   : > { %1958 = vrot.lane.b32.xlu1 %v1955_v34, %s2778_s30  ;;  %1918 = vrot.lane.b32.xlu0 %v1915_v42, %s2783_s7  ;;  %v2108_v34 = vstv %s2509_s4  ;;  %v2088_v42 = vmul.f32 %v2087_v18, %v3110_v8  ;;  %v2060_v57 = vsel %vm258_vm1, %v2057_v32, %v2059_v56  ;;  %v2097_v52 = vrot.slane %v2090_v5, 6 }
 0x20b   : > { %v2037_v0 = vsel %vm258_vm1, %v2035_v27, %v2036_v39  ;;  %v2095_v59 = vrot.slane %v2089_v46, 6  ;;  %v2110_v7 = vmul.f32 %v2108_v34, %v3124_v21  ;;  %v2151_v16 = vmul.f32 %v2150_v4, %v3110_v8 }
 0x20c   : > { %v1307_v61 = vpop.permute.xlu1 %1306  ;;  %v1291_v62 = vpop.permute.xlu0 %1290  ;;  %v2094_v23 = vrot.slane %v2088_v42, 6  ;;  %v2192_v27 = vstv %s2513_s27 }
 0x20d   : > { %v1311_v63 = vadd.f32 %v1307_v61, %v1297_v37  ;;  %v1296_v13 = vadd.f32 %v1291_v62, %v1282_v50  ;;  %v2056_v37 = vrot.slane %v2050_v9, 5  ;;  %v2111_v50 = vmul.f32 %v2108_v34, %v3121_v20 }
 0x20e   : > { %1979 = vrot.lane.b32.xlu1 %v1976_v53, %s2779_s19  ;;  %1956 = vrot.lane.b32.xlu0 %v1953_v51, %s2778_s30  ;;  %v2129_v61 = vstv %s2510_s22  ;;  %v2109_v62 = vmul.f32 %v2108_v34, %v3110_v8  ;;  %v2098_v53 = vsel %vm1128_vm8, %v2095_v59, %v2097_v52  ;;  %v2195_v56 = vmul.f32 %v2192_v27, %v3121_v20 }
 0x20f   : > { %v2058_v51 = vsel %vm258_vm1, %v2056_v37, %v2057_v32  ;;  %v2118_v2 = vrot.slane %v2111_v50, 6  ;;  %v2132_v3 = vmul.f32 %v2129_v61, %v3121_v20  ;;  %v2130_v55 = vmul.f32 %v2129_v61, %v3110_v8 }
 0x210   : > { %v1321_v19 = vpop.permute.xlu1 %1320  ;;  %v1305_v14 = vpop.permute.xlu0 %1304  ;;  %v2115_v60 = vrot.slane %v2109_v62, 6  ;;  %v2194_v32 = vmul.f32 %v2192_v27, %v3124_v21  ;;  %v2193_v37 = vmul.f32 %v2192_v27, %v3110_v8 }
 0x211   : > { %v3854_v25 = vadd.f32 %v1321_v19, %v1311_v63  ;;  %v1310_v22 = vadd.f32 %v1305_v14, %v1296_v13  ;;  %v2116_v63 = vrot.slane %v2110_v7, 6  ;;  %v2131_v13 = vmul.f32 %v2129_v61, %v3124_v21 }
 0x212   : > { %2000 = vrot.lane.b32.xlu1 %v1997_v12, %s2780_s20  ;;  %1977 = vrot.lane.b32.xlu0 %v1974_v28, %s2779_s19  ;;  %v2096_v12 = vsel %vm1128_vm8, %v2094_v23, %v2095_v59  ;;  %v2153_v19 = vmul.f32 %v2150_v4, %v3121_v20  ;;  %v2139_v43 = vrot.slane %v2132_v3, 6  ;;  %v2171_v28 = vstv %s2512_s23  ;;  %s215_s23 = scalar_lea.vmem [#allocation9], %s2415_s26  ;;  %s2294_s26 = scalar_lea.sflag [#allocation4], %s2980_s28 }
 0x213   : > { %v2119_v14 = vsel %vm1128_vm8, %v2116_v63, %v2118_v2  ;;  %v2117_v54 = vsel %vm1128_vm8, %v2115_v60, %v2116_v63  ;;  %v2136_v33 = vrot.slane %v2130_v55, 6  ;;  %v2173_v35 = vmul.f32 %v2171_v28, %v3124_v21  ;;  %s2307_s27 = sshll.u32 %s215_s23, 4  ;;  %s4019_s27 = int_to_ptr.vmem [resolvable:$true] %s2307_s27 }
 0x214   : > { %v3861_v29 = vpop.permute.xlu1 %1334  ;;  %v1319_v15 = vpop.permute.xlu0 %1318  ;;  %v2160_v26 = vrot.slane %v2153_v19, 6  ;;  %v2172_v5 = vmul.f32 %v2171_v28, %v3110_v8  ;;  %v2200_v50 = vrot.slane %v2194_v32, 6  ;;  %v2199_v62 = vrot.slane %v2193_v37, 6 }
 0x215   : > { %v3865_v38 = vadd.f32 %v1319_v15, %v1310_v22  ;;  %v2137_v22 = vrot.slane %v2131_v13, 6  ;;  %v2174_v15 = vmul.f32 %v2171_v28, %v3121_v20  ;;  %v2179_v9 = vrot.slane %v2173_v35, 6 }
 0x216   : > { %2021 = vrot.lane.b32.xlu1 %v2018_v30, %s2781_s5  ;;  %1998 = vrot.lane.b32.xlu0 %v1995_v17, %s2780_s20  ;;  %v2158_v17 = vrot.slane %v2152_v24, 6  ;;  %v2178_v52 = vrot.slane %v2172_v5, 6  ;;  %v2201_v3 = vsel %vm1128_vm8, %v2199_v62, %v2200_v50 }
 0x217   : > { %v2140_v30 = vsel %vm1128_vm8, %v2137_v22, %v2139_v43  ;;  %v2138_v18 = vsel %vm1128_vm8, %v2136_v33, %v2137_v22 }
 0x218   : > { %v3872_v44 = vpop.permute.xlu1 %1348  ;;  %v3874_v45 = vpop.permute.xlu0 %1332  ;;  %v2161_v40 = vsel %vm1128_vm8, %v2158_v17, %v2160_v26  ;;  %v2180_v61 = vsel %vm1128_vm8, %v2178_v52, %v2179_v9 }
 0x219   : > { %v1338_v55 = vadd.f32 %v3874_v45, %v3865_v38 }
 0x21a   : > { %2042 = vrot.lane.b32.xlu1 %v2039_v41, %s2782_s10  ;;  %2019 = vrot.lane.b32.xlu0 %v2016_v49, %s2781_s5  ;;  %v2181_v49 = vrot.slane %v2174_v15, 6  ;;  %v2157_v41 = vrot.slane %v2151_v16, 6 }
 0x21c   : > { %v3883_v47 = vpop.permute.xlu1 %1386  ;;  %v3885_v48 = vpop.permute.xlu0 %1346  ;;  %v2182_v34 = vsel %vm1128_vm8, %v2179_v9, %v2181_v49  ;;  %v2159_v42 = vsel %vm1128_vm8, %v2157_v41, %v2158_v17 }
 0x21d   : > { %v1352_v15 = vadd.f32 %v3885_v48, %v1338_v55 }
 0x21e   : > { %2063 = vrot.lane.b32.xlu1 %v2060_v57, %s2783_s7  ;;  %2040 = vrot.lane.b32.xlu0 %v2037_v0, %s2782_s10  ;;  %v2202_v57 = vrot.slane %v2195_v56, 6 }
 0x220   : > { %v3894_v6 = vpop.permute.xlu1 %1407  ;;  %v3896_v58 = vpop.permute.xlu0 %1384  ;;  %v2203_v23 = vsel %vm1128_vm8, %v2200_v50, %v2202_v57 }
 0x222   : > { %2101 = vrot.lane.b32.xlu1 %v2098_v53, %s2778_s30  ;;  %2061 = vrot.lane.b32.xlu0 %v2058_v51, %s2783_s7 }
 0x224   : > { %v3905_v11 = vpop.permute.xlu1 %1428  ;;  %v3907_v10 = vpop.permute.xlu0 %1405 }
 0x226   : > { %2122 = vrot.lane.b32.xlu1 %v2119_v14, %s2779_s19  ;;  %2099 = vrot.lane.b32.xlu0 %v2096_v12, %s2778_s30  ;;  %s2472_s30 = sld [smem:[#allocation2 + $0x38]]  ;;  %v1339_v14 = vadd.f32 %v3861_v29, %v3854_v25 }
 0x228   : > { %v3916_v1 = vpop.permute.xlu1 %1449  ;;  %v3918_v31 = vpop.permute.xlu0 %1426  ;;  %v1353_v60 = vadd.f32 %v3872_v44, %v1339_v14 }
 0x22a   : > { %2143 = vrot.lane.b32.xlu1 %v2140_v30, %s2780_s20  ;;  %2120 = vrot.lane.b32.xlu0 %v2117_v54, %s2779_s19  ;;  %s2479_s19 = sld [smem:[#allocation2 + $0x3f]] }
 0x22c   : > { %v3927_v36 = vpop.permute.xlu1 %1470  ;;  %v3929_v39 = vpop.permute.xlu0 %1447  ;;  %v1355_v2 = vstv %s2472_s30 }
 0x22d   : > { %v1358_v63 = vmul.f32 %v1355_v2, %v3121_v20  ;;  %v1357_v13 = vmul.f32 %v1355_v2, %v3124_v21  ;;  %v1356_v4 = vmul.f32 %v1355_v2, %v3110_v8 }
 0x22e   : > { %2164 = vrot.lane.b32.xlu1 %v2161_v40, %s2781_s5  ;;  %2141 = vrot.lane.b32.xlu0 %v2138_v18, %s2780_s20  ;;  %s2486_s20 = sld [smem:[#allocation2 + $0x46]] }
 0x22f   : > { %v1365_v43 = vrot.slane %v1358_v63, 1  ;;  %v1363_v24 = vrot.slane %v1357_v13, 1  ;;  %v1362_v22 = vrot.slane %v1356_v4, 1 }
 0x230   : > { %v3938_v46 = vpop.permute.xlu1 %1491  ;;  %v3940_v0 = vpop.permute.xlu0 %1468  ;;  %v1498_v49 = vstv %s2479_s19 }
 0x231   : > { %v1366_v30 = vsel %vm409_vm4, %v1363_v24, %v1365_v43  ;;  %v1364_v33 = vsel %vm409_vm4, %v1362_v22, %v1363_v24  ;;  %v1501_v27 = vmul.f32 %v1498_v49, %v3121_v20  ;;  %v1499_v9 = vmul.f32 %v1498_v49, %v3110_v8 }
 0x232   : > { %2185 = vrot.lane.b32.xlu1 %v2182_v34, %s2782_s10  ;;  %2162 = vrot.lane.b32.xlu0 %v2159_v42, %s2781_s5  ;;  %v1370_v54 = vadd.f32 %v1366_v30, %v1353_v60  ;;  %v1369_v29 = vadd.f32 %v1364_v33, %v1352_v15  ;;  %s2493_s5 = sld [smem:[#allocation2 + $0x4d]] }
 0x233   : > { %v1505_v52 = vrot.slane %v1499_v9, 2 }
 0x234   : > { %v3947_v59 = vpop.permute.xlu1 %1529  ;;  %v1490_v7 = vpop.permute.xlu0 %1489  ;;  %v1391_v44 = vadd.f32 %v3883_v47, %v1370_v54  ;;  %v1390_v45 = vadd.f32 %v3896_v58, %v1369_v29  ;;  %v1500_v47 = vmul.f32 %v1498_v49, %v3124_v21 }
 0x236   : > { %2206 = vrot.lane.b32.xlu1 %v2203_v23, %s2783_s7  ;;  %2183 = vrot.lane.b32.xlu0 %v2180_v61, %s2782_s10  ;;  %v1412_v38 = vadd.f32 %v3894_v6, %v1391_v44  ;;  %v1411_v48 = vadd.f32 %v3907_v10, %v1390_v45  ;;  %v1506_v57 = vrot.slane %v1500_v47, 2  ;;  %s2500_s10 = sld [smem:[#allocation2 + $0x54]] }
 0x238   : > { %v1551_v53 = vpop.permute.xlu1 %1550  ;;  %v1528_v51 = vpop.permute.xlu0 %1527  ;;  %v1433_v40 = vadd.f32 %v3905_v11, %v1412_v38  ;;  %v1432_v5 = vadd.f32 %v3918_v31, %v1411_v48  ;;  %v1508_v11 = vrot.slane %v1501_v27, 2 }
 0x23a   : > { %2204 = vrot.lane.b32.xlu0 %v2201_v3, %s2783_s7  ;;  %v1454_v56 = vadd.f32 %v3916_v1, %v1433_v40  ;;  %v1453_v58 = vadd.f32 %v3929_v39, %v1432_v5  ;;  %v1509_v31 = vsel %vm553_vm5, %v1506_v57, %v1508_v11  ;;  %v1784_v5 = vstv %s2493_s5  ;;  %s2507_s7 = sld [smem:[#allocation2 + $0x5b]] }
 0x23b   : > { %v1787_v47 = vmul.f32 %v1784_v5, %v3121_v20  ;;  %v1786_v11 = vmul.f32 %v1784_v5, %v3124_v21 }
 0x23c   : > { %v1572_v12 = vpop.permute.xlu1 %1571  ;;  %v1549_v19 = vpop.permute.xlu0 %1548  ;;  %v1475_v6 = vadd.f32 %v3927_v36, %v1454_v56  ;;  %v1474_v42 = vadd.f32 %v3940_v0, %v1453_v58  ;;  %v1507_v36 = vsel %vm553_vm5, %v1505_v52, %v1506_v57 }
 0x23e   : > { %v1496_v34 = vadd.f32 %v3938_v46, %v1475_v6  ;;  %v1495_v1 = vadd.f32 %v1490_v7, %v1474_v42  ;;  %v1641_v7 = vstv %s2486_s20  ;;  %s2784_s20 = smov [#allocation9]  }
 0x23f   : > { %v1644_v14 = vmul.f32 %v1641_v7, %v3121_v20  ;;  %v1643_v55 = vmul.f32 %v1641_v7, %v3124_v21  ;;  %v1642_v24 = vmul.f32 %v1641_v7, %v3110_v8  ;;  %s2700_s5 = sshll.u32 %s2784_s20, 4  ;;  %s2701_s5 = int_to_ptr.vmem [resolvable:$false] %s2700_s5 }
 0x240   : > { %v1593_v28 = vpop.permute.xlu1 %1592  ;;  %v1570_v26 = vpop.permute.xlu0 %1569  ;;  %v1513_v23 = vadd.f32 %v1509_v31, %v1496_v34  ;;  %v1512_v61 = vadd.f32 %v1507_v36, %v1495_v1  ;;  %v1785_v34 = vmul.f32 %v1784_v5, %v3110_v8  ;;  %v1792_v31 = vrot.slane %v1786_v11, 4  ;;  %p2703_p11 = scmp.lt.s32.totalorder %s4019_s27, %s2701_s5 }
 0x241   : > { %v1649_v33 = vrot.slane %v1643_v55, 3  ;;  %v1648_v29 = vrot.slane %v1642_v24, 3 }
 0x242   : > { %v1534_v2 = vadd.f32 %v3947_v59, %v1513_v23  ;;  %v1533_v46 = vadd.f32 %v1528_v51, %v1512_v61  ;;  %v1651_v59 = vrot.slane %v1644_v14, 3 }
 0x244   : > { %v1614_v16 = vpop.permute.xlu1 %1613  ;;  %v1591_v25 = vpop.permute.xlu0 %1590  ;;  %v1555_v3 = vadd.f32 %v1551_v53, %v1534_v2  ;;  %v1554_v4 = vadd.f32 %v1549_v19, %v1533_v46  ;;  %v1652_v38 = vsel %vm697_vm6, %v1649_v33, %v1651_v59 }
 0x246   : > { %v1576_v13 = vadd.f32 %v1572_v12, %v1555_v3  ;;  %v1575_v60 = vadd.f32 %v1570_v26, %v1554_v4  ;;  %v1650_v26 = vsel %vm697_vm6, %v1648_v29, %v1649_v33 }
 0x248   : > { %v1635_v17 = vpop.permute.xlu1 %1634  ;;  %v1612_v35 = vpop.permute.xlu0 %1611  ;;  %v1597_v43 = vadd.f32 %v1593_v28, %v1576_v13  ;;  %v1596_v54 = vadd.f32 %v1591_v25, %v1575_v60  ;;  %v1927_v60 = vstv %s2500_s10  ;;  %s2702_s10 = scalar_lea.vmem %s2701_s5, 2048 }
 0x249   : > { %v1930_v55 = vmul.f32 %v1927_v60, %v3121_v20 }
 0x24a   : > { %v1618_v30 = vadd.f32 %v1614_v16, %v1597_v43  ;;  %v1617_v51 = vadd.f32 %v1612_v35, %v1596_v54 }
 0x24b   : > { %v1937_v33 = vrot.slane %v1930_v55, 5 }
 0x24c   : > { %v1673_v18 = vpop.permute.xlu1 %1672  ;;  %v1633_v41 = vpop.permute.xlu0 %1632  ;;  %v1639_v53 = vadd.f32 %v1635_v17, %v1618_v30  ;;  %v1928_v30 = vmul.f32 %v1927_v60, %v3110_v8 }
 0x24d   : > { %v1638_v44 = vadd.f32 %v1633_v41, %v1617_v51 }
 0x24e   : > { %v1656_v28 = vadd.f32 %v1652_v38, %v1639_v53 }
 0x24f   : > { %v1655_v48 = vadd.f32 %v1650_v26, %v1638_v44  ;;  %v1934_v44 = vrot.slane %v1928_v30, 5 }
 0x250   : > { %v1694_v32 = vpop.permute.xlu1 %1693  ;;  %v1671_v10 = vpop.permute.xlu0 %1670  ;;  %v1677_v49 = vadd.f32 %v1673_v18, %v1656_v28  ;;  %v1794_v18 = vrot.slane %v1787_v47, 4 }
 0x251   : > { %v1676_v17 = vadd.f32 %v1671_v10, %v1655_v48 }
 0x252   : > { %v1698_v27 = vadd.f32 %v1694_v32, %v1677_v49  ;;  %v1795_v23 = vsel %vm841_vm7, %v1792_v31, %v1794_v18 }
 0x254   : > { %v1715_v37 = vpop.permute.xlu1 %1714  ;;  %v1692_v50 = vpop.permute.xlu0 %1691 }
 0x255   : > { %v1719_v35 = vadd.f32 %v1715_v37, %v1698_v27  ;;  %v1697_v56 = vadd.f32 %v1692_v50, %v1676_v17  ;;  %v1791_v37 = vrot.slane %v1785_v34, 4 }
 0x258   : > { %v1736_v39 = vpop.permute.xlu1 %1735  ;;  %v1713_v62 = vpop.permute.xlu0 %1712 }
 0x259   : > { %v1740_v6 = vadd.f32 %v1736_v39, %v1719_v35  ;;  %v1718_v58 = vadd.f32 %v1713_v62, %v1697_v56  ;;  %v1793_v62 = vsel %vm841_vm7, %v1791_v37, %v1792_v31 }
 0x25c   : > { %v1757_v63 = vpop.permute.xlu1 %1756  ;;  %v1734_v0 = vpop.permute.xlu0 %1733 }
 0x25d   : > { %v1761_v42 = vadd.f32 %v1757_v63, %v1740_v6  ;;  %v1739_v57 = vadd.f32 %v1734_v0, %v1718_v58 }
 0x260   : > { %v1778_v22 = vpop.permute.xlu1 %1777  ;;  %v1755_v15 = vpop.permute.xlu0 %1754 }
 0x261   : > { %v1782_v32 = vadd.f32 %v1778_v22, %v1761_v42  ;;  %v1760_v10 = vadd.f32 %v1755_v15, %v1739_v57  ;;  %v1929_v15 = vmul.f32 %v1927_v60, %v3124_v21 }
 0x263   : > { %v1799_v39 = vadd.f32 %v1795_v23, %v1782_v32 }
 0x264   : > { %v1816_v12 = vpop.permute.xlu1 %1815  ;;  %v1776_v19 = vpop.permute.xlu0 %1775 }
 0x265   : > { %v1781_v50 = vadd.f32 %v1776_v19, %v1760_v10  ;;  %v1820_v63 = vadd.f32 %v1816_v12, %v1799_v39  ;;  %v1935_v19 = vrot.slane %v1929_v15, 5 }
 0x267   : > { %v1798_v2 = vadd.f32 %v1793_v62, %v1781_v50  ;;  %v1936_v48 = vsel %vm258_vm1, %v1934_v44, %v1935_v19 }
 0x268   : > { %v1837_v45 = vpop.permute.xlu1 %1836  ;;  %v1814_v40 = vpop.permute.xlu0 %1813 }
 0x269   : > { %v1841_v0 = vadd.f32 %v1837_v45, %v1820_v63  ;;  %v1819_v13 = vadd.f32 %v1814_v40, %v1798_v2  ;;  %v1938_v45 = vsel %vm258_vm1, %v1935_v19, %v1937_v33 }
 0x26c   : > { %v1858_v16 = vpop.permute.xlu1 %1857  ;;  %v1835_v25 = vpop.permute.xlu0 %1834 }
 0x26d   : > { %v1862_v14 = vadd.f32 %v1858_v16, %v1841_v0  ;;  %v1840_v43 = vadd.f32 %v1835_v25, %v1819_v13 }
 0x270   : > { %v1879_v41 = vpop.permute.xlu1 %1878  ;;  %v1856_v9 = vpop.permute.xlu0 %1855 }
 0x271   : > { %v1883_v24 = vadd.f32 %v1879_v41, %v1862_v14  ;;  %v1861_v22 = vadd.f32 %v1856_v9, %v1840_v43  ;;  %v2070_v9 = vstv %s2507_s7 }
 0x272   : > { %v2073_v6 = vmul.f32 %v2070_v9, %v3121_v20  ;;  %v2072_v57 = vmul.f32 %v2070_v9, %v3124_v21  ;;  %v2071_v18 = vmul.f32 %v2070_v9, %v3110_v8 }
 0x274   : > { %v1900_v52 = vpop.permute.xlu1 %1899  ;;  %v1877_v1 = vpop.permute.xlu0 %1876  ;;  %v2080_v32 = vrot.slane %v2073_v6, 6  ;;  %v2078_v23 = vrot.slane %v2072_v57, 6 }
 0x275   : > { %v1904_v53 = vadd.f32 %v1900_v52, %v1883_v24  ;;  %v1882_v51 = vadd.f32 %v1877_v1, %v1861_v22 }
 0x276   : > { %v2081_v20 = vsel %vm1128_vm8, %v2078_v23, %v2080_v32 }
 0x278   : > { %v1921_v36 = vpop.permute.xlu1 %1920  ;;  %v1898_v61 = vpop.permute.xlu0 %1897 }
 0x279   : > { %v1925_v29 = vadd.f32 %v1921_v36, %v1904_v53  ;;  %v1903_v12 = vadd.f32 %v1898_v61, %v1882_v51  ;;  %v2077_v36 = vrot.slane %v2071_v18, 6  ;;  %v2254_v18 = vld [vmem:[#allocation6] sm:$0xff] }
 0x27b   : > { %v1942_v40 = vadd.f32 %v1938_v45, %v1925_v29 }
 0x27c   : > { %v1959_v3 = vpop.permute.xlu1 %1958  ;;  %v1919_v46 = vpop.permute.xlu0 %1918 }
 0x27d   : > { %v1924_v26 = vadd.f32 %v1919_v46, %v1903_v12  ;;  %v1963_v27 = vadd.f32 %v1959_v3, %v1942_v40  ;;  %v2079_v3 = vsel %vm1128_vm8, %v2077_v36, %v2078_v23 }
 0x27f   : > { %v1941_v25 = vadd.f32 %v1936_v48, %v1924_v26 }
 0x280   : > { %v1980_v4 = vpop.permute.xlu1 %1979  ;;  %v1957_v7 = vpop.permute.xlu0 %1956 }
 0x281   : > { %v1984_v56 = vadd.f32 %v1980_v4, %v1963_v27  ;;  %v1962_v5 = vadd.f32 %v1957_v7, %v1941_v25 }
 0x284   : > { %v2001_v54 = vpop.permute.xlu1 %2000  ;;  %v1978_v59 = vpop.permute.xlu0 %1977 }
 0x285   : > { %v2005_v47 = vadd.f32 %v2001_v54, %v1984_v56  ;;  %v1983_v41 = vadd.f32 %v1978_v59, %v1962_v5 }
 0x288   : > { %v2022_v38 = vpop.permute.xlu1 %2021  ;;  %v1999_v28 = vpop.permute.xlu0 %1998 }
 0x289   : > { %v2026_v34 = vadd.f32 %v2022_v38, %v2005_v47  ;;  %v2004_v42 = vadd.f32 %v1999_v28, %v1983_v41 }
 0x28c   : > { %v2043_v49 = vpop.permute.xlu1 %2042  ;;  %v2020_v16 = vpop.permute.xlu0 %2019 }
 0x28d   : > { %v2047_v52 = vadd.f32 %v2043_v49, %v2026_v34  ;;  %v2025_v1 = vadd.f32 %v2020_v16, %v2004_v42 }
 0x290   : > { %v2064_v17 = vpop.permute.xlu1 %2063  ;;  %v2041_v35 = vpop.permute.xlu0 %2040 }
 0x291   : > { %v2068_v37 = vadd.f32 %v2064_v17, %v2047_v52  ;;  %v2046_v50 = vadd.f32 %v2041_v35, %v2025_v1  ;;  %v2255_v52 = vld [vmem:[#allocation6 + $0x8] sm:$0xff] }
 0x293   : > { %v2085_v2 = vadd.f32 %v2081_v20, %v2068_v37 }
 0x294   : > { %v2102_v58 = vpop.permute.xlu1 %2101  ;;  %v2062_v11 = vpop.permute.xlu0 %2061 }
 0x295   : > { %v2067_v61 = vadd.f32 %v2062_v11, %v2046_v50  ;;  %v2106_v63 = vadd.f32 %v2102_v58, %v2085_v2 }
 0x297   : > { %v2084_v21 = vadd.f32 %v2079_v3, %v2067_v61 }
 0x298   : > { %v2123_v10 = vpop.permute.xlu1 %2122  ;;  %v2100_v31 = vpop.permute.xlu0 %2099 }
 0x299   : > { %v2127_v0 = vadd.f32 %v2123_v10, %v2106_v63  ;;  %v2105_v13 = vadd.f32 %v2100_v31, %v2084_v21  ;;  %v2259_v10 = vld [vmem:[#allocation6 + $0x10] sm:$0xff]  ;;  %v2260_v31 = vld [vmem:[#allocation6 + $0x18] sm:$0xff] }
 0x29c   : > { %v2144_v39 = vpop.permute.xlu1 %2143  ;;  %v2121_v62 = vpop.permute.xlu0 %2120 }
 0x29d   : > { %v2148_v14 = vadd.f32 %v2144_v39, %v2127_v0  ;;  %v2126_v43 = vadd.f32 %v2121_v62, %v2105_v13  ;;  %v2617_v0 = vld [vmem:[%s2986_s11] sm:$0xff] }
 0x2a0   : > { %v2165_v46 = vpop.permute.xlu1 %2164  ;;  %v2142_v8 = vpop.permute.xlu0 %2141 }
 0x2a1   : > { %v2169_v60 = vadd.f32 %v2165_v46, %v2148_v14  ;;  %v2147_v55 = vadd.f32 %v2142_v8, %v2126_v43  ;;  %v2619_v14 = vld [vmem:[%s2986_s11 + $0x20] sm:$0xff] }
 0x2a4   : > { %v2186_v4 = vpop.permute.xlu1 %2185  ;;  %v2163_v7 = vpop.permute.xlu0 %2162 }
 0x2a5   : > { %v2190_v15 = vadd.f32 %v2186_v4, %v2169_v60  ;;  %v2168_v30 = vadd.f32 %v2163_v7, %v2147_v55  ;;  %v2618_v4 = vld [vmem:[%s2986_s11 + $0x10] sm:$0xff] }
 0x2a6   : > { %v2620_v60 = vld [vmem:[%s2986_s11 + $0x30] sm:$0xff] }
 0x2a8   : > { %v2207_v24 = vpop.permute.xlu1 %2206  ;;  %v2184_v22 = vpop.permute.xlu0 %2183 }
 0x2a9   : > { %v2211_v54 = vadd.f32 %v2207_v24, %v2190_v15  ;;  %v2189_v59 = vadd.f32 %v2184_v22, %v2168_v30  ;;  %v2621_v24 = vld [vmem:[%s2986_s11 + $0x8] sm:$0xff]  ;;  %v2622_v15 = vld [vmem:[%s2986_s11 + $0x18] sm:$0xff] }
 0x2ab   : > { %v2213_v33 = vsel %vm224_vm0, %v2211_v54, 0.0 }
 0x2ac   : > { %v2205_v53 = vpop.permute.xlu0 %2204 }
 0x2ad   : > { %v2210_v51 = vadd.f32 %v2205_v53, %v2189_v59  ;;  %v2624_v53 = vld [vmem:[%s2986_s11 + $0x38] sm:$0xff] }
 0x2af   : > { %v2212_v29 = vsel %vm224_vm0, %v2210_v51, 0.0 }
 0x2b0   : > { %v2214_v12 = vadd.f32 %v2213_v33, %v2212_v29 }
 0x2b2   : > { %2215 = vadd.xlane.f32.xlu0 %v2214_v12 }
 0x33f   : > { %v2216_v19 = vpop.xlane.xlu0 %2215 }
 0x340   : > { %v2217_v44 = vrot.slane %v2216_v19, 4 }
 0x342   : > { %v2218_v38 = vadd.f32 %v2217_v44, %v2216_v19 }
 0x344   : > { %v2219_v28 = vrot.slane %v2218_v38, 2 }
 0x346   : > { %v2220_v26 = vadd.f32 %v2219_v28, %v2218_v38 }
 0x348   : > { %v2221_v45 = vrot.slane %v2220_v26, 1 }
 0x34a   : > { %v2222_v40 = vadd.f32 %v2221_v45, %v2220_v26 }
 0x34c   : > { %2523 = vpush %v2222_v40 }
 0x37d   : > { %s2524_s8 = spop %2523 }
 0x37e   : > { %s2226_s9 = smul.f32 0.00390625, %s2524_s8 }
 0x380   : > { %v2227_v48 = vstv %s2226_s9 }
 0x381   : > { %v2228_v49 = vsub.f32 %v2210_v51, %v2227_v48  ;;  %v2229_v16 = vsub.f32 %v2211_v54, %v2227_v48  ;;  %v2623_v54 = vld [vmem:[%s2986_s11 + $0x28] sm:$0xff]  ;;  %s2696_s11 = scalar_lea.vmem %s4019_s27, 1024 }
 0x382   : > { %p2697_p8 = scmp.ne.s32.totalorder %s4019_s27, %s2696_s11  ;;  %p2704_p13 = scmp.lt.s32.totalorder %s2702_s10, %s2696_s11 }
 0x383   : > { %v2230_v25 = vmul.f32 %v2228_v49, %v2228_v49  ;;  %v2231_v27 = vmul.f32 %v2229_v16, %v2229_v16 }
 0x384   : > { %p2698_p4 = pnand %p2697_p8, %p4100_p9  ;;  %p2705_p3 = por %p2704_p13, %p2703_p11 }
 0x385   : > { %v2232_v17 = vsel %vm224_vm0, %v2230_v25, 0.0  ;;  %v2233_v35 = vsel %vm224_vm0, %v2231_v27, 0.0 }
 0x386   : > { %v2234_v56 = vadd.f32 %v2233_v35, %v2232_v17  ;;  %p2699_p10 = pneg %p2698_p4 }
 0x388   : > { %2235 = vadd.xlane.f32.xlu1 %v2234_v56  ;;  %p2706_p7 = pnand %p2705_p3, %p2699_p10 }
 0x415   : > { %v2236_v5 = vpop.xlane.xlu1 %2235 }
 0x416   : > { %v2237_v47 = vrot.slane %v2236_v5, 4 }
 0x418   : > { %v2238_v41 = vadd.f32 %v2237_v47, %v2236_v5 }
 0x41a   : > { %v2239_v9 = vrot.slane %v2238_v41, 2 }
 0x41c   : > { %v2240_v6 = vadd.f32 %v2239_v9, %v2238_v41 }
 0x41e   : > { %v2241_v58 = vrot.slane %v2240_v6, 1 }
 0x420   : > { %v2242_v11 = vadd.f32 %v2241_v58, %v2240_v6 }
 0x422   : > { %2525 = vpush %v2242_v11 }
 0x453   : > { %s2526_s17 = spop %2525 }
 0x454   : > { %s2246_s29 = smul.f32 0.00390625, %s2526_s17 }
 0x456   : > { %s2247_s4 = sadd.f32 1e-05, %s2246_s29 }
 0x458   : > { %v2248_v34 = vstv %s2247_s4 }
 0x459   : > { %2607 = vrsqrt.f32 %v2248_v34 }
 0x463   : > { %v2608_v42 = vpop.eup %2607 }
 0x464   : > { %2527 = vpush %v2608_v42 }
 0x495   : > { %s2528_s22 = spop %2527 }
 0x496   : > { %v2251_v57 = vstv %s2528_s22 }
 0x497   : > { %v2252_v1 = vmul.f32 %v2251_v57, %v2228_v49  ;;  %v2253_v32 = vmul.f32 %v2251_v57, %v2229_v16 }
 0x499   : > { %v2256_v37 = vmul.f32 %v2254_v18, %v2252_v1  ;;  %v2257_v50 = vmul.f32 %v2255_v52, %v2253_v32 }
 0x49b   : > { %v2261_v23 = vadd.f32 %v2259_v10, %v2256_v37  ;;  %v2262_v36 = vadd.f32 %v2260_v31, %v2257_v50 }
 0x49d   : > { %v2263_v61 = vmax.f32 %v2261_v23, 0.0  ;;  %v2264_v20 = vmax.f32 %v2262_v36, 0.0 }
 0x49f   : > { %v2514_v39 = vmul.f32 -1.442695, %v2263_v61  ;;  %v2515_v62 = vmul.f32 -1.442695, %v2264_v20 }
 0x4a1   : > { %2609 = vpow2.f32 %v2514_v39 }
 0x4a2   : > { %2611 = vpow2.f32 %v2515_v62 }
 0x4ab   : > { %v2610_v2 = vpop.eup %2609 }
 0x4ac   : > { %v2612_v3 = vpop.eup %2611  ;;  %v2271_v21 = vadd.f32 1.0, %v2610_v2 }
 0x4ad   : > { %v2272_v46 = vadd.f32 1.0, %v2612_v3 }
 0x4ae   : > { %2613 = vrcp.f32 %v2271_v21 }
 0x4af   : > { %2615 = vrcp.f32 %v2272_v46 }
 0x4b8   : > { %v2614_v8 = vpop.eup %2613 }
 0x4b9   : > { %v2616_v63 = vpop.eup %2615  ;;  %v2277_v13 = vmul.f32 %v2617_v0, %v2614_v8  ;;  %v2279_v7 = vmul.f32 %v2618_v4, %v2614_v8  ;;  %v2281_v43 = vmul.f32 %v2619_v14, %v2614_v8  ;;  %v2283_v55 = vmul.f32 %v2620_v60, %v2614_v8 }
 0x4ba   : > { %v2278_v22 = vmul.f32 %v2621_v24, %v2616_v63  ;;  %v2280_v30 = vmul.f32 %v2622_v15, %v2616_v63  ;;  %v2282_v59 = vmul.f32 %v2623_v54, %v2616_v63  ;;  %v2284_v51 = vmul.f32 %v2624_v53, %v2616_v63 }
 0x4bb   : > { %2285 = vst.msk [vmem:[%s215_s23] sm:$0xff] %vm224_vm0, %v2277_v13  ;;  %2287 = vst.msk [vmem:[%s215_s23 + $0x10] sm:$0xff] %vm224_vm0, %v2279_v7 }
 0x4bc   : > { %2289 = vst.msk [vmem:[%s215_s23 + $0x20] sm:$0xff] %vm224_vm0, %v2281_v43  ;;  %2291 = vst.msk [vmem:[%s215_s23 + $0x30] sm:$0xff] %vm224_vm0, %v2283_v55 }
 0x4bd   : > { %2286 = vst.msk [vmem:[%s215_s23 + $0x8] sm:$0xff] %vm224_vm0, %v2278_v22  ;;  %2288 = vst.msk [vmem:[%s215_s23 + $0x18] sm:$0xff] %vm224_vm0, %v2280_v30 }
 0x4be   : > { %2290 = vst.msk [vmem:[%s215_s23 + $0x28] sm:$0xff] %vm224_vm0, %v2282_v59  ;;  %2292 = vst.msk [vmem:[%s215_s23 + $0x38] sm:$0xff] %vm224_vm0, %v2284_v51 }
 0x4bf   : > { %2709 = shalt.err (!%p2706_p7)
}
 0x4c0   : > { %s2710_s7 = scalar_lea.hbm %s4017_s16, 1024  ;;  %s2714_s17 = scalar_lea.hbm %s4078_s3, 2048 }
 0x4c1   : > { %p2711_p12 = scmp.ne.s32.totalorder %s4017_s16, %s2710_s7  ;;  %p2715_p0 = scmp.lt.u32.totalorder %s4017_s16, %s4078_s3 }
 0x4c2   : > { %p2716_p6 = scmp.lt.u32.totalorder %s2714_s17, %s2710_s7  ;;  %p2718_p8 = scmp.lt.u32.totalorder %s2710_s7, %s4017_s16 }
 0x4c3   : > { %p2712_p1 = pnand %p2711_p12, %p4100_p9 }
 0x4c4   : > { %p2717_p5 = por %p2716_p6, %p2715_p0 }
 0x4c5   : > { %p2713_p2 = pneg %p2712_p1 }
 0x4c6   : > { %p2719_p4 = por %p2718_p8, %p2717_p5 }
 0x4c8   : > { %p2720_p10 = pnand %p2719_p4, %p2713_p2 }
 0x4ca   : > { %2723 = shalt.err (!%p2720_p10)
}
 0x4cb   : > { %s2785_s22 = smov 128   ;;  %s2786_s6 = smov 8  }
 0x4cc   : > { %2539 = dma.vmem_to_hbm [thread:$0]  (%p4100_p9), %s4019_s27, 1024, %s4017_s16, %s2294_s26, %s2785_s22, %s2785_s22, %s2786_s6  }
 0x4cd PF: > { %s2322_s23 = sand.u32 1, %s2758_s12   ;;  %p4101_p11 = scmp.ne.s32.totalorder %s4087_s25, 0 }
 0x4ce   : > { %p4102_p13 = scmp.ge.s32.totalorder %s2770_s15, 2  ;;  %s2323_s30 = scalar_lea.sflag [#allocation4], %s2322_s23 }
 0x4d0   : > { %p2553_p3 = pnand %p4102_p13, %p4101_p11 }
 0x4d2   : > { %2753 = dma.done.wait (!%p2553_p3), %s2323_s30, 1024  }
 0x4d3   : > { %2755 = vsyncadd (!%p2553_p3), %s2323_s30, 4294966272  ;;  %p18_p7 = scmp.ge.s32.totalorder %s2832_s18, 4   ;;  %s4103_s12 = smov %s2762_s13 }
 0x4d4   : > { %s4104_s13 = smov %s2766_s14  ;;  %s4105_s14 = smov %s2844_s21 }
 0x4d5   : > { %s4106_s15 = smov %s2832_s18  ;;  %20 = sbr.rel (!%p18_p7) target bundleno = 7 (0x7), region = 88 }
 0x4dc   :  { %2328 = vsyncpa [#allocation3], 1 }
 0x4dd   :  { %2330 = vsyncpa [#allocation3 + $0x1], 1 }
 0x4de   :  { %2331 = vsyncpa [#allocation8], 1 }
 0x4df   :  { %2333 = vsyncpa [#allocation8 + $0x1], 1 }
 0x4e0   :  { %2334 = vsyncpa [#allocation4], 1 }
 0x4e1   :  { %2336 = vsyncpa [#allocation4 + $0x1], 1 }
 0x4e2   :  { %2337 = vsyncpa [#allocation5], 1 }
 0x4e3   :  { %2339 = vsyncpa [#allocation5 + $0x1], 1 }

</bundles_post_ra>
